<compile_context>
chip_gen: v7x
topology: tpu7x:2x2x1
jax: 0.10.0
libtpu: 0.0.40
codegen_flags: <defaults>
</compile_context>

<pallas_src>
import jax
import jax.numpy as jnp
from jax import lax
from jax.experimental import pallas as pl
from jax.experimental.pallas import tpu as pltpu

jax.config.update("jax_default_matmul_precision", "highest")

# ---------------- configuration ----------------
HIDDEN_NF = 32
EDGE_FEAT_NF = 2          # [radial, edge_attr]
N_LAYERS = 2
NORM_FACTOR = 100.0       # normalization_factor with aggregation_method='sum'
NORM_CONSTANT = 1.0
N_NODES = 16
N_EDGES = 64
N_GRAPHS = 8
OUT_W = 128               # lane-dense output slab width (h in [:H], x in [H:H+3])


def _silu(v):
    return v * jax.nn.sigmoid(v)


def _dot(a, b):
    return jnp.dot(a, b, preferred_element_type=jnp.float32)


def _pg_spec(*tail):
    """Per-graph block: leading (squeezed) graph dim indexed by grid position."""
    nd = len(tail)
    return pl.BlockSpec((None,) + tuple(tail),
                        lambda g, _z=(0,) * nd: (g,) + _z)


def _const_spec(shape):
    """Whole-array block with constant index_map -> DMA'd once, VMEM-resident."""
    return pl.BlockSpec(tuple(shape), lambda g, _z=(0,) * len(shape): _z)


# ------------- fused kernel: coord2diff + 2x GCL + EquivariantUpdate (per graph) -------------
def _fused_block_kernel(h_ref, x_ref, row_ref, col_ref, eattr_ref,
                        emask_ref, nmask_ref, lmask_ref,
                        wm_ref, wv_ref, out_ref):
    N, H = h_ref.shape
    E = eattr_ref.shape[0]

    h = h_ref[...]                 # [N, H]
    x = x_ref[...]                 # [N, 3]
    eattr = eattr_ref[...]         # [E, 1]
    emask = emask_ref[...]         # [E, 1]
    nmask = nmask_ref[...]         # [N, 1]
    lmask = lmask_ref[...]         # [N, 1]
    wv = wv_ref[...]               # [24, H] packed small vectors

    row = row_ref[...]             # [1, E] int32
    col = col_ref[...]             # [1, E] int32

    # Block one-hot built in-kernel: rows [0,N) = row one-hot, rows [N,2N) = col one-hot.
    iota2n = lax.broadcasted_iota(jnp.int32, (2 * N, E), 0)
    oh2 = jnp.logical_or(iota2n == row, iota2n == (col + N)).astype(jnp.float32)  # [2N,E]
    oh_row = oh2[:N, :]                    # [N, E]  scatter matrix (transposed)
    d_oh = oh_row - oh2[N:, :]             # [N, E]  (row_oh - col_oh)^T

    def gatherT(mat, vals):
        # result[e, :] = sum_k mat[k, e] * vals[k, :]  (transposed-LHS MXU contraction)
        return lax.dot_general(mat, vals, (((0,), (0,)), ((), ())),
                               preferred_element_type=jnp.float32)

    # ---- coord2diff (stays entirely in VMEM / vregs) ----
    diff = gatherT(d_oh, x)                                 # x[row] - x[col], [E,3]
    radial = jnp.sum(diff * diff, axis=1, keepdims=True)    # [E,1]
    cdiff = diff / (jnp.sqrt(radial + 1e-8) + NORM_CONSTANT)

    def vrow(i):
        return wv[i:i + 1, :]                               # [1, H]

    def edge_mlp_first(h_cur, w_r, w_c, w_rad, w_att, bias):
        # linear-then-gather: project once per node, gather+sum with one MXU contraction
        hp2 = jnp.concatenate([_dot(h_cur, w_r), _dot(h_cur, w_c)], axis=0)   # [2N,H]
        z = gatherT(oh2, hp2) + radial * w_rad + eattr * w_att + bias         # [E,H]
        return _silu(z)

    # ---- two GCL layers (unrolled) ----
    for l in range(N_LAYERS):
        mb, vb = 6 * l, 8 * l
        m = edge_mlp_first(h, wm_ref[mb + 0], wm_ref[mb + 1],
                           vrow(vb + 0), vrow(vb + 1), vrow(vb + 2))
        m = _silu(_dot(m, wm_ref[mb + 2]) + vrow(vb + 3))
        # attention logit as VPU multiply + lane reduction (no [H,1] matmul)
        att = jax.nn.sigmoid(jnp.sum(m * vrow(vb + 4), axis=-1, keepdims=True)
                             + wv[vb + 7:vb + 8, 0:1])
        e = m * att * emask
        agg = _dot(oh_row, e)                        # scatter-add (1/NF folded into wn1a)
        nz = _dot(h, wm_ref[mb + 3]) + _dot(agg, wm_ref[mb + 4]) + vrow(vb + 5)
        h = (h + _dot(_silu(nz), wm_ref[mb + 5]) + vrow(vb + 6)) * nmask

    # ---- EquivariantUpdate (tanh=False branch) ----
    m = edge_mlp_first(h, wm_ref[12], wm_ref[13], vrow(16), vrow(17), vrow(18))
    m = _silu(_dot(m, wm_ref[14]) + vrow(19))
    phi = jnp.sum(m * vrow(20), axis=-1, keepdims=True)     # Linear(H->1, no bias), /NF folded
    trans = cdiff * phi * emask
    x_out = (x + _dot(oh_row, trans) * lmask) * nmask
    h_out = h * nmask                                       # final mask (idempotent)

    # ---- lane-dense output slab: [:H]=h, [H:H+3]=x, rest zero ----
    pad = jnp.zeros((N, OUT_W - H - 3), jnp.float32)
    out_ref[...] = jnp.concatenate([h_out, x_out, pad], axis=1)


# ---------------- parameter packing (with 1/NORM_FACTOR folding) ----------------
def pack_params(params, H):
    g, c = params['gcl'], params['coord']
    mats, vecs = [], []
    for l in range(N_LAYERS):
        mats += [g['we1r'][l], g['we1c'][l], g['we2'][l],
                 g['wn1h'][l], g['wn1a'][l] / NORM_FACTOR, g['wn2'][l]]
        batt_row = jnp.zeros((1, H), jnp.float32).at[0, 0].set(g['batt'][l, 0, 0])
        vecs += [g['we1rad'][l], g['we1att'][l], g['be1'][l], g['be2'][l],
                 g['watt'][l], g['bn1'][l], g['bn2'][l], batt_row]
    mats += [c['wc1r'], c['wc1c'], c['wc2']]
    vecs += [c['wc1rad'], c['wc1att'], c['bc1'], c['bc2'], c['wc3'] / NORM_FACTOR]
    vecs += [jnp.zeros((1, H), jnp.float32)] * 3             # pad to 24 rows
    wm = jnp.stack(mats, axis=0)                             # [15, H, H]
    wv = jnp.concatenate(vecs, axis=0)                       # [24, H]
    return wm, wv


# ---------------- wrapper ----------------
def equivariant_block_forward(h, x, row, col, edge_attr, node_mask, linker_mask,
                              edge_mask, params):
    G, N, H = h.shape
    E = row.shape[-1]
    row3 = row.reshape(G, 1, E).astype(jnp.int32)
    col3 = col.reshape(G, 1, E).astype(jnp.int32)
    wm, wv = pack_params(params, H)

    args = (h, x, row3, col3, edge_attr, edge_mask, node_mask, linker_mask, wm, wv)
    in_specs = [
        _pg_spec(N, H), _pg_spec(N, 3), _pg_spec(1, E), _pg_spec(1, E),
        _pg_spec(E, 1), _pg_spec(E, 1), _pg_spec(N, 1), _pg_spec(N, 1),
        _const_spec(wm.shape), _const_spec(wv.shape),
    ]

    # advisory cost estimate for XLA scheduling
    per_proj = 2 * N * H * H
    per_gather = 2 * E * (2 * N) * H
    per_hh = 2 * E * H * H
    layer_flops = 2 * per_proj + per_gather + per_hh + 2 * N * E * H + 3 * per_proj
    coord_flops = 2 * per_proj + per_gather + per_hh + 2 * N * E * 3
    flops = G * (2 * E * N * 3 + N_LAYERS * layer_flops + coord_flops)
    transcendentals = G * (N_LAYERS * (2 * E * H + E + N * H) + 2 * E * H)
    bytes_accessed = 4 * (sum(int(a.size) for a in args) + G * N * OUT_W)
    cost = pl.CostEstimate(flops=flops, transcendentals=transcendentals,
                           bytes_accessed=bytes_accessed)

    slab = pl.pallas_call(
        _fused_block_kernel,
        grid=(G,),
        in_specs=in_specs,
        out_specs=_pg_spec(N, OUT_W),
        out_shape=jax.ShapeDtypeStruct((G, N, OUT_W), jnp.float32),
        compiler_params=pltpu.CompilerParams(dimension_semantics=("parallel",)),
        cost_estimate=cost,
    )(*args)
    return slab[:, :, :H], slab[:, :, H:H + 3]


# ---------------- deterministic parameter init ----------------
def init_params(key, H):
    ks = iter(jax.random.split(key, 64))

    def u(shape, scale):
        return jax.random.uniform(next(ks), shape, jnp.float32, -scale, scale)

    s_e1 = 1.0 / (2 * H + EDGE_FEAT_NF) ** 0.5
    s_h = 1.0 / H ** 0.5
    s_2h = 1.0 / (2 * H) ** 0.5

    layers = []
    for _ in range(N_LAYERS):
        layers.append(dict(
            we1r=u((H, H), s_e1), we1c=u((H, H), s_e1),
            we1rad=u((1, H), s_e1), we1att=u((1, H), s_e1), be1=u((1, H), s_e1),
            we2=u((H, H), s_h), be2=u((1, H), s_h),
            watt=u((1, H), s_h), batt=u((1, 1), s_h),      # Linear(H,1) stored as [1,H]
            wn1h=u((H, H), s_2h), wn1a=u((H, H), s_2h), bn1=u((1, H), s_2h),
            wn2=u((H, H), s_h), bn2=u((1, H), s_h),
        ))
    gcl = {k: jnp.stack([lp[k] for lp in layers]) for k in layers[0]}

    xav = 0.001 * (6.0 / (H + 1)) ** 0.5   # xavier_uniform gain=0.001, Linear(H,1), no bias
    coord = dict(
        wc1r=u((H, H), s_e1), wc1c=u((H, H), s_e1),
        wc1rad=u((1, H), s_e1), wc1att=u((1, H), s_e1), bc1=u((1, H), s_e1),
        wc2=u((H, H), s_h), bc2=u((1, H), s_h),
        wc3=u((1, H), xav),
    )
    return dict(gcl=gcl, coord=coord)


# ---------------- pure-JAX reference (mirrors the PyTorch forward, single graph) ----------------
def reference_forward(h, x, row, col, edge_attr_in, node_mask, linker_mask, edge_mask, params):
    diff = x[row] - x[col]
    radial = jnp.sum(diff ** 2, axis=1, keepdims=True)
    cdiff = diff / (jnp.sqrt(radial + 1e-8) + NORM_CONSTANT)

    def seg_sum(data, n):
        return jax.ops.segment_sum(data, row, num_segments=n) / NORM_FACTOR

    silu = jax.nn.silu
    g = params['gcl']
    for l in range(N_LAYERS):
        hr, hc = h[row], h[col]
        z = (hr @ g['we1r'][l] + hc @ g['we1c'][l]
             + radial * g['we1rad'][l] + edge_attr_in * g['we1att'][l] + g['be1'][l])
        m = silu(z)
        m = silu(m @ g['we2'][l] + g['be2'][l])
        att = jax.nn.sigmoid(jnp.sum(m * g['watt'][l], axis=-1, keepdims=True) + g['batt'][l])
        e = m * att * edge_mask
        agg = seg_sum(e, h.shape[0])
        out = silu(h @ g['wn1h'][l] + agg @ g['wn1a'][l] + g['bn1'][l]) @ g['wn2'][l] + g['bn2'][l]
        h = (h + out) * node_mask

    c = params['coord']
    z = (h[row] @ c['wc1r'] + h[col] @ c['wc1c']
         + radial * c['wc1rad'] + edge_attr_in * c['wc1att'] + c['bc1'])
    m = silu(z)
    m = silu(m @ c['wc2'] + c['bc2'])
    phi = jnp.sum(m * c['wc3'], axis=-1, keepdims=True)
    trans = cdiff * phi * edge_mask
    agg = seg_sum(trans, x.shape[0]) * linker_mask
    x = (x + agg) * node_mask
    h = h * node_mask
    return h, x


# ---------------- main ----------------
if __name__ == "__main__":
    key = jax.random.PRNGKey(0)
    k_h, k_x, k_ea, k_row, k_col, k_nm, k_em, k_lm, k_p = jax.random.split(key, 9)
    G, N, E, H = N_GRAPHS, N_NODES, N_EDGES, HIDDEN_NF

    h = jax.random.normal(k_h, (G, N, H), jnp.float32)
    x = jax.random.normal(k_x, (G, N, 3), jnp.float32)
    edge_attr = jax.random.normal(k_ea, (G, E, 1), jnp.float32)
    row = jax.random.randint(k_row, (G, E), 0, N)
    col = jax.random.randint(k_col, (G, E), 0, N)
    node_mask = (jax.random.uniform(k_nm, (G, N, 1)) > 0.2).astype(jnp.float32)
    edge_mask = (jax.random.uniform(k_em, (G, E, 1)) > 0.2).astype(jnp.float32)
    linker_mask = (jax.random.uniform(k_lm, (G, N, 1)) > 0.5).astype(jnp.float32)

    params = init_params(k_p, H)

    fwd = jax.jit(equivariant_block_forward)
    h_out, x_out = fwd(h, x, row, col, edge_attr, node_mask, linker_mask, edge_mask, params)
    h_out, x_out = jax.block_until_ready((h_out, x_out))

    h_refs, x_refs = [], []
    for g in range(G):
        hr, xr = reference_forward(h[g], x[g], row[g], col[g], edge_attr[g],
                                   node_mask[g], linker_mask[g], edge_mask[g], params)
        h_refs.append(hr)
        x_refs.append(xr)
    h_ref = jnp.stack(h_refs)
    x_ref = jnp.stack(x_refs)

    assert h_out.shape == (G, N, H) and x_out.shape == (G, N, 3)
    assert jnp.allclose(h_out, h_ref, atol=1e-4, rtol=1e-4), "h mismatch vs reference"
    assert jnp.allclose(x_out, x_ref, atol=1e-4, rtol=1e-4), "x mismatch vs reference"
    print("KERNEL_OK")
</pallas_src>

<mosaic_0001>
module attributes {stable_mosaic.version = 11 : i64} {
  func.func @_fused_block_kernel(%arg0: i32, %arg1: memref<1x16x32xf32, #tpu.memory_space<vmem>>, %arg2: memref<1x16x3xf32, #tpu.memory_space<vmem>>, %arg3: memref<1x1x64xi32, #tpu.memory_space<vmem>>, %arg4: memref<1x1x64xi32, #tpu.memory_space<vmem>>, %arg5: memref<1x64x1xf32, #tpu.memory_space<vmem>>, %arg6: memref<1x64x1xf32, #tpu.memory_space<vmem>>, %arg7: memref<1x16x1xf32, #tpu.memory_space<vmem>>, %arg8: memref<1x16x1xf32, #tpu.memory_space<vmem>>, %arg9: memref<15x32x32xf32, #tpu.memory_space<vmem>>, %arg10: memref<24x32xf32, #tpu.memory_space<vmem>>, %arg11: memref<1x16x128xf32, #tpu.memory_space<vmem>>) attributes {dimension_semantics = [#tpu.dimension_semantics<parallel>], iteration_bounds = array<i64: 8>, scalar_prefetch = 0 : i64, scratch_operands = 0 : i64, tpu.core_type = #tpu.core_type<tc>, window_params = [{transform_indices = @transform_0, window_bounds = array<i64: 1, 16, 32>}, {transform_indices = @transform_1, window_bounds = array<i64: 1, 16, 3>}, {transform_indices = @transform_2, window_bounds = array<i64: 1, 1, 64>}, {transform_indices = @transform_3, window_bounds = array<i64: 1, 1, 64>}, {transform_indices = @transform_4, window_bounds = array<i64: 1, 64, 1>}, {transform_indices = @transform_5, window_bounds = array<i64: 1, 64, 1>}, {transform_indices = @transform_6, window_bounds = array<i64: 1, 16, 1>}, {transform_indices = @transform_7, window_bounds = array<i64: 1, 16, 1>}, {pipeline_mode = #tpu.pipeline_mode<synchronous>, transform_indices = @transform_8, window_bounds = array<i64: 15, 32, 32>}, {pipeline_mode = #tpu.pipeline_mode<synchronous>, transform_indices = @transform_9, window_bounds = array<i64: 24, 32>}, {transform_indices = @transform_10, window_bounds = array<i64: 1, 16, 128>}]} {
    %c0 = arith.constant 0 : index
    %c0_0 = arith.constant 0 : index
    %c0_1 = arith.constant 0 : index
    %0 = vector.load %arg1[%c0, %c0_0, %c0_1] : memref<1x16x32xf32, #tpu.memory_space<vmem>>, vector<1x16x32xf32>
    %1 = vector.shape_cast %0 : vector<1x16x32xf32> to vector<16x32xf32>
    %c0_2 = arith.constant 0 : index
    %c0_3 = arith.constant 0 : index
    %c0_4 = arith.constant 0 : index
    %2 = vector.load %arg2[%c0_2, %c0_3, %c0_4] : memref<1x16x3xf32, #tpu.memory_space<vmem>>, vector<1x16x3xf32>
    %3 = vector.shape_cast %2 : vector<1x16x3xf32> to vector<16x3xf32>
    %c0_5 = arith.constant 0 : index
    %c0_6 = arith.constant 0 : index
    %c0_7 = arith.constant 0 : index
    %4 = vector.load %arg5[%c0_5, %c0_6, %c0_7] : memref<1x64x1xf32, #tpu.memory_space<vmem>>, vector<1x64x1xf32>
    %5 = vector.shape_cast %4 : vector<1x64x1xf32> to vector<64x1xf32>
    %c0_8 = arith.constant 0 : index
    %c0_9 = arith.constant 0 : index
    %c0_10 = arith.constant 0 : index
    %6 = vector.load %arg6[%c0_8, %c0_9, %c0_10] : memref<1x64x1xf32, #tpu.memory_space<vmem>>, vector<1x64x1xf32>
    %7 = vector.shape_cast %6 : vector<1x64x1xf32> to vector<64x1xf32>
    %c0_11 = arith.constant 0 : index
    %c0_12 = arith.constant 0 : index
    %c0_13 = arith.constant 0 : index
    %8 = vector.load %arg7[%c0_11, %c0_12, %c0_13] : memref<1x16x1xf32, #tpu.memory_space<vmem>>, vector<1x16x1xf32>
    %9 = vector.shape_cast %8 : vector<1x16x1xf32> to vector<16x1xf32>
    %c0_14 = arith.constant 0 : index
    %c0_15 = arith.constant 0 : index
    %c0_16 = arith.constant 0 : index
    %10 = vector.load %arg8[%c0_14, %c0_15, %c0_16] : memref<1x16x1xf32, #tpu.memory_space<vmem>>, vector<1x16x1xf32>
    %11 = vector.shape_cast %10 : vector<1x16x1xf32> to vector<16x1xf32>
    %c0_17 = arith.constant 0 : index
    %c0_18 = arith.constant 0 : index
    %12 = vector.load %arg10[%c0_17, %c0_18] : memref<24x32xf32, #tpu.memory_space<vmem>>, vector<24x32xf32>
    %c0_19 = arith.constant 0 : index
    %c0_20 = arith.constant 0 : index
    %c0_21 = arith.constant 0 : index
    %13 = vector.load %arg3[%c0_19, %c0_20, %c0_21] : memref<1x1x64xi32, #tpu.memory_space<vmem>>, vector<1x1x64xi32>
    %14 = vector.shape_cast %13 : vector<1x1x64xi32> to vector<1x64xi32>
    %c0_22 = arith.constant 0 : index
    %c0_23 = arith.constant 0 : index
    %c0_24 = arith.constant 0 : index
    %15 = vector.load %arg4[%c0_22, %c0_23, %c0_24] : memref<1x1x64xi32, #tpu.memory_space<vmem>>, vector<1x1x64xi32>
    %16 = vector.shape_cast %15 : vector<1x1x64xi32> to vector<1x64xi32>
    %17 = tpu.iota {dimensions = array<i32: 0>} : vector<32x64xi32>
    %18 = vector.broadcast %14 : vector<1x64xi32> to vector<32x64xi32>
    %19 = arith.cmpi eq, %17, %18 : vector<32x64xi32>
    %c16_i32 = arith.constant 16 : i32
    %20 = vector.broadcast %c16_i32 : i32 to vector<1x64xi32>
    %21 = arith.addi %16, %20 : vector<1x64xi32>
    %22 = vector.broadcast %21 : vector<1x64xi32> to vector<32x64xi32>
    %23 = arith.cmpi eq, %17, %22 : vector<32x64xi32>
    %24 = arith.ori %19, %23 : vector<32x64xi1>
    %25 = arith.extui %24 : vector<32x64xi1> to vector<32x64xi32>
    %26 = arith.sitofp %25 : vector<32x64xi32> to vector<32x64xf32>
    %27 = vector.extract_strided_slice %26 {offsets = [0, 0], sizes = [16, 64], strides = [1, 1]} : vector<32x64xf32> to vector<16x64xf32>
    %28 = vector.extract_strided_slice %26 {offsets = [16, 0], sizes = [16, 64], strides = [1, 1]} : vector<32x64xf32> to vector<16x64xf32>
    %29 = arith.subf %27, %28 : vector<16x64xf32>
    %cst = arith.constant dense<0.000000e+00> : vector<64x3xf32>
    %30 = tpu.matmul %29, %3, %cst {dimension_numbers = #tpu.dot_dimension_numbers<[0], [0], [1], [1], [0, 1, 1, 1], [], []>, precision = #tpu.contract_precision<fp32>} : vector<16x64xf32>, vector<16x3xf32>, vector<64x3xf32> -> vector<64x3xf32>
    %31 = arith.mulf %30, %30 : vector<64x3xf32>
    %cst_25 = arith.constant dense<0.000000e+00> : vector<64xf32>
    %32 = vector.multi_reduction <add>, %31, %cst_25 [1] : vector<64x3xf32> to vector<64xf32>
    %33 = vector.shape_cast %32 : vector<64xf32> to vector<64x1xf32>
    %cst_26 = arith.constant 9.99999993E-9 : f32
    %34 = vector.broadcast %cst_26 : f32 to vector<64x1xf32>
    %35 = arith.addf %33, %34 : vector<64x1xf32>
    %36 = math.sqrt %35 : vector<64x1xf32>
    %cst_27 = arith.constant 1.000000e+00 : f32
    %37 = vector.broadcast %cst_27 : f32 to vector<64x1xf32>
    %38 = arith.addf %36, %37 : vector<64x1xf32>
    %39 = vector.broadcast %38 : vector<64x1xf32> to vector<64x3xf32>
    %40 = arith.divf %30, %39 : vector<64x3xf32>
    %c0_28 = arith.constant 0 : index
    %c0_29 = arith.constant 0 : index
    %c0_30 = arith.constant 0 : index
    %41 = vector.load %arg9[%c0_28, %c0_29, %c0_30] : memref<15x32x32xf32, #tpu.memory_space<vmem>>, vector<1x32x32xf32>
    %42 = vector.shape_cast %41 : vector<1x32x32xf32> to vector<32x32xf32>
    %c1 = arith.constant 1 : index
    %c0_31 = arith.constant 0 : index
    %c0_32 = arith.constant 0 : index
    %43 = vector.load %arg9[%c1, %c0_31, %c0_32] : memref<15x32x32xf32, #tpu.memory_space<vmem>>, vector<1x32x32xf32>
    %44 = vector.shape_cast %43 : vector<1x32x32xf32> to vector<32x32xf32>
    %45 = vector.extract_strided_slice %12 {offsets = [0, 0], sizes = [1, 32], strides = [1, 1]} : vector<24x32xf32> to vector<1x32xf32>
    %46 = vector.extract_strided_slice %12 {offsets = [1, 0], sizes = [1, 32], strides = [1, 1]} : vector<24x32xf32> to vector<1x32xf32>
    %47 = vector.extract_strided_slice %12 {offsets = [2, 0], sizes = [1, 32], strides = [1, 1]} : vector<24x32xf32> to vector<1x32xf32>
    %cst_33 = arith.constant dense<0.000000e+00> : vector<16x32xf32>
    %48 = tpu.matmul %1, %42, %cst_33 {dimension_numbers = #tpu.dot_dimension_numbers<[1], [0], [0], [1], [0, 0, 1, 1], [], []>, precision = #tpu.contract_precision<fp32>} : vector<16x32xf32>, vector<32x32xf32>, vector<16x32xf32> -> vector<16x32xf32>
    %cst_34 = arith.constant dense<0.000000e+00> : vector<16x32xf32>
    %49 = tpu.matmul %1, %44, %cst_34 {dimension_numbers = #tpu.dot_dimension_numbers<[1], [0], [0], [1], [0, 0, 1, 1], [], []>, precision = #tpu.contract_precision<fp32>} : vector<16x32xf32>, vector<32x32xf32>, vector<16x32xf32> -> vector<16x32xf32>
    %50 = tpu.concatenate %48, %49 in 0 : vector<16x32xf32>, vector<16x32xf32> -> vector<32x32xf32>
    %cst_35 = arith.constant dense<0.000000e+00> : vector<64x32xf32>
    %51 = tpu.matmul %26, %50, %cst_35 {dimension_numbers = #tpu.dot_dimension_numbers<[0], [0], [1], [1], [0, 1, 1, 1], [], []>, precision = #tpu.contract_precision<fp32>} : vector<32x64xf32>, vector<32x32xf32>, vector<64x32xf32> -> vector<64x32xf32>
    %52 = vector.broadcast %33 : vector<64x1xf32> to vector<64x32xf32>
    %53 = vector.broadcast %45 : vector<1x32xf32> to vector<64x32xf32>
    %54 = arith.mulf %52, %53 : vector<64x32xf32>
    %55 = arith.addf %51, %54 : vector<64x32xf32>
    %56 = vector.broadcast %5 : vector<64x1xf32> to vector<64x32xf32>
    %57 = vector.broadcast %46 : vector<1x32xf32> to vector<64x32xf32>
    %58 = arith.mulf %56, %57 : vector<64x32xf32>
    %59 = arith.addf %55, %58 : vector<64x32xf32>
    %60 = vector.broadcast %47 : vector<1x32xf32> to vector<64x32xf32>
    %61 = arith.addf %59, %60 : vector<64x32xf32>
    %62 = arith.negf %61 : vector<64x32xf32>
    %63 = math.exp %62 : vector<64x32xf32>
    %cst_36 = arith.constant 1.000000e+00 : f32
    %64 = vector.broadcast %cst_36 : f32 to vector<64x32xf32>
    %65 = arith.addf %64, %63 : vector<64x32xf32>
    %66 = arith.divf %64, %65 : vector<64x32xf32>
    %67 = arith.mulf %61, %66 : vector<64x32xf32>
    %c2 = arith.constant 2 : index
    %c0_37 = arith.constant 0 : index
    %c0_38 = arith.constant 0 : index
    %68 = vector.load %arg9[%c2, %c0_37, %c0_38] : memref<15x32x32xf32, #tpu.memory_space<vmem>>, vector<1x32x32xf32>
    %69 = vector.shape_cast %68 : vector<1x32x32xf32> to vector<32x32xf32>
    %cst_39 = arith.constant dense<0.000000e+00> : vector<64x32xf32>
    %70 = tpu.matmul %67, %69, %cst_39 {dimension_numbers = #tpu.dot_dimension_numbers<[1], [0], [0], [1], [0, 0, 1, 1], [], []>, precision = #tpu.contract_precision<fp32>} : vector<64x32xf32>, vector<32x32xf32>, vector<64x32xf32> -> vector<64x32xf32>
    %71 = vector.extract_strided_slice %12 {offsets = [3, 0], sizes = [1, 32], strides = [1, 1]} : vector<24x32xf32> to vector<1x32xf32>
    %72 = vector.broadcast %71 : vector<1x32xf32> to vector<64x32xf32>
    %73 = arith.addf %70, %72 : vector<64x32xf32>
    %74 = arith.negf %73 : vector<64x32xf32>
    %75 = math.exp %74 : vector<64x32xf32>
    %cst_40 = arith.constant 1.000000e+00 : f32
    %76 = vector.broadcast %cst_40 : f32 to vector<64x32xf32>
    %77 = arith.addf %76, %75 : vector<64x32xf32>
    %78 = arith.divf %76, %77 : vector<64x32xf32>
    %79 = arith.mulf %73, %78 : vector<64x32xf32>
    %80 = vector.extract_strided_slice %12 {offsets = [4, 0], sizes = [1, 32], strides = [1, 1]} : vector<24x32xf32> to vector<1x32xf32>
    %81 = vector.broadcast %80 : vector<1x32xf32> to vector<64x32xf32>
    %82 = arith.mulf %79, %81 : vector<64x32xf32>
    %cst_41 = arith.constant dense<0.000000e+00> : vector<64xf32>
    %83 = vector.multi_reduction <add>, %82, %cst_41 [1] : vector<64x32xf32> to vector<64xf32>
    %84 = vector.shape_cast %83 : vector<64xf32> to vector<64x1xf32>
    %85 = vector.extract_strided_slice %12 {offsets = [7, 0], sizes = [1, 1], strides = [1, 1]} : vector<24x32xf32> to vector<1x1xf32>
    %86 = vector.broadcast %85 : vector<1x1xf32> to vector<64x1xf32>
    %87 = arith.addf %84, %86 : vector<64x1xf32>
    %88 = arith.negf %87 : vector<64x1xf32>
    %89 = math.exp %88 : vector<64x1xf32>
    %cst_42 = arith.constant 1.000000e+00 : f32
    %90 = vector.broadcast %cst_42 : f32 to vector<64x1xf32>
    %91 = arith.addf %90, %89 : vector<64x1xf32>
    %92 = arith.divf %90, %91 : vector<64x1xf32>
    %93 = vector.broadcast %92 : vector<64x1xf32> to vector<64x32xf32>
    %94 = arith.mulf %79, %93 : vector<64x32xf32>
    %95 = vector.broadcast %7 : vector<64x1xf32> to vector<64x32xf32>
    %96 = arith.mulf %94, %95 : vector<64x32xf32>
    %cst_43 = arith.constant dense<0.000000e+00> : vector<16x32xf32>
    %97 = tpu.matmul %27, %96, %cst_43 {dimension_numbers = #tpu.dot_dimension_numbers<[1], [0], [0], [1], [0, 0, 1, 1], [], []>, precision = #tpu.contract_precision<fp32>} : vector<16x64xf32>, vector<64x32xf32>, vector<16x32xf32> -> vector<16x32xf32>
    %c3 = arith.constant 3 : index
    %c0_44 = arith.constant 0 : index
    %c0_45 = arith.constant 0 : index
    %98 = vector.load %arg9[%c3, %c0_44, %c0_45] : memref<15x32x32xf32, #tpu.memory_space<vmem>>, vector<1x32x32xf32>
    %99 = vector.shape_cast %98 : vector<1x32x32xf32> to vector<32x32xf32>
    %cst_46 = arith.constant dense<0.000000e+00> : vector<16x32xf32>
    %100 = tpu.matmul %1, %99, %cst_46 {dimension_numbers = #tpu.dot_dimension_numbers<[1], [0], [0], [1], [0, 0, 1, 1], [], []>, precision = #tpu.contract_precision<fp32>} : vector<16x32xf32>, vector<32x32xf32>, vector<16x32xf32> -> vector<16x32xf32>
    %c4 = arith.constant 4 : index
    %c0_47 = arith.constant 0 : index
    %c0_48 = arith.constant 0 : index
    %101 = vector.load %arg9[%c4, %c0_47, %c0_48] : memref<15x32x32xf32, #tpu.memory_space<vmem>>, vector<1x32x32xf32>
    %102 = vector.shape_cast %101 : vector<1x32x32xf32> to vector<32x32xf32>
    %cst_49 = arith.constant dense<0.000000e+00> : vector<16x32xf32>
    %103 = tpu.matmul %97, %102, %cst_49 {dimension_numbers = #tpu.dot_dimension_numbers<[1], [0], [0], [1], [0, 0, 1, 1], [], []>, precision = #tpu.contract_precision<fp32>} : vector<16x32xf32>, vector<32x32xf32>, vector<16x32xf32> -> vector<16x32xf32>
    %104 = arith.addf %100, %103 : vector<16x32xf32>
    %105 = vector.extract_strided_slice %12 {offsets = [5, 0], sizes = [1, 32], strides = [1, 1]} : vector<24x32xf32> to vector<1x32xf32>
    %106 = vector.broadcast %105 : vector<1x32xf32> to vector<16x32xf32>
    %107 = arith.addf %104, %106 : vector<16x32xf32>
    %108 = arith.negf %107 : vector<16x32xf32>
    %109 = math.exp %108 : vector<16x32xf32>
    %cst_50 = arith.constant 1.000000e+00 : f32
    %110 = vector.broadcast %cst_50 : f32 to vector<16x32xf32>
    %111 = arith.addf %110, %109 : vector<16x32xf32>
    %112 = arith.divf %110, %111 : vector<16x32xf32>
    %113 = arith.mulf %107, %112 : vector<16x32xf32>
    %c5 = arith.constant 5 : index
    %c0_51 = arith.constant 0 : index
    %c0_52 = arith.constant 0 : index
    %114 = vector.load %arg9[%c5, %c0_51, %c0_52] : memref<15x32x32xf32, #tpu.memory_space<vmem>>, vector<1x32x32xf32>
    %115 = vector.shape_cast %114 : vector<1x32x32xf32> to vector<32x32xf32>
    %cst_53 = arith.constant dense<0.000000e+00> : vector<16x32xf32>
    %116 = tpu.matmul %113, %115, %cst_53 {dimension_numbers = #tpu.dot_dimension_numbers<[1], [0], [0], [1], [0, 0, 1, 1], [], []>, precision = #tpu.contract_precision<fp32>} : vector<16x32xf32>, vector<32x32xf32>, vector<16x32xf32> -> vector<16x32xf32>
    %117 = arith.addf %1, %116 : vector<16x32xf32>
    %118 = vector.extract_strided_slice %12 {offsets = [6, 0], sizes = [1, 32], strides = [1, 1]} : vector<24x32xf32> to vector<1x32xf32>
    %119 = vector.broadcast %118 : vector<1x32xf32> to vector<16x32xf32>
    %120 = arith.addf %117, %119 : vector<16x32xf32>
    %121 = vector.broadcast %9 : vector<16x1xf32> to vector<16x32xf32>
    %122 = arith.mulf %120, %121 : vector<16x32xf32>
    %c6 = arith.constant 6 : index
    %c0_54 = arith.constant 0 : index
    %c0_55 = arith.constant 0 : index
    %123 = vector.load %arg9[%c6, %c0_54, %c0_55] : memref<15x32x32xf32, #tpu.memory_space<vmem>>, vector<1x32x32xf32>
    %124 = vector.shape_cast %123 : vector<1x32x32xf32> to vector<32x32xf32>
    %c7 = arith.constant 7 : index
    %c0_56 = arith.constant 0 : index
    %c0_57 = arith.constant 0 : index
    %125 = vector.load %arg9[%c7, %c0_56, %c0_57] : memref<15x32x32xf32, #tpu.memory_space<vmem>>, vector<1x32x32xf32>
    %126 = vector.shape_cast %125 : vector<1x32x32xf32> to vector<32x32xf32>
    %127 = vector.extract_strided_slice %12 {offsets = [8, 0], sizes = [1, 32], strides = [1, 1]} : vector<24x32xf32> to vector<1x32xf32>
    %128 = vector.extract_strided_slice %12 {offsets = [9, 0], sizes = [1, 32], strides = [1, 1]} : vector<24x32xf32> to vector<1x32xf32>
    %129 = vector.extract_strided_slice %12 {offsets = [10, 0], sizes = [1, 32], strides = [1, 1]} : vector<24x32xf32> to vector<1x32xf32>
    %cst_58 = arith.constant dense<0.000000e+00> : vector<16x32xf32>
    %130 = tpu.matmul %122, %124, %cst_58 {dimension_numbers = #tpu.dot_dimension_numbers<[1], [0], [0], [1], [0, 0, 1, 1], [], []>, precision = #tpu.contract_precision<fp32>} : vector<16x32xf32>, vector<32x32xf32>, vector<16x32xf32> -> vector<16x32xf32>
    %cst_59 = arith.constant dense<0.000000e+00> : vector<16x32xf32>
    %131 = tpu.matmul %122, %126, %cst_59 {dimension_numbers = #tpu.dot_dimension_numbers<[1], [0], [0], [1], [0, 0, 1, 1], [], []>, precision = #tpu.contract_precision<fp32>} : vector<16x32xf32>, vector<32x32xf32>, vector<16x32xf32> -> vector<16x32xf32>
    %132 = tpu.concatenate %130, %131 in 0 : vector<16x32xf32>, vector<16x32xf32> -> vector<32x32xf32>
    %cst_60 = arith.constant dense<0.000000e+00> : vector<64x32xf32>
    %133 = tpu.matmul %26, %132, %cst_60 {dimension_numbers = #tpu.dot_dimension_numbers<[0], [0], [1], [1], [0, 1, 1, 1], [], []>, precision = #tpu.contract_precision<fp32>} : vector<32x64xf32>, vector<32x32xf32>, vector<64x32xf32> -> vector<64x32xf32>
    %134 = vector.broadcast %33 : vector<64x1xf32> to vector<64x32xf32>
    %135 = vector.broadcast %127 : vector<1x32xf32> to vector<64x32xf32>
    %136 = arith.mulf %134, %135 : vector<64x32xf32>
    %137 = arith.addf %133, %136 : vector<64x32xf32>
    %138 = vector.broadcast %5 : vector<64x1xf32> to vector<64x32xf32>
    %139 = vector.broadcast %128 : vector<1x32xf32> to vector<64x32xf32>
    %140 = arith.mulf %138, %139 : vector<64x32xf32>
    %141 = arith.addf %137, %140 : vector<64x32xf32>
    %142 = vector.broadcast %129 : vector<1x32xf32> to vector<64x32xf32>
    %143 = arith.addf %141, %142 : vector<64x32xf32>
    %144 = arith.negf %143 : vector<64x32xf32>
    %145 = math.exp %144 : vector<64x32xf32>
    %cst_61 = arith.constant 1.000000e+00 : f32
    %146 = vector.broadcast %cst_61 : f32 to vector<64x32xf32>
    %147 = arith.addf %146, %145 : vector<64x32xf32>
    %148 = arith.divf %146, %147 : vector<64x32xf32>
    %149 = arith.mulf %143, %148 : vector<64x32xf32>
    %c8 = arith.constant 8 : index
    %c0_62 = arith.constant 0 : index
    %c0_63 = arith.constant 0 : index
    %150 = vector.load %arg9[%c8, %c0_62, %c0_63] : memref<15x32x32xf32, #tpu.memory_space<vmem>>, vector<1x32x32xf32>
    %151 = vector.shape_cast %150 : vector<1x32x32xf32> to vector<32x32xf32>
    %cst_64 = arith.constant dense<0.000000e+00> : vector<64x32xf32>
    %152 = tpu.matmul %149, %151, %cst_64 {dimension_numbers = #tpu.dot_dimension_numbers<[1], [0], [0], [1], [0, 0, 1, 1], [], []>, precision = #tpu.contract_precision<fp32>} : vector<64x32xf32>, vector<32x32xf32>, vector<64x32xf32> -> vector<64x32xf32>
    %153 = vector.extract_strided_slice %12 {offsets = [11, 0], sizes = [1, 32], strides = [1, 1]} : vector<24x32xf32> to vector<1x32xf32>
    %154 = vector.broadcast %153 : vector<1x32xf32> to vector<64x32xf32>
    %155 = arith.addf %152, %154 : vector<64x32xf32>
    %156 = arith.negf %155 : vector<64x32xf32>
    %157 = math.exp %156 : vector<64x32xf32>
    %cst_65 = arith.constant 1.000000e+00 : f32
    %158 = vector.broadcast %cst_65 : f32 to vector<64x32xf32>
    %159 = arith.addf %158, %157 : vector<64x32xf32>
    %160 = arith.divf %158, %159 : vector<64x32xf32>
    %161 = arith.mulf %155, %160 : vector<64x32xf32>
    %162 = vector.extract_strided_slice %12 {offsets = [12, 0], sizes = [1, 32], strides = [1, 1]} : vector<24x32xf32> to vector<1x32xf32>
    %163 = vector.broadcast %162 : vector<1x32xf32> to vector<64x32xf32>
    %164 = arith.mulf %161, %163 : vector<64x32xf32>
    %cst_66 = arith.constant dense<0.000000e+00> : vector<64xf32>
    %165 = vector.multi_reduction <add>, %164, %cst_66 [1] : vector<64x32xf32> to vector<64xf32>
    %166 = vector.shape_cast %165 : vector<64xf32> to vector<64x1xf32>
    %167 = vector.extract_strided_slice %12 {offsets = [15, 0], sizes = [1, 1], strides = [1, 1]} : vector<24x32xf32> to vector<1x1xf32>
    %168 = vector.broadcast %167 : vector<1x1xf32> to vector<64x1xf32>
    %169 = arith.addf %166, %168 : vector<64x1xf32>
    %170 = arith.negf %169 : vector<64x1xf32>
    %171 = math.exp %170 : vector<64x1xf32>
    %cst_67 = arith.constant 1.000000e+00 : f32
    %172 = vector.broadcast %cst_67 : f32 to vector<64x1xf32>
    %173 = arith.addf %172, %171 : vector<64x1xf32>
    %174 = arith.divf %172, %173 : vector<64x1xf32>
    %175 = vector.broadcast %174 : vector<64x1xf32> to vector<64x32xf32>
    %176 = arith.mulf %161, %175 : vector<64x32xf32>
    %177 = vector.broadcast %7 : vector<64x1xf32> to vector<64x32xf32>
    %178 = arith.mulf %176, %177 : vector<64x32xf32>
    %cst_68 = arith.constant dense<0.000000e+00> : vector<16x32xf32>
    %179 = tpu.matmul %27, %178, %cst_68 {dimension_numbers = #tpu.dot_dimension_numbers<[1], [0], [0], [1], [0, 0, 1, 1], [], []>, precision = #tpu.contract_precision<fp32>} : vector<16x64xf32>, vector<64x32xf32>, vector<16x32xf32> -> vector<16x32xf32>
    %c9 = arith.constant 9 : index
    %c0_69 = arith.constant 0 : index
    %c0_70 = arith.constant 0 : index
    %180 = vector.load %arg9[%c9, %c0_69, %c0_70] : memref<15x32x32xf32, #tpu.memory_space<vmem>>, vector<1x32x32xf32>
    %181 = vector.shape_cast %180 : vector<1x32x32xf32> to vector<32x32xf32>
    %cst_71 = arith.constant dense<0.000000e+00> : vector<16x32xf32>
    %182 = tpu.matmul %122, %181, %cst_71 {dimension_numbers = #tpu.dot_dimension_numbers<[1], [0], [0], [1], [0, 0, 1, 1], [], []>, precision = #tpu.contract_precision<fp32>} : vector<16x32xf32>, vector<32x32xf32>, vector<16x32xf32> -> vector<16x32xf32>
    %c10 = arith.constant 10 : index
    %c0_72 = arith.constant 0 : index
    %c0_73 = arith.constant 0 : index
    %183 = vector.load %arg9[%c10, %c0_72, %c0_73] : memref<15x32x32xf32, #tpu.memory_space<vmem>>, vector<1x32x32xf32>
    %184 = vector.shape_cast %183 : vector<1x32x32xf32> to vector<32x32xf32>
    %cst_74 = arith.constant dense<0.000000e+00> : vector<16x32xf32>
    %185 = tpu.matmul %179, %184, %cst_74 {dimension_numbers = #tpu.dot_dimension_numbers<[1], [0], [0], [1], [0, 0, 1, 1], [], []>, precision = #tpu.contract_precision<fp32>} : vector<16x32xf32>, vector<32x32xf32>, vector<16x32xf32> -> vector<16x32xf32>
    %186 = arith.addf %182, %185 : vector<16x32xf32>
    %187 = vector.extract_strided_slice %12 {offsets = [13, 0], sizes = [1, 32], strides = [1, 1]} : vector<24x32xf32> to vector<1x32xf32>
    %188 = vector.broadcast %187 : vector<1x32xf32> to vector<16x32xf32>
    %189 = arith.addf %186, %188 : vector<16x32xf32>
    %190 = arith.negf %189 : vector<16x32xf32>
    %191 = math.exp %190 : vector<16x32xf32>
    %cst_75 = arith.constant 1.000000e+00 : f32
    %192 = vector.broadcast %cst_75 : f32 to vector<16x32xf32>
    %193 = arith.addf %192, %191 : vector<16x32xf32>
    %194 = arith.divf %192, %193 : vector<16x32xf32>
    %195 = arith.mulf %189, %194 : vector<16x32xf32>
    %c11 = arith.constant 11 : index
    %c0_76 = arith.constant 0 : index
    %c0_77 = arith.constant 0 : index
    %196 = vector.load %arg9[%c11, %c0_76, %c0_77] : memref<15x32x32xf32, #tpu.memory_space<vmem>>, vector<1x32x32xf32>
    %197 = vector.shape_cast %196 : vector<1x32x32xf32> to vector<32x32xf32>
    %cst_78 = arith.constant dense<0.000000e+00> : vector<16x32xf32>
    %198 = tpu.matmul %195, %197, %cst_78 {dimension_numbers = #tpu.dot_dimension_numbers<[1], [0], [0], [1], [0, 0, 1, 1], [], []>, precision = #tpu.contract_precision<fp32>} : vector<16x32xf32>, vector<32x32xf32>, vector<16x32xf32> -> vector<16x32xf32>
    %199 = arith.addf %122, %198 : vector<16x32xf32>
    %200 = vector.extract_strided_slice %12 {offsets = [14, 0], sizes = [1, 32], strides = [1, 1]} : vector<24x32xf32> to vector<1x32xf32>
    %201 = vector.broadcast %200 : vector<1x32xf32> to vector<16x32xf32>
    %202 = arith.addf %199, %201 : vector<16x32xf32>
    %203 = vector.broadcast %9 : vector<16x1xf32> to vector<16x32xf32>
    %204 = arith.mulf %202, %203 : vector<16x32xf32>
    %c12 = arith.constant 12 : index
    %c0_79 = arith.constant 0 : index
    %c0_80 = arith.constant 0 : index
    %205 = vector.load %arg9[%c12, %c0_79, %c0_80] : memref<15x32x32xf32, #tpu.memory_space<vmem>>, vector<1x32x32xf32>
    %206 = vector.shape_cast %205 : vector<1x32x32xf32> to vector<32x32xf32>
    %c13 = arith.constant 13 : index
    %c0_81 = arith.constant 0 : index
    %c0_82 = arith.constant 0 : index
    %207 = vector.load %arg9[%c13, %c0_81, %c0_82] : memref<15x32x32xf32, #tpu.memory_space<vmem>>, vector<1x32x32xf32>
    %208 = vector.shape_cast %207 : vector<1x32x32xf32> to vector<32x32xf32>
    %209 = vector.extract_strided_slice %12 {offsets = [16, 0], sizes = [1, 32], strides = [1, 1]} : vector<24x32xf32> to vector<1x32xf32>
    %210 = vector.extract_strided_slice %12 {offsets = [17, 0], sizes = [1, 32], strides = [1, 1]} : vector<24x32xf32> to vector<1x32xf32>
    %211 = vector.extract_strided_slice %12 {offsets = [18, 0], sizes = [1, 32], strides = [1, 1]} : vector<24x32xf32> to vector<1x32xf32>
    %cst_83 = arith.constant dense<0.000000e+00> : vector<16x32xf32>
    %212 = tpu.matmul %204, %206, %cst_83 {dimension_numbers = #tpu.dot_dimension_numbers<[1], [0], [0], [1], [0, 0, 1, 1], [], []>, precision = #tpu.contract_precision<fp32>} : vector<16x32xf32>, vector<32x32xf32>, vector<16x32xf32> -> vector<16x32xf32>
    %cst_84 = arith.constant dense<0.000000e+00> : vector<16x32xf32>
    %213 = tpu.matmul %204, %208, %cst_84 {dimension_numbers = #tpu.dot_dimension_numbers<[1], [0], [0], [1], [0, 0, 1, 1], [], []>, precision = #tpu.contract_precision<fp32>} : vector<16x32xf32>, vector<32x32xf32>, vector<16x32xf32> -> vector<16x32xf32>
    %214 = tpu.concatenate %212, %213 in 0 : vector<16x32xf32>, vector<16x32xf32> -> vector<32x32xf32>
    %cst_85 = arith.constant dense<0.000000e+00> : vector<64x32xf32>
    %215 = tpu.matmul %26, %214, %cst_85 {dimension_numbers = #tpu.dot_dimension_numbers<[0], [0], [1], [1], [0, 1, 1, 1], [], []>, precision = #tpu.contract_precision<fp32>} : vector<32x64xf32>, vector<32x32xf32>, vector<64x32xf32> -> vector<64x32xf32>
    %216 = vector.broadcast %33 : vector<64x1xf32> to vector<64x32xf32>
    %217 = vector.broadcast %209 : vector<1x32xf32> to vector<64x32xf32>
    %218 = arith.mulf %216, %217 : vector<64x32xf32>
    %219 = arith.addf %215, %218 : vector<64x32xf32>
    %220 = vector.broadcast %5 : vector<64x1xf32> to vector<64x32xf32>
    %221 = vector.broadcast %210 : vector<1x32xf32> to vector<64x32xf32>
    %222 = arith.mulf %220, %221 : vector<64x32xf32>
    %223 = arith.addf %219, %222 : vector<64x32xf32>
    %224 = vector.broadcast %211 : vector<1x32xf32> to vector<64x32xf32>
    %225 = arith.addf %223, %224 : vector<64x32xf32>
    %226 = arith.negf %225 : vector<64x32xf32>
    %227 = math.exp %226 : vector<64x32xf32>
    %cst_86 = arith.constant 1.000000e+00 : f32
    %228 = vector.broadcast %cst_86 : f32 to vector<64x32xf32>
    %229 = arith.addf %228, %227 : vector<64x32xf32>
    %230 = arith.divf %228, %229 : vector<64x32xf32>
    %231 = arith.mulf %225, %230 : vector<64x32xf32>
    %c14 = arith.constant 14 : index
    %c0_87 = arith.constant 0 : index
    %c0_88 = arith.constant 0 : index
    %232 = vector.load %arg9[%c14, %c0_87, %c0_88] : memref<15x32x32xf32, #tpu.memory_space<vmem>>, vector<1x32x32xf32>
    %233 = vector.shape_cast %232 : vector<1x32x32xf32> to vector<32x32xf32>
    %cst_89 = arith.constant dense<0.000000e+00> : vector<64x32xf32>
    %234 = tpu.matmul %231, %233, %cst_89 {dimension_numbers = #tpu.dot_dimension_numbers<[1], [0], [0], [1], [0, 0, 1, 1], [], []>, precision = #tpu.contract_precision<fp32>} : vector<64x32xf32>, vector<32x32xf32>, vector<64x32xf32> -> vector<64x32xf32>
    %235 = vector.extract_strided_slice %12 {offsets = [19, 0], sizes = [1, 32], strides = [1, 1]} : vector<24x32xf32> to vector<1x32xf32>
    %236 = vector.broadcast %235 : vector<1x32xf32> to vector<64x32xf32>
    %237 = arith.addf %234, %236 : vector<64x32xf32>
    %238 = arith.negf %237 : vector<64x32xf32>
    %239 = math.exp %238 : vector<64x32xf32>
    %cst_90 = arith.constant 1.000000e+00 : f32
    %240 = vector.broadcast %cst_90 : f32 to vector<64x32xf32>
    %241 = arith.addf %240, %239 : vector<64x32xf32>
    %242 = arith.divf %240, %241 : vector<64x32xf32>
    %243 = arith.mulf %237, %242 : vector<64x32xf32>
    %244 = vector.extract_strided_slice %12 {offsets = [20, 0], sizes = [1, 32], strides = [1, 1]} : vector<24x32xf32> to vector<1x32xf32>
    %245 = vector.broadcast %244 : vector<1x32xf32> to vector<64x32xf32>
    %246 = arith.mulf %243, %245 : vector<64x32xf32>
    %cst_91 = arith.constant dense<0.000000e+00> : vector<64xf32>
    %247 = vector.multi_reduction <add>, %246, %cst_91 [1] : vector<64x32xf32> to vector<64xf32>
    %248 = vector.shape_cast %247 : vector<64xf32> to vector<64x1xf32>
    %249 = vector.broadcast %248 : vector<64x1xf32> to vector<64x3xf32>
    %250 = arith.mulf %40, %249 : vector<64x3xf32>
    %251 = vector.broadcast %7 : vector<64x1xf32> to vector<64x3xf32>
    %252 = arith.mulf %250, %251 : vector<64x3xf32>
    %cst_92 = arith.constant dense<0.000000e+00> : vector<16x3xf32>
    %253 = tpu.matmul %27, %252, %cst_92 {dimension_numbers = #tpu.dot_dimension_numbers<[1], [0], [0], [1], [0, 0, 1, 1], [], []>, precision = #tpu.contract_precision<fp32>} : vector<16x64xf32>, vector<64x3xf32>, vector<16x3xf32> -> vector<16x3xf32>
    %254 = vector.broadcast %11 : vector<16x1xf32> to vector<16x3xf32>
    %255 = arith.mulf %253, %254 : vector<16x3xf32>
    %256 = arith.addf %3, %255 : vector<16x3xf32>
    %257 = vector.broadcast %9 : vector<16x1xf32> to vector<16x3xf32>
    %258 = arith.mulf %256, %257 : vector<16x3xf32>
    %259 = vector.broadcast %9 : vector<16x1xf32> to vector<16x32xf32>
    %260 = arith.mulf %204, %259 : vector<16x32xf32>
    %cst_93 = arith.constant 0.000000e+00 : f32
    %261 = vector.broadcast %cst_93 : f32 to vector<16x93xf32>
    %262 = tpu.concatenate %260, %258, %261 in 1 : vector<16x32xf32>, vector<16x3xf32>, vector<16x93xf32> -> vector<16x128xf32>
    %c0_94 = arith.constant 0 : index
    %c0_95 = arith.constant 0 : index
    %c0_96 = arith.constant 0 : index
    %263 = vector.load %arg11[%c0_94, %c0_95, %c0_96] : memref<1x16x128xf32, #tpu.memory_space<vmem>>, vector<1x16x128xf32>
    %264 = vector.shape_cast %263 : vector<1x16x128xf32> to vector<16x128xf32>
    %265 = vector.shape_cast %262 : vector<16x128xf32> to vector<1x16x128xf32>
    tpu.vector_store %arg11[%c0_94, %c0_95, %c0_96], %265 {strides = array<i32>} : memref<1x16x128xf32, #tpu.memory_space<vmem>>, vector<1x16x128xf32>,
    return
  }
  func.func @transform_0(%arg0: i32) -> (i32, i32, i32) {
    %c0_i32 = arith.constant 0 : i32
    %c0_i32_0 = arith.constant 0 : i32
    %c0_i32_1 = arith.constant 0 : i32
    return %arg0, %c0_i32, %c0_i32_0 : i32, i32, i32
  }
  func.func @transform_1(%arg0: i32) -> (i32, i32, i32) {
    %c0_i32 = arith.constant 0 : i32
    %c0_i32_0 = arith.constant 0 : i32
    %c0_i32_1 = arith.constant 0 : i32
    return %arg0, %c0_i32, %c0_i32_0 : i32, i32, i32
  }
  func.func @transform_2(%arg0: i32) -> (i32, i32, i32) {
    %c0_i32 = arith.constant 0 : i32
    %c0_i32_0 = arith.constant 0 : i32
    %c0_i32_1 = arith.constant 0 : i32
    return %arg0, %c0_i32, %c0_i32_0 : i32, i32, i32
  }
  func.func @transform_3(%arg0: i32) -> (i32, i32, i32) {
    %c0_i32 = arith.constant 0 : i32
    %c0_i32_0 = arith.constant 0 : i32
    %c0_i32_1 = arith.constant 0 : i32
    return %arg0, %c0_i32, %c0_i32_0 : i32, i32, i32
  }
  func.func @transform_4(%arg0: i32) -> (i32, i32, i32) {
    %c0_i32 = arith.constant 0 : i32
    %c0_i32_0 = arith.constant 0 : i32
    %c0_i32_1 = arith.constant 0 : i32
    return %arg0, %c0_i32, %c0_i32_0 : i32, i32, i32
  }
  func.func @transform_5(%arg0: i32) -> (i32, i32, i32) {
    %c0_i32 = arith.constant 0 : i32
    %c0_i32_0 = arith.constant 0 : i32
    %c0_i32_1 = arith.constant 0 : i32
    return %arg0, %c0_i32, %c0_i32_0 : i32, i32, i32
  }
  func.func @transform_6(%arg0: i32) -> (i32, i32, i32) {
    %c0_i32 = arith.constant 0 : i32
    %c0_i32_0 = arith.constant 0 : i32
    %c0_i32_1 = arith.constant 0 : i32
    return %arg0, %c0_i32, %c0_i32_0 : i32, i32, i32
  }
  func.func @transform_7(%arg0: i32) -> (i32, i32, i32) {
    %c0_i32 = arith.constant 0 : i32
    %c0_i32_0 = arith.constant 0 : i32
    %c0_i32_1 = arith.constant 0 : i32
    return %arg0, %c0_i32, %c0_i32_0 : i32, i32, i32
  }
  func.func @transform_8(%arg0: i32) -> (i32, i32, i32) {
    %c0_i32 = arith.constant 0 : i32
    %c0_i32_0 = arith.constant 0 : i32
    %c0_i32_1 = arith.constant 0 : i32
    %c0_i32_2 = arith.constant 0 : i32
    return %c0_i32, %c0_i32_0, %c0_i32_1 : i32, i32, i32
  }
  func.func @transform_9(%arg0: i32) -> (i32, i32) {
    %c0_i32 = arith.constant 0 : i32
    %c0_i32_0 = arith.constant 0 : i32
    %c0_i32_1 = arith.constant 0 : i32
    return %c0_i32, %c0_i32_0 : i32, i32
  }
  func.func @transform_10(%arg0: i32) -> (i32, i32, i32) {
    %c0_i32 = arith.constant 0 : i32
    %c0_i32_0 = arith.constant 0 : i32
    %c0_i32_1 = arith.constant 0 : i32
    return %arg0, %c0_i32, %c0_i32_0 : i32, i32, i32
  }
}

</mosaic_0001>

<bundles_post_ra>
// kernel: equivariant_block_forward.1
= control target key start
LH: loop header
LB: loop body
LE: loop exit
PB: predicated region body
PF: predicated region fallthrough
CT: control target
= control target key end

     0   :  { %s20965_s13 = smov 0   ;;  %s23393_s0 = inlined_call_operand.vmem [shape: f32[8,16,32], index: 0, kind: input, shape index: {}]   ;;  %s23394_s1 = inlined_call_operand.vmem [shape: f32[8,16,3], index: 1, kind: input, shape index: {}]   ;;  %s23395_s2 = inlined_call_operand.vmem [shape: s32[8,1,64], index: 2, kind: input, shape index: {}]   ;;  %s23396_s3 = inlined_call_operand.vmem [shape: s32[8,1,64], index: 3, kind: input, shape index: {}]   ;;  %s23397_s4 = inlined_call_operand.vmem [shape: f32[8,64,1], index: 4, kind: input, shape index: {}]   ;;  %s23398_s5 = inlined_call_operand.vmem [shape: f32[8,64,1], index: 5, kind: input, shape index: {}]   ;;  %s23399_s6 = inlined_call_operand.vmem [shape: f32[8,16,1], index: 6, kind: input, shape index: {}]   ;;  %s23400_s7 = inlined_call_operand.vmem [shape: f32[8,16,1], index: 7, kind: input, shape index: {}]   ;;  %s23401_s8 = inlined_call_operand.vmem [shape: f32[15,32,32], index: 8, kind: input, shape index: {}]   ;;  %s23402_s9 = inlined_call_operand.vmem [shape: f32[24,32], index: 9, kind: input, shape index: {}]   ;;  %s23403_s10 = inlined_call_operand.vmem [shape: f32[8,16,128], index: 10, kind: output, shape index: {}]  }
   0x1 LB: > { %s15687_s14 = sadd.s32 4294967295, %s20905_s13   ;;  %p15691_p0 = scmp.ge.s32.totalorder %s20905_s13, 1  ;;  %s20905_s13 = sphi %s20965_s13, %s20_s13  }
   0x2   : > { %p378_p1 = scmp.lt.s32.totalorder %s20905_s13, 9 }
   0x4   : > { %p379_p2 = pnand %p15691_p0, %p378_p1 }
   0x6   : > { %382 = sbr.rel (%p379_p2) target bundleno = 6132 (0x17f4), region = 60 }
   0xd   : > { %p447_p3 = scmp.lt.s32.totalorder %s15687_s14, 7  ;;  %v517_v0 = vlaneseq  ;;  %v20907_v10 = vmov 0.0   ;;  %vm585_vm12 = vcmask 130048   ;;  %v21034_v41 = vld [vmem:[%s23401_s8] sm:$0xff]  ;;  %v21039_v42 = vld [vmem:[%s23401_s8 + $0x8] sm:$0xff]  ;;  %vm1500_vm13 = vcmask 261120  }
   0xe   : > { %v1508_v47 = vand.u32 4294901760, %v21034_v41  ;;  %v1511_v51 = vand.u32 4294901760, %v21039_v42  ;;  %vm1378_vm14 = vcmask 23552   ;;  %vm4612_vm15 = vcmask 523264   ;;  %s20909_s30 = smov 32  }
   0xf   : > { %s23749_s14 = smov (!%p447_p3, %s15687_s14), 7  ;;  %v20975_v1 = vshrl.u32 %v517_v0, 7 }
  0x10   : > { %s459_s17 = scalar_lea.vmem %s23395_s2, %s23749_s14  ;;  %s462_s20 = scalar_lea.vmem %s23396_s3, %s23749_s14  ;;  %v21071_v59 = vpack.c.bf16 %v1511_v51, %v1508_v47 }
  0x11   : > { %v20986_v2 = vsub.s32 0, %v20975_v1  ;;  %v15706_v3 = vld [vmem:[%s459_s17] ss:$0 sm:$0xff]  ;;  %v519_v5 = vadd.s32 8, %v20975_v1  ;;  %v520_v6 = vadd.s32 16, %v20975_v1  ;;  %v521_v8 = vadd.s32 24, %v20975_v1 }
  0x12   : > { %v516_v4 = vld [vmem:[%s462_s20] sm:$0x1]  ;;  %vm526_vm0 = vcmp.eq.s32.totalorder %v20975_v1, %v15706_v3  ;;  %s21000_s21 = sshll.u32 %s23749_s14, 4  ;;  %s15857_s29 = sshll.u32 %s23749_s14, 6 }
  0x13   : > { %v530_v7 = vadd.s32 16, %v516_v4  ;;  %vm527_vm1 = vcmp.eq.s32.totalorder %v519_v5, %v15706_v3  ;;  %vm528_vm2 = vcmp.eq.s32.totalorder %v520_v6, %v15706_v3  ;;  %vm529_vm7 = vcmp.eq.s32.totalorder %v521_v8, %v15706_v3  ;;  %s21007_s24 = scalar_lea.vmem %s23394_s1, %s21000_s21  ;;  %s21098_s12 = scalar_lea.vmem %s23397_s4, %s15857_s29 }
  0x14   : > { %v490_v16 = vld [vmem:[%s21007_s24] sm:$0xff]  ;;  %v491_v17 = vld [vmem:[%s21007_s24 + $0x8] sm:$0xff]  ;;  %s21121_s17 = scalar_lea.vmem %s23393_s0, %s21000_s21  ;;  %s21921_s19 = scalar_lea.vmem %s23398_s5, %s15857_s29 }
  0x15   : > { %v534_v9 = vrot.slane %v530_v7, %v20986_v2  ;;  %v611_v19 = vand.u32 4294901760, %v490_v16  ;;  %v614_v20 = vand.u32 4294901760, %v491_v17  ;;  %s477_s20 = scalar_lea.vmem %s23399_s6, %s21000_s21  ;;  %s482_s28 = scalar_lea.vmem %s23400_s7, %s21000_s21 }
  0x17   : > { %vm535_vm3 = vcmp.eq.s32.totalorder %v20975_v1, %v534_v9  ;;  %vm536_vm4 = vcmp.eq.s32.totalorder %v519_v5, %v534_v9  ;;  %vm537_vm5 = vcmp.eq.s32.totalorder %v520_v6, %v534_v9  ;;  %vm538_vm8 = vcmp.eq.s32.totalorder %v521_v8, %v534_v9 }
  0x18   : > { %vm539_vm6 = vmor %vm526_vm0, %vm535_vm3  ;;  %v759_v21 = vsub.f32 %v490_v16, %v611_v19  ;;  %v766_v22 = vsub.f32 %v491_v17, %v614_v20  ;;  %v21013_v24 = vpack.c.bf16 %v614_v20, %v611_v19  ;;  %v20908_v9 = vmov 0   ;;  %v494_v19 = vld [vmem:[%s21098_s12 + $0x10] sm:$0xff] }
  0x19   : > { %vm540_vm9 = vmor %vm527_vm1, %vm536_vm4  ;;  %v20994_v11 = vsel %vm539_vm6, 1.0, %v20907_v10 }
  0x1a   : > { %23527 = vst [vmem:[#allocation2_spill] sm:$0xff] %v20994_v11  ;;  %vm541_vm10 = vmor %vm528_vm2, %vm537_vm5  ;;  %2575 = vxpose.xlu1.b32.start [1/4] (short) (narrow) %v20994_v11, 64  ;;  %v20997_v12 = vsel %vm540_vm9, 1.0, %v20907_v10  ;;  %v18924_v23 = vpack.c.bf16 %v766_v22, %v759_v21  ;;  %18917 = vmatprep.subr.bf16.mxu1 %v21013_v24  ;;  %v760_v25 = vand.u32 4294901760, %v759_v21  ;;  %v767_v26 = vand.u32 4294901760, %v766_v22 }
  0x1b   : > { %23528 = vst [vmem:[#allocation3_spill] sm:$0xff] %v20997_v12  ;;  %v15709_v13 = vsel %vm541_vm10, 1.0, %v20907_v10  ;;  %vm542_vm11 = vmor %vm529_vm7, %vm538_vm8  ;;  %18919 = vmatpush3.bf16.msra.mxu1 %v21013_v24 }
  0x1c   : > { %v551_v14 = vsub.f32 %v20994_v11, %v15709_v13  ;;  %v15710_v15 = vsel %vm542_vm11, 1.0, %v20907_v10  ;;  %18925 = vmatprep.subr.bf16.mxu0 %v18924_v23  ;;  %v761_v27 = vsub.f32 %v759_v21, %v760_v25  ;;  %v768_v28 = vsub.f32 %v766_v22, %v767_v26 }
  0x1d   : > { %v552_v18 = vsub.f32 %v20997_v12, %v15710_v15  ;;  %18927 = vmatpush3.bf16.msra.mxu0 %v18924_v23  ;;  %v21018_v32 = vpack.c.bf16 %v767_v26, %v760_v25 }
  0x1e   : > { %553 = vxpose.xlu0.b32.start [1/2] (short) (narrow) %v551_v14, 64  ;;  %2576 = vxpose.xlu1.b32.cont [2/4] (short) (narrow) %v20997_v12, 64  ;;  %v762_v29 = vand.u32 4294901760, %v761_v27  ;;  %v769_v30 = vand.u32 4294901760, %v768_v28  ;;  %v495_v28 = vld [vmem:[%s21098_s12 + $0x18] sm:$0xff] }
  0x1f   : > { %18929 = vmatprep.subr.bf16.mxu0 %v21013_v24 }
  0x20   : > { %v18920_v31 = vpack.c.bf16 %v769_v30, %v762_v29  ;;  %v21130_v30 = vsub.f32 %v21034_v41, %v1508_v47 }
  0x22   : > { %554 = vxpose.xlu0.b32.end [2/2] (short) (narrow) %v552_v18, 64  ;;  %2577 = vxpose.xlu1.b32.cont [3/4] (short) (narrow) %v15709_v13, 64 }
  0x23   : > { %18921 = vmatprep.subr.bf16.mxu1 %v18920_v31 }
  0x26   : > { %2578 = vxpose.xlu1.b32.end [4/4] (short) (narrow) %v15710_v15, 64  ;;  %v493_v15 = vld [vmem:[%s21098_s12 + $0x8] sm:$0xff] }
  0x44   : > { %20586 = vset.pattern.permute.xlu1 %v20908_v9 }
  0x4b   : > { %20585 = vset.pattern.permute.xlu0 %v20908_v9 }
  0x54   : > { %3424 = vperm.xlu1 %20586, %v493_v15  }
  0x58   : > { %3429 = vperm.xlu1 %20586, %v494_v19  }
  0x5c   : > { %3434 = vperm.xlu1 %20586, %v495_v28  }
  0x9e   : > { %v569_v33 = vpop.trf.xlu0 }
  0x9f   : > { %v587_v34 = vsel %vm585_vm12, %v569_v33, 0 }
  0xa0   : > { %v21021_v35 = vand.u32 4294901760, %v587_v34 }
  0xa2   : > { %v21024_v36 = vsub.f32 %v587_v34, %v21021_v35  ;;  %v570_v37 = vpop.trf.xlu0 }
  0xa3   : > { %v590_v38 = vsel %vm585_vm12, %v570_v37, 0  ;;  %v488_v37 = vld [vmem:[%s21121_s17] sm:$0xff] }
  0xa4   : > { %v21027_v39 = vand.u32 4294901760, %v590_v38  ;;  %17002 = vmatprep.mubr.f32.mxu0 %v21024_v36  ;;  %v679_v40 = vand.u32 4294901760, %v21024_v36  ;;  %v1502_v41 = vsel %vm1500_vm13, %v488_v37, 0 }
  0xa6   : > { %v21042_v43 = vsub.f32 %v590_v38, %v21027_v39  ;;  %v571_v44 = vpop.trf.xlu0  ;;  %v680_v45 = vsub.f32 %v21024_v36, %v679_v40  ;;  %v21138_v38 = vsub.f32 %v21039_v42, %v1511_v51  ;;  %v1494_v42 = vld [vmem:[%s23401_s8 + $0x18] sm:$0xff]  ;;  %v1599_v51 = vand.u32 4294901760, %v21130_v30 }
  0xa7   : > { %v593_v46 = vsel %vm585_vm12, %v571_v44, 0 }
  0xa8   : > { %v689_v48 = vand.u32 4294901760, %v21042_v43  ;;  %v21050_v49 = vand.u32 4294901760, %v593_v46  ;;  %17003 = vmatmul.mubr.f32.vlgmr.msra.gmra.mrb[0].mxu0 %v21042_v43  ;;  %v681_v50 = vand.u32 4294901760, %v680_v45 }
  0xa9   : > { %18931 = vmatpush3.bf16.msra.mxu0 %v21013_v24 }
  0xaa   : > { %v21056_v52 = vsub.f32 %v593_v46, %v21050_v49  ;;  %16970 = vmatprep.mubr.f32.mxu1 %v681_v50  ;;  %v572_v53 = vpop.trf.xlu0  ;;  %v690_v54 = vsub.f32 %v21042_v43, %v689_v48  ;;  %18933 = vmatprep.subr.bf16.mxu0 %v21018_v32  ;;  %v489_v46 = vld [vmem:[%s21121_s17 + $0x8] sm:$0xff] }
  0xab   : > { %v596_v55 = vsel %vm585_vm12, %v572_v53, 0  ;;  %v1493_v53 = vld [vmem:[%s23401_s8 + $0x10] sm:$0xff] }
  0xac   : > { %v699_v56 = vand.u32 4294901760, %v21056_v52  ;;  %v21064_v57 = vand.u32 4294901760, %v596_v55  ;;  %17005 = vmatprep.mubr.f32.mxu0 %v21056_v52  ;;  %v691_v58 = vand.u32 4294901760, %v690_v54  ;;  %v1606_v54 = vand.u32 4294901760, %v21138_v38 }
  0xae   : > { %v21074_v60 = vsub.f32 %v596_v55, %v21064_v57  ;;  %v573_v61 = vpop.trf.xlu0  ;;  %16971 = vmatmul.mubr.f32.vlgmr.msra.gmra.mrb[0].mxu1 %v691_v58  ;;  %v700_v62 = vsub.f32 %v21056_v52, %v699_v56  ;;  %v1514_v58 = vand.u32 4294901760, %v1493_v53  ;;  %v1607_v36 = vsub.f32 %v21138_v38, %v1606_v54 }
  0xaf   : > { %v599_v63 = vsel %vm585_vm12, %v573_v61, 0  ;;  %18923 = vmatpush3.bf16.msra.mxu1 %v18920_v31  ;;  %v1517_v61 = vand.u32 4294901760, %v1494_v42 }
  0xb0   : > { %v709_v0 = vand.u32 4294901760, %v21074_v60  ;;  %v21081_v3 = vand.u32 4294901760, %v599_v63  ;;  %17006 = vmatmul.mubr.f32.gmra.mrb[2].mxu0 %v21074_v60  ;;  %v701_v4 = vand.u32 4294901760, %v700_v62  ;;  %18941 = vmatprep.subr.bf16.mxu1 %v21071_v59  ;;  %v1505_v62 = vsel %vm1500_vm13, %v489_v46, 0 }
  0xb1   : > { %v21171_v43 = vpack.c.bf16 %v1517_v61, %v1514_v58  ;;  %v1608_v52 = vand.u32 4294901760, %v1607_v36 }
  0xb2   : > { %v21086_v5 = vsub.f32 %v599_v63, %v21081_v3  ;;  %v574_v6 = vpop.trf.xlu0  ;;  %16973 = vmatprep.mubr.f32.mxu1 %v701_v4  ;;  %v710_v7 = vsub.f32 %v21074_v60, %v709_v0  ;;  %v21154_v63 = vand.u32 4294901760, %v1502_v41 }
  0xb3   : > { %v602_v8 = vsel %vm585_vm12, %v574_v6, 0  ;;  %v1600_v6 = vsub.f32 %v21130_v30, %v1599_v51 }
  0xb4   : > { %v719_v10 = vand.u32 4294901760, %v21086_v5  ;;  %v21101_v13 = vand.u32 4294901760, %v602_v8  ;;  %17008 = vmatprep.mubr.f32.mxu0 %v21086_v5  ;;  %v711_v14 = vand.u32 4294901760, %v710_v7 }
  0xb5   : > { %v1601_v7 = vand.u32 4294901760, %v1600_v6  ;;  %v492_v6 = vld [vmem:[%s21098_s12] sm:$0xff] }
  0xb6   : > { %v21106_v16 = vsub.f32 %v602_v8, %v21101_v13  ;;  %v575_v17 = vpop.trf.xlu0  ;;  %16974 = vmatmul.mubr.f32.gmra.mrb[2].mxu1 %v711_v14  ;;  %v720_v18 = vsub.f32 %v21086_v5, %v719_v10  ;;  %3419 = vperm.xlu0 %20585, %v492_v6  }
  0xb7   : > { %v605_v20 = vsel %vm585_vm12, %v575_v17, 0 }
  0xb8   : > { %v729_v21 = vand.u32 4294901760, %v21106_v16  ;;  %v21114_v22 = vand.u32 4294901760, %v605_v20  ;;  %17009 = vmatmul.mubr.f32.gmra.mrb[4].mxu0 %v21106_v16  ;;  %v721_v23 = vand.u32 4294901760, %v720_v18 }
  0xba   : > { %v738_v25 = vsub.f32 %v605_v20, %v21114_v22  ;;  %v576_v26 = vpop.trf.xlu0  ;;  %16976 = vmatprep.mubr.f32.mxu1 %v721_v23  ;;  %v730_v27 = vsub.f32 %v21106_v16, %v729_v21 }
  0xbb   : > { %v608_v29 = vsel %vm585_vm12, %v576_v26, 0  ;;  %v15714_v26 = vld [vmem:[%s23401_s8 + $0x38] sm:$0xff] }
  0xbc   : > { %v739_v31 = vand.u32 4294901760, %v738_v25  ;;  %v21132_v33 = vand.u32 4294901760, %v608_v29  ;;  %17011 = vmatprep.mubr.f32.mxu0 %v738_v25  ;;  %v731_v34 = vand.u32 4294901760, %v730_v27  ;;  %v2045_v28 = vand.u32 4294901760, %v15714_v26 }
  0xbe   : > { %v748_v44 = vsub.f32 %v608_v29, %v21132_v33  ;;  %16977 = vmatmul.mubr.f32.gmra.mrb[4].mxu1 %v731_v34  ;;  %v740_v45 = vsub.f32 %v738_v25, %v739_v31  ;;  %v2147_v37 = vsub.f32 %v15714_v26, %v2045_v28 }
  0xc0   : > { %v749_v47 = vand.u32 4294901760, %v748_v44  ;;  %17012 = vmatmul.mubr.f32.gmra.mrb[6].mxu0 %v748_v44  ;;  %v741_v50 = vand.u32 4294901760, %v740_v45 }
  0xc1   : > { %17018 = vmatprep.mubr.f32.mxu0 %v679_v40  ;;  %v21167_v40 = vand.u32 4294901760, %v1505_v62 }
  0xc2   : > { %16979 = vmatprep.mubr.f32.mxu1 %v741_v50  ;;  %v750_v55 = vsub.f32 %v748_v44, %v749_v47 }
  0xc3   : > { %v21186_v8 = vsub.f32 %v1505_v62, %v21167_v40 }
  0xc4   : > { %17019 = vmatmul.mubr.f32.vlgmr.msra.gmra.mrb[0].mxu0 %v689_v48  ;;  %v751_v4 = vand.u32 4294901760, %v750_v55  ;;  %v21174_v48 = vsub.f32 %v1502_v41, %v21154_v63  ;;  %v2148_v41 = vand.u32 4294901760, %v2147_v37 }
  0xc5   : > { %17021 = vmatprep.mubr.f32.mxu0 %v699_v56  ;;  %18935 = vmatpush3.bf16.msra.mxu0 %v21018_v32  ;;  %v21178_v56 = vsub.f32 %v1493_v53, %v1514_v58  ;;  %v21180_v32 = vsub.f32 %v1494_v42, %v1517_v61 }
  0xc6   : > { %16980 = vmatmul.mubr.f32.gmra.mrb[6].mxu1 %v751_v4  ;;  %18937 = vmatprep.subr.bf16.mxu0 %v21013_v24  ;;  %v21191_v60 = vand.u32 4294901760, %v21174_v48 }
  0xc7   : > { %16986 = vmatprep.mubr.f32.mxu1 %v21021_v35  ;;  %v1613_v9 = vand.u32 4294901760, %v21178_v56  ;;  %v1620_v5 = vand.u32 4294901760, %v21180_v32  ;;  %v18960_v25 = vpack.c.bf16 %v21180_v32, %v21178_v56 }
  0xc8   : > { %17022 = vmatmul.mubr.f32.gmra.mrb[2].mxu0 %v709_v0  ;;  %v18948_v0 = vpack.c.bf16 %v1608_v52, %v1601_v7  ;;  %v1579_v14 = vsub.f32 %v21174_v48, %v21191_v60 }
  0xc9   : > { %17024 = vmatprep.mubr.f32.mxu0 %v719_v10  ;;  %v21198_v10 = vand.u32 4294901760, %v21186_v8  ;;  %v1614_v15 = vsub.f32 %v21178_v56, %v1613_v9  ;;  %v1621_v16 = vsub.f32 %v21180_v32, %v1620_v5 }
  0xca   : > { %16987 = vmatmul.mubr.f32.vlgmr.msra.gmra.mrb[0].mxu1 %v21027_v39  ;;  %v21211_v18 = vand.u32 4294901760, %v1579_v14 }
  0xcb   : > { %16989 = vmatprep.mubr.f32.mxu1 %v21050_v49  ;;  %18943 = vmatpush3.bf16.msra.mxu1 %v21071_v59  ;;  %v1589_v17 = vsub.f32 %v21186_v8, %v21198_v10  ;;  %v1615_v19 = vand.u32 4294901760, %v1614_v15  ;;  %v1622_v20 = vand.u32 4294901760, %v1621_v16 }
  0xcc   : > { %17025 = vmatmul.mubr.f32.gmra.mrb[4].mxu0 %v729_v21  ;;  %18945 = vmatprep.subr.bf16.mxu1 %v21171_v43 }
  0xcd   : > { %17027 = vmatprep.mubr.f32.mxu0 %v739_v31  ;;  %v21217_v21 = vand.u32 4294901760, %v1589_v17  ;;  %v18952_v23 = vpack.c.bf16 %v1622_v20, %v1615_v19 }
  0xce   : > { %16990 = vmatmul.mubr.f32.gmra.mrb[2].mxu1 %v21064_v57 }
  0xcf   : > { %16992 = vmatprep.mubr.f32.mxu1 %v21081_v3  ;;  %18947 = vmatpush3.bf16.msra.mxu1 %v21171_v43 }
  0xd0   : > { %17028 = vmatmul.mubr.f32.gmra.mrb[6].mxu0 %v749_v47  ;;  %18949 = vmatprep.subr.bf16.mxu1 %v18948_v0 }
  0xd1   : > { %17034 = vmatprep.mubr.f32.mxu0 %v21021_v35 }
  0xd2   : > { %16993 = vmatmul.mubr.f32.gmra.mrb[4].mxu1 %v21101_v13 }
  0xd3   : > { %16995 = vmatprep.mubr.f32.mxu1 %v21114_v22 }
  0xd4   : > { %17035 = vmatmul.mubr.f32.vlgmr.msra.gmra.mrb[0].mxu0 %v21027_v39 }
  0xd5   : > { %17037 = vmatprep.mubr.f32.mxu0 %v21050_v49  ;;  %18939 = vmatpush3.bf16.msra.mxu0 %v21013_v24  ;;  %v18956_v24 = vpack.c.bf16 %v21138_v38, %v21130_v30 }
  0xd6   : > { %16996 = vmatmul.mubr.f32.gmra.mrb[6].mxu1 %v21132_v33 }
  0xd7   : > { %17070 = vmatprep.mubr.f32.mxu1 %v21211_v18 }
  0xd8   : > { %17038 = vmatmul.mubr.f32.gmra.mrb[2].mxu0 %v21064_v57 }
  0xd9   : > { %17040 = vmatprep.mubr.f32.mxu0 %v21081_v3 }
  0xda   : > { %17071 = vmatmul.mubr.f32.vlgmr.msra.gmra.mrb[8].mxu1 %v21217_v21 }
  0xdb   : > { %18951 = vmatpush3.bf16.msra.mxu1 %v18948_v0  ;;  %17081 = vmatprep.mubr.f32.mxu1 %v21154_v63 }
  0xdc   : > { %17041 = vmatmul.mubr.f32.gmra.mrb[4].mxu0 %v21101_v13  ;;  %18953 = vmatprep.subr.bf16.mxu1 %v18952_v23 }
  0xdd   : > { %17043 = vmatprep.mubr.f32.mxu0 %v21114_v22 }
  0xdf   : > { %18955 = vmatpush3.bf16.msra.mxu1 %v18952_v23 }
  0xe0   : > { %17044 = vmatmul.mubr.f32.gmra.mrb[6].mxu0 %v21132_v33  ;;  %18957 = vmatprep.subr.bf16.mxu1 %v18956_v24 }
  0xe1   : > { %17050 = vmatprep.mubr.f32.mxu0 %v21021_v35  ;;  %v18972_v35 = vpack.c.bf16 %v1606_v54, %v1599_v51  ;;  %v2149_v51 = vsub.f32 %v2147_v37, %v2148_v41 }
  0xe2   : > { %17082 = vmatmul.mubr.f32.vlgmr.msra.gmra.mrb[8].mxu1 %v21167_v40 }
  0xe3   : > { %18959 = vmatpush3.bf16.msra.mxu1 %v18956_v24  ;;  %17092 = vmatprep.mubr.f32.mxu1 %v21174_v48  ;;  %v2150_v55 = vand.u32 4294901760, %v2149_v51 }
  0xe4   : > { %17051 = vmatmul.mubr.f32.vlgmr.msra.gmra.mrb[0].mxu0 %v21027_v39  ;;  %18961 = vmatprep.subr.bf16.mxu1 %v18960_v25  ;;  %v15711_v39 = vld [vmem:[%s23401_s8 + $0x20] sm:$0xff] }
  0xe5   : > { %17053 = vmatprep.mubr.f32.mxu0 %v21050_v49  ;;  %v15712_v49 = vld [vmem:[%s23401_s8 + $0x28] sm:$0xff] }
  0xe7   : > { %18963 = vmatpush3.bf16.msra.mxu1 %v18960_v25 }
  0xe8   : > { %17054 = vmatmul.mubr.f32.gmra.mrb[2].mxu0 %v21064_v57  ;;  %18965 = vmatprep.subr.bf16.mxu1 %v21071_v59  ;;  %v18976_v57 = vpack.c.bf16 %v1620_v5, %v1613_v9 }
  0xe9   : > { %17056 = vmatprep.mubr.f32.mxu0 %v21081_v3  ;;  %v2036_v3 = vand.u32 4294901760, %v15711_v39 }
  0xea   : > { %17093 = vmatmul.mubr.f32.vlgmr.msra.gmra.mrb[8].mxu1 %v21186_v8 }
  0xeb   : > { %18967 = vmatpush3.bf16.msra.mxu1 %v21071_v59  ;;  %17103 = vmatprep.mubr.f32.mxu1 %v21191_v60  ;;  %v2126_v29 = vsub.f32 %v15711_v39, %v2036_v3 }
  0xec   : > { %17057 = vmatmul.mubr.f32.gmra.mrb[4].mxu0 %v21101_v13  ;;  %18969 = vmatprep.subr.bf16.mxu1 %v21171_v43  ;;  %v2039_v13 = vand.u32 4294901760, %v15712_v49 }
  0xed   : > { %17059 = vmatprep.mubr.f32.mxu0 %v21114_v22  ;;  %v15713_v22 = vld [vmem:[%s23401_s8 + $0x30] sm:$0xff]  ;;  %v2127_v31 = vand.u32 4294901760, %v2126_v29 }
  0xee   : > { %v2042_v27 = vand.u32 4294901760, %v15713_v22  ;;  %v2133_v30 = vsub.f32 %v15712_v49, %v2039_v13  ;;  %v18988_v38 = vpack.c.bf16 %v2039_v13, %v2036_v3 }
  0xef   : > { %18971 = vmatpush3.bf16.msra.mxu1 %v21171_v43  ;;  %v2128_v44 = vsub.f32 %v2126_v29, %v2127_v31 }
  0xf0   : > { %17060 = vmatmul.mubr.f32.gmra.mrb[6].mxu0 %v21132_v33  ;;  %18973 = vmatprep.subr.bf16.mxu1 %v18972_v35  ;;  %v2134_v33 = vand.u32 4294901760, %v2133_v30  ;;  %v2140_v34 = vsub.f32 %v15713_v22, %v2042_v27  ;;  %v18992_v47 = vpack.c.bf16 %v2045_v28, %v2042_v27  ;;  %v19004_v61 = vpack.c.bf16 %v2133_v30, %v2126_v29 }
  0xf1   : > { %v2129_v50 = vand.u32 4294901760, %v2128_v44  ;;  %v21332_v44 = vld [vmem:[%s23402_s9 + $0x8] sm:$0xff] }
  0xf2   : > { %17104 = vmatmul.mubr.f32.vlgmr.msra.gmra.mrb[8].mxu1 %v21198_v10  ;;  %v2135_v45 = vsub.f32 %v2133_v30, %v2134_v33  ;;  %v2141_v46 = vand.u32 4294901760, %v2140_v34  ;;  %v19008_v62 = vpack.c.bf16 %v2147_v37, %v2140_v34  ;;  %v19020_v4 = vpack.c.bf16 %v2134_v33, %v2127_v31 }
  0xf3   : > { %18975 = vmatpush3.bf16.msra.mxu1 %v18972_v35  ;;  %17114 = vmatprep.mubr.f32.mxu1 %v21154_v63  ;;  %v21325_v37 = vsub.s32 1, %v20975_v1 }
  0xf4   : > { %18977 = vmatprep.subr.bf16.mxu1 %v18976_v57  ;;  %v2136_v53 = vand.u32 4294901760, %v2135_v45  ;;  %v2142_v42 = vsub.f32 %v2140_v34, %v2141_v46  ;;  %v19024_v36 = vpack.c.bf16 %v2148_v41, %v2141_v46  ;;  %v21337_v45 = vld [vmem:[%s23402_s9 + $0x10] sm:$0xff] }
  0xf6   : > { %v2143_v54 = vand.u32 4294901760, %v2142_v42 }
  0xf7   : > { %18979 = vmatpush3.bf16.msra.mxu1 %v18976_v57 }
  0xf8   : > { %18981 = vmatprep.subr.bf16.mxu1 %v21071_v59  ;;  %v19000_v58 = vpack.c.bf16 %v2150_v55, %v2143_v54 }
  0xfa   : > { %17115 = vmatmul.mubr.f32.vlgmr.msra.gmra.mrb[8].mxu1 %v21167_v40 }
  0xfb   : > { %18983 = vmatpush3.bf16.msra.mxu1 %v21071_v59  ;;  %17125 = vmatprep.mubr.f32.mxu1 %v21154_v63  ;;  %v18996_v59 = vpack.c.bf16 %v2136_v53, %v2129_v50  ;;  %v21346_v50 = vrot.slane %v21332_v44, %v21325_v37  ;;  %v21350_v53 = vrot.slane %v21337_v45, %v21325_v37 }
  0xfc   : > { %18985 = vmatprep.subr.bf16.mxu1 %v21171_v43 }
  0xfd   : > { %23536 = vst [vmem:[#allocation11_spill] sm:$0xff] %v21346_v50  ;;  %23537 = vst [vmem:[#allocation12_spill] sm:$0xff] %v21350_v53 }
  0xff   : > { %18987 = vmatpush3.bf16.msra.mxu1 %v21171_v43  ;;  %v2591_v43 = vpop.trf.xlu1 }
 0x100   : > { %18989 = vmatprep.subr.bf16.mxu1 %v18988_v38  ;;  %v2608_v7 = vsel %vm1500_vm13, %v2591_v43, 0 }
 0x101   : > { %v21286_v52 = vand.u32 4294901760, %v2608_v7 }
 0x102   : > { %17126 = vmatmul.mubr.f32.vlgmr.msra.gmra.mrb[8].mxu1 %v21167_v40 }
 0x103   : > { %18991 = vmatpush3.bf16.msra.mxu1 %v18988_v38  ;;  %17136 = vmatprep.mubr.f32.mxu1 %v21211_v18  ;;  %23529 = vst [vmem:[#allocation4_spill] sm:$0xff] %v21286_v52  ;;  %v21289_v56 = vsub.f32 %v2608_v7, %v21286_v52  ;;  %v21299_v5 = vpop.trf.xlu1 }
 0x104   : > { %18993 = vmatprep.subr.bf16.mxu1 %v18992_v47 }
 0x105   : > { %23530 = vst [vmem:[#allocation5_spill] sm:$0xff] %v21289_v56  ;;  %v21292_v32 = vand.u32 4294901760, %v21289_v56 }
 0x107   : > { %18995 = vmatpush3.bf16.msra.mxu1 %v18992_v47  ;;  %23531 = vst [vmem:[#allocation6_spill] sm:$0xff] %v21292_v32  ;;  %v2703_v0 = vsub.f32 %v21289_v56, %v21292_v32  ;;  %v21301_v14 = vpop.trf.xlu1 }
 0x108   : > { %18997 = vmatprep.subr.bf16.mxu1 %v18996_v59 }
 0x109   : > { %v21296_v9 = vand.u32 4294901760, %v2703_v0 }
 0x10a   : > { %17137 = vmatmul.mubr.f32.vlgmr.msra.gmra.mrb[10].mxu1 %v21217_v21 }
 0x10b   : > { %18999 = vmatpush3.bf16.msra.mxu1 %v18996_v59  ;;  %17147 = vmatprep.mubr.f32.mxu1 %v21154_v63  ;;  %v21303_v17 = vpop.trf.xlu1 }
 0x10c   : > { %19001 = vmatprep.subr.bf16.mxu1 %v19000_v58  ;;  %17202 = vmatprep.mubr.f32.mxu0 %v21296_v9 }
 0x10f   : > { %19003 = vmatpush3.bf16.msra.mxu1 %v19000_v58  ;;  %v21305_v25 = vpop.trf.xlu1 }
 0x110   : > { %19005 = vmatprep.subr.bf16.mxu1 %v19004_v61 }
 0x112   : > { %17148 = vmatmul.mubr.f32.vlgmr.msra.gmra.mrb[10].mxu1 %v21167_v40 }
 0x113   : > { %19007 = vmatpush3.bf16.msra.mxu1 %v19004_v61  ;;  %17158 = vmatprep.mubr.f32.mxu1 %v21174_v48  ;;  %v21307_v49 = vpop.trf.xlu1 }
 0x114   : > { %19009 = vmatprep.subr.bf16.mxu1 %v19008_v62 }
 0x117   : > { %19011 = vmatpush3.bf16.msra.mxu1 %v19008_v62  ;;  %v21309_v57 = vpop.trf.xlu1 }
 0x118   : > { %19013 = vmatprep.subr.bf16.mxu1 %v18988_v38 }
 0x11a   : > { %17159 = vmatmul.mubr.f32.vlgmr.msra.gmra.mrb[10].mxu1 %v21186_v8 }
 0x11b   : > { %19015 = vmatpush3.bf16.msra.mxu1 %v18988_v38  ;;  %17169 = vmatprep.mubr.f32.mxu1 %v21191_v60  ;;  %v21313_v26 = vpop.trf.xlu1 }
 0x11c   : > { %19017 = vmatprep.subr.bf16.mxu1 %v18992_v47 }
 0x11f   : > { %19019 = vmatpush3.bf16.msra.mxu1 %v18992_v47 }
 0x120   : > { %19021 = vmatprep.subr.bf16.mxu1 %v19020_v4 }
 0x122   : > { %17170 = vmatmul.mubr.f32.vlgmr.msra.gmra.mrb[10].mxu1 %v21198_v10 }
 0x123   : > { %19023 = vmatpush3.bf16.msra.mxu1 %v19020_v4  ;;  %17180 = vmatprep.mubr.f32.mxu1 %v21154_v63 }
 0x124   : > { %19025 = vmatprep.subr.bf16.mxu1 %v19024_v36 }
 0x127   : > { %19027 = vmatpush3.bf16.msra.mxu1 %v19024_v36 }
 0x128   : > { %19029 = vmatprep.subr.bf16.mxu1 %v18988_v38 }
 0x12a   : > { %17181 = vmatmul.mubr.f32.vlgmr.msra.gmra.mrb[10].mxu1 %v21167_v40 }
 0x12b   : > { %19031 = vmatpush3.bf16.msra.mxu1 %v18988_v38  ;;  %17191 = vmatprep.mubr.f32.mxu1 %v21154_v63  ;;  %v21327_v38 = vpop.permute.xlu1 %3424 }
 0x12c   : > { %19033 = vmatprep.subr.bf16.mxu1 %v18992_v47  ;;  %v21359_v58 = vmul.f32 %v21346_v50, %v21327_v38  ;;  %v21365_v62 = vmul.f32 %v21350_v53, %v21327_v38 }
 0x12e   : > { %23539 = vst [vmem:[#allocation14_spill] sm:$0xff] %v21359_v58  ;;  %23541 = vst [vmem:[#allocation16_spill] sm:$0xff] %v21365_v62  ;;  %v499_v58 = vld [vmem:[%s21098_s12 + $0x38] sm:$0xff] }
 0x12f   : > { %19035 = vmatpush3.bf16.msra.mxu1 %v18992_v47  ;;  %v21367_v4 = vpop.permute.xlu1 %3429 }
 0x130   : > { %v21371_v6 = vmul.f32 %v21346_v50, %v21367_v4  ;;  %v21375_v36 = vmul.f32 %v21350_v53, %v21367_v4 }
 0x132   : > { %17192 = vmatmul.mubr.f32.vlgmr.msra.gmra.mrb[10].mxu1 %v21167_v40  ;;  %23542 = vst [vmem:[#allocation17_spill] sm:$0xff] %v21371_v6  ;;  %23543 = vst [vmem:[#allocation18_spill] sm:$0xff] %v21375_v36 }
 0x19d   : > { %v16988_v15 = vpop.f32.mrb[0].mxu1 }
 0x19e   : > { %v834_v16 = vpop.f32.mrb[1].mxu1 }
 0x1a1   : > { %v16991_v19 = vpop.f32.mrb[2].mxu1 }
 0x1a2   : > { %v846_v20 = vpop.f32.mrb[3].mxu1 }
 0x1a5   : > { %v16994_v23 = vpop.f32.mrb[4].mxu1 }
 0x1a6   : > { %v858_v24 = vpop.f32.mrb[5].mxu1 }
 0x1a9   : > { %v16997_v35 = vpop.f32.mrb[6].mxu1 }
 0x1aa   : > { %v870_v39 = vpop.f32.mrb[7].mxu1 }
 0x1b7   : > { %v17052_v3 = vpop.f32.mrb[0].mxu0 }
 0x1b8   : > { %v21311_v13 = vadd.f32 %v17052_v3, %v16988_v15  ;;  %v1324_v22 = vpop.f32.mrb[1].mxu0 }
 0x1b9   : > { %v21315_v27 = vadd.f32 %v1324_v22, %v834_v16 }
 0x1ba   : > { %23532 = vst [vmem:[#allocation7_spill] sm:$0xff] %v21311_v13  ;;  %v1371_v28 = vmul.f32 %v21311_v13, %v21311_v13 }
 0x1bb   : > { %23533 = vst [vmem:[#allocation8_spill] sm:$0xff] %v21315_v27  ;;  %v17055_v29 = vpop.f32.mrb[2].mxu0  ;;  %v1370_v30 = vmul.f32 %v21315_v27, %v21315_v27 }
 0x1bc   : > { %v21321_v31 = vadd.f32 %v17055_v29, %v16991_v19  ;;  %v1336_v33 = vpop.f32.mrb[3].mxu0  ;;  %v1382_v34 = vsel %vm1378_vm14, %v1371_v28, 0.0 }
 0x1bd   : > { %v21339_v46 = vadd.f32 %v1336_v33, %v846_v20  ;;  %1383 = vadd.xlane.f32.xlu1 %v1382_v34  ;;  %v1379_v41 = vsel %vm1378_vm14, %v1370_v30, 0.0 }
 0x1be   : > { %23534 = vst [vmem:[#allocation9_spill] sm:$0xff] %v21321_v31  ;;  %1380 = vadd.xlane.f32.xlu0 %v1379_v41  ;;  %v1373_v47 = vmul.f32 %v21321_v31, %v21321_v31 }
 0x1bf   : > { %23535 = vst [vmem:[#allocation10_spill] sm:$0xff] %v21339_v46  ;;  %v17058_v42 = vpop.f32.mrb[4].mxu0  ;;  %v1372_v55 = vmul.f32 %v21339_v46, %v21339_v46 }
 0x1c0   : > { %v21352_v51 = vadd.f32 %v17058_v42, %v16994_v23  ;;  %v1348_v59 = vpop.f32.mrb[5].mxu0  ;;  %v1388_v54 = vsel %vm1378_vm14, %v1373_v47, 0.0 }
 0x1c1   : > { %v21361_v61 = vadd.f32 %v1348_v59, %v858_v24  ;;  %1389 = vadd.xlane.f32.xlu1 %v1388_v54  ;;  %v1385_v16 = vsel %vm1378_vm14, %v1372_v55, 0.0  ;;  %v498_v59 = vld [vmem:[%s21098_s12 + $0x30] sm:$0xff] }
 0x1c2   : > { %23538 = vst [vmem:[#allocation13_spill] sm:$0xff] %v21352_v51  ;;  %v1375_v19 = vmul.f32 %v21352_v51, %v21352_v51 }
 0x1c3   : > { %23540 = vst [vmem:[#allocation15_spill] sm:$0xff] %v21361_v61  ;;  %v17061_v43 = vpop.f32.mrb[6].mxu0  ;;  %v1374_v7 = vmul.f32 %v21361_v61, %v21361_v61 }
 0x1c4   : > { %v21379_v0 = vadd.f32 %v17061_v43, %v16997_v35  ;;  %v1360_v15 = vpop.f32.mrb[7].mxu0  ;;  %v1394_v3 = vsel %vm1378_vm14, %v1375_v19, 0.0 }
 0x1c5   : > { %v21384_v20 = vadd.f32 %v1360_v15, %v870_v39  ;;  %1386 = vadd.xlane.f32.xlu1 %v1385_v16  ;;  %v1391_v23 = vsel %vm1378_vm14, %v1374_v7, 0.0  ;;  %v497_v39 = vld [vmem:[%s21098_s12 + $0x28] sm:$0xff] }
 0x1c6   : > { %23544 = vst [vmem:[#allocation19_spill] sm:$0xff] %v21379_v0  ;;  %1392 = vadd.xlane.f32.xlu0 %v1391_v23  ;;  %v1377_v24 = vmul.f32 %v21379_v0, %v21379_v0  ;;  %v496_v23 = vld [vmem:[%s21098_s12 + $0x20] sm:$0xff] }
 0x1c7   : > { %23545 = vst [vmem:[#allocation20_spill] sm:$0xff] %v21384_v20 }
 0x1c8   : > { %v1400_v35 = vsel %vm1378_vm14, %v1377_v24, 0.0  ;;  %v2611_v24 = vsel %vm1500_vm13, %v21299_v5, 0 }
 0x1c9   : > { %1395 = vadd.xlane.f32.xlu1 %v1394_v3  ;;  %v2614_v3 = vsel %vm1500_vm13, %v21301_v14, 0 }
 0x1ca   : > { %1401 = vadd.xlane.f32.xlu0 %v1400_v35  ;;  %v21406_v35 = vand.u32 4294901760, %v2611_v24 }
 0x1cc   : > { %23546 = vst [vmem:[#allocation21_spill] sm:$0xff] %v21406_v35 }
 0x1d5   : > { %v17127_v22 = vpop.f32.mrb[8].mxu1 }
 0x1d6   : > { %v2635_v28 = vand.u32 4294901760, %v17127_v22  ;;  %v2025_v29 = vpop.f32.mrb[9].mxu1 }
 0x1d7   : > { %v2632_v30 = vand.u32 4294901760, %v2025_v29 }
 0x1d8   : > { %v2789_v33 = vsub.f32 %v17127_v22, %v2635_v28  ;;  %v2617_v22 = vsel %vm1500_vm13, %v21303_v17, 0  ;;  %v2623_v17 = vsel %vm1500_vm13, %v21307_v49, 0  ;;  %v2629_v49 = vsel %vm1500_vm13, %v21313_v26, 0 }
 0x1d9   : > { %v21392_v34 = vpack.c.bf16 %v2635_v28, %v2632_v30  ;;  %v2782_v41 = vsub.f32 %v2025_v29, %v2632_v30  ;;  %v1376_v28 = vmul.f32 %v21384_v20, %v21384_v20  ;;  %v21412_v29 = vand.u32 4294901760, %v2614_v3 }
 0x1da   : > { %v2790_v47 = vand.u32 4294901760, %v2789_v33  ;;  %3444 = vperm.xlu1 %20586, %v497_v39   ;;  %v2620_v30 = vsel %vm1500_vm13, %v21305_v25, 0  ;;  %v21417_v39 = vsub.f32 %v2611_v24, %v21406_v35  ;;  %v21419_v5 = vand.u32 4294901760, %v2617_v22 }
 0x1db   : > { %v2783_v42 = vand.u32 4294901760, %v2782_v41  ;;  %19037 = vmatprep.subr.bf16.mxu0 %v21392_v34  ;;  %v21396_v54 = vpack.c.bf16 %v2789_v33, %v2782_v41  ;;  %23547 = vst [vmem:[#allocation22_spill] sm:$0xff] %v21412_v29  ;;  %v1397_v14 = vsel %vm1378_vm14, %v1376_v28, 0.0  ;;  %v21459_v20 = vand.u32 4294901760, %v2629_v49 }
 0x1dc   : > { %v2791_v55 = vsub.f32 %v2789_v33, %v2790_v47  ;;  %19039 = vmatpush3.bf16.msra.mxu0 %v21392_v34  ;;  %23548 = vst [vmem:[#allocation23_spill] sm:$0xff] %v21417_v39  ;;  %23549 = vst [vmem:[#allocation24_spill] sm:$0xff] %v21419_v5  ;;  %v21421_v33 = vand.u32 4294901760, %v2620_v30  ;;  %v21432_v25 = vand.u32 4294901760, %v21417_v39 }
 0x1dd   : > { %v2784_v43 = vsub.f32 %v2782_v41, %v2783_v42  ;;  %v21399_v7 = vpack.c.bf16 %v2790_v47, %v2783_v42  ;;  %v21425_v41 = vsub.f32 %v2614_v3, %v21412_v29  ;;  %v2626_v47 = vsel %vm1500_vm13, %v21309_v57, 0  ;;  %23560 = vst [vmem:[#allocation35_spill] sm:$0xff] %v21459_v20 }
 0x1de   : > { %3449 = vperm.xlu1 %20586, %v498_v59   ;;  %v2792_v15 = vand.u32 4294901760, %v2791_v55  ;;  %23550 = vst [vmem:[#allocation25_spill] sm:$0xff] %v21421_v33  ;;  %23552 = vst [vmem:[#allocation27_spill] sm:$0xff] %v21432_v25  ;;  %v21435_v42 = vsub.f32 %v2617_v22, %v21419_v5  ;;  %v21438_v59 = vsub.f32 %v2620_v30, %v21421_v33 }
 0x1df   : > { %v2785_v16 = vand.u32 4294901760, %v2784_v43  ;;  %23551 = vst [vmem:[#allocation26_spill] sm:$0xff] %v21425_v41  ;;  %v21440_v43 = vand.u32 4294901760, %v2623_v17  ;;  %v21447_v57 = vand.u32 4294901760, %v21425_v41  ;;  %v2713_v22 = vsub.f32 %v21417_v39, %v21432_v25 }
 0x1e0   : > { %3439 = vperm.xlu0 %20585, %v496_v23   ;;  %23553 = vst [vmem:[#allocation28_spill] sm:$0xff] %v21435_v42  ;;  %23554 = vst [vmem:[#allocation29_spill] sm:$0xff] %v21438_v59  ;;  %v21442_v23 = vand.u32 4294901760, %v2626_v47  ;;  %v21452_v28 = vand.u32 4294901760, %v21435_v42  ;;  %v21467_v61 = vand.u32 4294901760, %v21438_v59  ;;  %v21476_v31 = vsub.f32 %v2629_v49, %v21459_v20 }
 0x1e1   : > { %v19044_v19 = vpack.c.bf16 %v2792_v15, %v2785_v16  ;;  %23555 = vst [vmem:[#allocation30_spill] sm:$0xff] %v21440_v43  ;;  %23557 = vst [vmem:[#allocation32_spill] sm:$0xff] %v21447_v57  ;;  %v21457_v0 = vsub.f32 %v2623_v17, %v21440_v43  ;;  %v21471_v17 = vand.u32 4294901760, %v2713_v22 }
 0x1e2   : > { %23556 = vst [vmem:[#allocation31_spill] sm:$0xff] %v21442_v23  ;;  %23558 = vst [vmem:[#allocation33_spill] sm:$0xff] %v21452_v28  ;;  %v21462_v51 = vsub.f32 %v2626_v47, %v21442_v23  ;;  %v2743_v22 = vsub.f32 %v21438_v59, %v21467_v61 }
 0x1e3   : > { %23559 = vst [vmem:[#allocation34_spill] sm:$0xff] %v21457_v0  ;;  %23562 = vst [vmem:[#allocation37_spill] sm:$0xff] %v21467_v61  ;;  %v21479_v27 = vand.u32 4294901760, %v21457_v0 }
 0x1e4   : > { %23561 = vst [vmem:[#allocation36_spill] sm:$0xff] %v21462_v51  ;;  %23563 = vst [vmem:[#allocation38_spill] sm:$0xff] %v21476_v31  ;;  %v21486_v62 = vand.u32 4294901760, %v21462_v51 }
 0x1e5   : > { %23564 = vst [vmem:[#allocation39_spill] sm:$0xff] %v21479_v27 }
 0x1e6   : > { %23565 = vst [vmem:[#allocation40_spill] sm:$0xff] %v21486_v62 }
 0x202   : > { %1398 = vadd.xlane.f32.xlu1 %v1397_v14 }
 0x205   : > { %v17193_v55 = vpop.f32.mrb[10].mxu1 }
 0x206   : > { %v2641_v15 = vand.u32 4294901760, %v17193_v55  ;;  %v2553_v16 = vpop.f32.mrb[11].mxu1 }
 0x207   : > { %v2638_v24 = vand.u32 4294901760, %v2553_v16 }
 0x208   : > { %v2803_v3 = vsub.f32 %v17193_v55, %v2641_v15  ;;  %v2723_v55 = vsub.f32 %v21425_v41, %v21447_v57 }
 0x209   : > { %v21454_v30 = vpack.c.bf16 %v2641_v15, %v2638_v24  ;;  %v2796_v14 = vsub.f32 %v2553_v16, %v2638_v24  ;;  %v2733_v24 = vsub.f32 %v21435_v42, %v21452_v28 }
 0x20a   : > { %v2804_v26 = vand.u32 4294901760, %v2803_v3  ;;  %v21481_v36 = vand.u32 4294901760, %v2723_v55  ;;  %v21497_v55 = vand.u32 4294901760, %v2743_v22 }
 0x20b   : > { %v2797_v46 = vand.u32 4294901760, %v2796_v14  ;;  %19041 = vmatprep.subr.bf16.mxu0 %v21454_v30  ;;  %v19056_v15 = vpack.c.bf16 %v2803_v3, %v2796_v14  ;;  %v21490_v49 = vand.u32 4294901760, %v2733_v24 }
 0x20c   : > { %v2805_v16 = vsub.f32 %v2803_v3, %v2804_v26  ;;  %19043 = vmatpush3.bf16.msra.mxu0 %v21454_v30 }
 0x20d   : > { %v2798_v47 = vsub.f32 %v2796_v14, %v2797_v46  ;;  %19045 = vmatprep.subr.bf16.mxu0 %v19044_v19  ;;  %v19072_v13 = vpack.c.bf16 %v2804_v26, %v2797_v46  ;;  %v2753_v46 = vsub.f32 %v21457_v0, %v21479_v27  ;;  %v21495_v26 = vand.u32 4294901760, %v21476_v31 }
 0x20e   : > { %v2806_v3 = vand.u32 4294901760, %v2805_v16  ;;  %v2763_v16 = vsub.f32 %v21462_v51, %v21486_v62 }
 0x20f   : > { %17203 = vmatmul.mubr.f32.vlgmr.msra.gmra.mrb[8].mxu0 %v21471_v17  ;;  %v2799_v14 = vand.u32 4294901760, %v2798_v47  ;;  %23566 = vst [vmem:[#allocation41_spill] sm:$0xff] %v21495_v26  ;;  %v2773_v24 = vsub.f32 %v21476_v31, %v21495_v26 }
 0x210   : > { %17205 = vmatprep.mubr.f32.mxu0 %v21481_v36  ;;  %19047 = vmatpush3.bf16.msra.mxu0 %v19044_v19  ;;  %v21505_v19 = vand.u32 4294901760, %v2753_v46  ;;  %v21509_v47 = vand.u32 4294901760, %v2763_v16 }
 0x211   : > { %v19048_v6 = vpack.c.bf16 %v2806_v3, %v2799_v14  ;;  %v21513_v3 = vand.u32 4294901760, %v2773_v24 }
 0x212   : > { %23567 = vst [vmem:[#allocation42_spill] sm:$0xff] %v21509_v47 }
 0x213   : > { %17206 = vmatmul.mubr.f32.gmra.mrb[10].mxu0 %v21490_v49  ;;  %19049 = vmatprep.subr.bf16.mxu0 %v19048_v6  ;;  %23568 = vst [vmem:[#allocation43_spill] sm:$0xff] %v21513_v3 }
 0x214   : > { %17208 = vmatprep.mubr.f32.mxu0 %v21497_v55  ;;  %19051 = vmatpush3.bf16.msra.mxu0 %v19048_v6  ;;  %v21547_v6 = vpop.permute.xlu0 %3419 }
 0x215   : > { %19053 = vmatprep.subr.bf16.mxu0 %v21396_v54  ;;  %3454 = vperm.xlu1 %20586, %v499_v58   ;;  %v21544_v58 = vpop.permute.xlu1 %3434  ;;  %23570 = vst [vmem:[#allocation45_spill] sm:$0xff] %v21547_v6 }
 0x216   : > { %23569 = vst [vmem:[#allocation44_spill] sm:$0xff] %v21544_v58 }
 0x217   : > { %17209 = vmatmul.mubr.f32.gmra.mrb[12].mxu0 %v21505_v19 }
 0x218   : > { %17211 = vmatprep.mubr.f32.mxu0 %v21509_v47 }
 0x21b   : > { %17212 = vmatmul.mubr.f32.gmra.mrb[14].mxu0 %v21513_v3 }
 0x21c   : > { %17222 = vmatprep.mubr.f32.mxu0 %v21286_v52 }
 0x21f   : > { %17223 = vmatmul.mubr.f32.vlgmr.msra.gmra.mrb[8].mxu0 %v21406_v35 }
 0x220   : > { %19055 = vmatpush3.bf16.msra.mxu0 %v21396_v54  ;;  %17225 = vmatprep.mubr.f32.mxu0 %v21412_v29  ;;  %v7925_v54 = vrot.slane %v21332_v44, %v20986_v2 }
 0x221   : > { %19057 = vmatprep.subr.bf16.mxu0 %v19056_v15 }
 0x223   : > { %17226 = vmatmul.mubr.f32.gmra.mrb[10].mxu0 %v21419_v5 }
 0x224   : > { %19059 = vmatpush3.bf16.msra.mxu0 %v19056_v15  ;;  %17228 = vmatprep.mubr.f32.mxu0 %v21421_v33 }
 0x225   : > { %19061 = vmatprep.subr.bf16.mxu0 %v21392_v34 }
 0x227   : > { %17229 = vmatmul.mubr.f32.gmra.mrb[12].mxu0 %v21440_v43 }
 0x228   : > { %17231 = vmatprep.mubr.f32.mxu0 %v21442_v23 }
 0x22b   : > { %17232 = vmatmul.mubr.f32.gmra.mrb[14].mxu0 %v21459_v20 }
 0x22c   : > { %17242 = vmatprep.mubr.f32.mxu0 %v21289_v56 }
 0x22f   : > { %17243 = vmatmul.mubr.f32.vlgmr.msra.gmra.mrb[8].mxu0 %v21417_v39 }
 0x230   : > { %19063 = vmatpush3.bf16.msra.mxu0 %v21392_v34  ;;  %17245 = vmatprep.mubr.f32.mxu0 %v21425_v41 }
 0x231   : > { %19065 = vmatprep.subr.bf16.mxu0 %v21454_v30 }
 0x233   : > { %17246 = vmatmul.mubr.f32.gmra.mrb[10].mxu0 %v21435_v42 }
 0x234   : > { %19067 = vmatpush3.bf16.msra.mxu0 %v21454_v30  ;;  %17248 = vmatprep.mubr.f32.mxu0 %v21438_v59 }
 0x235   : > { %19069 = vmatprep.subr.bf16.mxu0 %v21399_v7 }
 0x237   : > { %17249 = vmatmul.mubr.f32.gmra.mrb[12].mxu0 %v21457_v0 }
 0x238   : > { %17251 = vmatprep.mubr.f32.mxu0 %v21462_v51 }
 0x23b   : > { %17252 = vmatmul.mubr.f32.gmra.mrb[14].mxu0 %v21476_v31 }
 0x23c   : > { %17262 = vmatprep.mubr.f32.mxu0 %v21292_v32 }
 0x23f   : > { %17263 = vmatmul.mubr.f32.vlgmr.msra.gmra.mrb[8].mxu0 %v21432_v25 }
 0x240   : > { %19071 = vmatpush3.bf16.msra.mxu0 %v21399_v7  ;;  %17265 = vmatprep.mubr.f32.mxu0 %v21447_v57  ;;  %v13131_v7 = vrot.slane %v21337_v45, %v20986_v2 }
 0x241   : > { %19073 = vmatprep.subr.bf16.mxu0 %v19072_v13 }
 0x243   : > { %17266 = vmatmul.mubr.f32.gmra.mrb[10].mxu0 %v21452_v28 }
 0x244   : > { %19075 = vmatpush3.bf16.msra.mxu0 %v19072_v13  ;;  %17268 = vmatprep.mubr.f32.mxu0 %v21467_v61 }
 0x245   : > { %19077 = vmatprep.subr.bf16.mxu0 %v21392_v34 }
 0x247   : > { %17269 = vmatmul.mubr.f32.gmra.mrb[12].mxu0 %v21479_v27 }
 0x248   : > { %17271 = vmatprep.mubr.f32.mxu0 %v21486_v62 }
 0x24a   : > { %v21555_v15 = vpop.xlane.xlu1 %1383 }
 0x24b   : > { %23571 = vst [vmem:[#allocation46_spill] sm:$0xff] %v21555_v15  ;;  %17272 = vmatmul.mubr.f32.gmra.mrb[14].mxu0 %v21495_v26  ;;  %v21558_v13 = vpop.xlane.xlu0 %1380  ;;  %v21561_v22 = vmul.f32 %v7925_v54, %v21555_v15  ;;  %v21564_v14 = vmul.f32 %v13131_v7, %v21555_v15 }
 0x24c   : > { %23572 = vst [vmem:[#allocation47_spill] sm:$0xff] %v21558_v13  ;;  %17282 = vmatprep.mubr.f32.mxu0 %v21286_v52  ;;  %v21568_v44 = vmul.f32 %v7925_v54, %v21558_v13  ;;  %v21571_v45 = vmul.f32 %v13131_v7, %v21558_v13 }
 0x24d   : > { %23573 = vst [vmem:[#allocation48_spill] sm:$0xff] %v21561_v22  ;;  %23574 = vst [vmem:[#allocation49_spill] sm:$0xff] %v21564_v14 }
 0x24e   : > { %23575 = vst [vmem:[#allocation50_spill] sm:$0xff] %v21568_v44  ;;  %23576 = vst [vmem:[#allocation51_spill] sm:$0xff] %v21571_v45  ;;  %v21573_v46 = vpop.xlane.xlu1 %1389 }
 0x24f   : > { %23577 = vst [vmem:[#allocation52_spill] sm:$0xff] %v21573_v46  ;;  %17283 = vmatmul.mubr.f32.vlgmr.msra.gmra.mrb[8].mxu0 %v21406_v35  ;;  %v21577_v16 = vmul.f32 %v7925_v54, %v21573_v46  ;;  %v21580_v24 = vmul.f32 %v13131_v7, %v21573_v46 }
 0x250   : > { %19079 = vmatpush3.bf16.msra.mxu0 %v21392_v34  ;;  %17285 = vmatprep.mubr.f32.mxu0 %v21412_v29 }
 0x251   : > { %23578 = vst [vmem:[#allocation53_spill] sm:$0xff] %v21577_v16  ;;  %23579 = vst [vmem:[#allocation54_spill] sm:$0xff] %v21580_v24  ;;  %19081 = vmatprep.subr.bf16.mxu0 %v21454_v30 }
 0x252   : > { %v21585_v14 = vpop.xlane.xlu1 %1386 }
 0x253   : > { %23580 = vst [vmem:[#allocation55_spill] sm:$0xff] %v21585_v14  ;;  %17286 = vmatmul.mubr.f32.gmra.mrb[10].mxu0 %v21419_v5  ;;  %v21588_v45 = vpop.xlane.xlu0 %1392  ;;  %v21591_v44 = vmul.f32 %v7925_v54, %v21585_v14  ;;  %v21594_v16 = vmul.f32 %v13131_v7, %v21585_v14 }
 0x254   : > { %23581 = vst [vmem:[#allocation56_spill] sm:$0xff] %v21588_v45  ;;  %19083 = vmatpush3.bf16.msra.mxu0 %v21454_v30  ;;  %17288 = vmatprep.mubr.f32.mxu0 %v21421_v33  ;;  %v21599_v34 = vmul.f32 %v7925_v54, %v21588_v45  ;;  %v21602_v24 = vmul.f32 %v13131_v7, %v21588_v45 }
 0x255   : > { %23582 = vst [vmem:[#allocation57_spill] sm:$0xff] %v21591_v44  ;;  %23583 = vst [vmem:[#allocation58_spill] sm:$0xff] %v21594_v16 }
 0x256   : > { %23584 = vst [vmem:[#allocation59_spill] sm:$0xff] %v21599_v34  ;;  %23585 = vst [vmem:[#allocation60_spill] sm:$0xff] %v21602_v24  ;;  %v21604_v22 = vpop.xlane.xlu1 %1395 }
 0x257   : > { %23586 = vst [vmem:[#allocation61_spill] sm:$0xff] %v21604_v22  ;;  %17289 = vmatmul.mubr.f32.gmra.mrb[12].mxu0 %v21440_v43  ;;  %v21607_v26 = vpop.xlane.xlu0 %1401  ;;  %v21610_v44 = vmul.f32 %v7925_v54, %v21604_v22  ;;  %v21613_v16 = vmul.f32 %v13131_v7, %v21604_v22 }
 0x258   : > { %23587 = vst [vmem:[#allocation62_spill] sm:$0xff] %v21607_v26  ;;  %17291 = vmatprep.mubr.f32.mxu0 %v21442_v23  ;;  %v21617_v30 = vmul.f32 %v7925_v54, %v21607_v26  ;;  %v21620_v34 = vmul.f32 %v13131_v7, %v21607_v26 }
 0x259   : > { %23588 = vst [vmem:[#allocation63_spill] sm:$0xff] %v21610_v44  ;;  %23589 = vst [vmem:[#allocation64_spill] sm:$0xff] %v21613_v16 }
 0x25a   : > { %23590 = vst [vmem:[#allocation65_spill] sm:$0xff] %v21617_v30  ;;  %23591 = vst [vmem:[#allocation66_spill] sm:$0xff] %v21620_v34  ;;  %v21622_v24 = vpop.permute.xlu1 %3444 }
 0x25b   : > { %17292 = vmatmul.mubr.f32.gmra.mrb[14].mxu0 %v21459_v20  ;;  %v21627_v62 = vmul.f32 %v21346_v50, %v21622_v24  ;;  %v21631_v44 = vmul.f32 %v21350_v53, %v21622_v24 }
 0x25c   : > { %17302 = vmatprep.mubr.f32.mxu0 %v21286_v52 }
 0x25d   : > { %23592 = vst [vmem:[#allocation67_spill] sm:$0xff] %v21627_v62  ;;  %23593 = vst [vmem:[#allocation68_spill] sm:$0xff] %v21631_v44  ;;  %v15724_v62 = vld [vmem:[%s23401_s8 + $0x48] sm:$0xff] }
 0x25e   : > { %v21634_v16 = vpop.permute.xlu1 %3449  ;;  %v3582_v27 = vand.u32 4294901760, %v15724_v62 }
 0x25f   : > { %17303 = vmatmul.mubr.f32.vlgmr.msra.gmra.mrb[8].mxu0 %v21406_v35  ;;  %v21639_v34 = vmul.f32 %v21346_v50, %v21634_v16  ;;  %v21643_v30 = vmul.f32 %v21350_v53, %v21634_v16 }
 0x260   : > { %17305 = vmatprep.mubr.f32.mxu0 %v21412_v29  ;;  %v3736_v25 = vsub.f32 %v15724_v62, %v3582_v27 }
 0x261   : > { %23594 = vst [vmem:[#allocation69_spill] sm:$0xff] %v21639_v34  ;;  %23595 = vst [vmem:[#allocation70_spill] sm:$0xff] %v21643_v30  ;;  %v15723_v30 = vld [vmem:[%s23401_s8 + $0x40] sm:$0xff] }
 0x262   : > { %v3579_v50 = vand.u32 4294901760, %v15723_v30  ;;  %v3737_v31 = vand.u32 4294901760, %v3736_v25 }
 0x263   : > { %17306 = vmatmul.mubr.f32.gmra.mrb[10].mxu0 %v21419_v5 }
 0x264   : > { %17308 = vmatprep.mubr.f32.mxu0 %v21421_v33  ;;  %v21665_v61 = vpack.c.bf16 %v3582_v27, %v3579_v50  ;;  %v3729_v57 = vsub.f32 %v15723_v30, %v3579_v50  ;;  %v3738_v0 = vsub.f32 %v3736_v25, %v3737_v31 }
 0x266   : > { %19085 = vmatprep.subr.bf16.mxu1 %v21665_v61  ;;  %v3730_v32 = vand.u32 4294901760, %v3729_v57  ;;  %v3739_v39 = vand.u32 4294901760, %v3738_v0  ;;  %v21684_v27 = vpack.c.bf16 %v3736_v25, %v3729_v57  ;;  %v21695_v0 = vld [vmem:[%s23402_s9] sm:$0xff] }
 0x267   : > { %17309 = vmatmul.mubr.f32.gmra.mrb[12].mxu0 %v21440_v43  ;;  %19087 = vmatpush3.bf16.msra.mxu1 %v21665_v61 }
 0x268   : > { %17311 = vmatprep.mubr.f32.mxu0 %v21442_v23  ;;  %v3731_v51 = vsub.f32 %v3729_v57, %v3730_v32 }
 0x26a   : > { %v3732_v41 = vand.u32 4294901760, %v3731_v51 }
 0x26b   : > { %17312 = vmatmul.mubr.f32.gmra.mrb[14].mxu0 %v21459_v20 }
 0x26c   : > { %v21679_v23 = vpack.c.bf16 %v3739_v39, %v3732_v41  ;;  %v2566_v39 = vrot.slane %v21695_v0, %v20986_v2 }
 0x28f   : > { %v21651_v44 = vpop.xlane.xlu1 %1398 }
 0x290   : > { %23596 = vst [vmem:[#allocation71_spill] sm:$0xff] %v21651_v44  ;;  %v21654_v34 = vmul.f32 %v7925_v54, %v21651_v44  ;;  %v21657_v53 = vmul.f32 %v13131_v7, %v21651_v44  ;;  %v15725_v54 = vld [vmem:[%s23401_s8 + $0x50] sm:$0xff]  ;;  %v15726_v7 = vld [vmem:[%s23401_s8 + $0x58] sm:$0xff] }
 0x292   : > { %23597 = vst [vmem:[#allocation72_spill] sm:$0xff] %v21654_v34  ;;  %23598 = vst [vmem:[#allocation73_spill] sm:$0xff] %v21657_v53  ;;  %v3585_v53 = vand.u32 4294901760, %v15725_v54  ;;  %v3588_v34 = vand.u32 4294901760, %v15726_v7 }
 0x294   : > { %v21675_v28 = vpack.c.bf16 %v3588_v34, %v3585_v53  ;;  %v3743_v59 = vsub.f32 %v15725_v54, %v3585_v53  ;;  %v3750_v42 = vsub.f32 %v15726_v7, %v3588_v34  ;;  %v21688_v53 = vpack.c.bf16 %v3737_v31, %v3730_v32 }
 0x295   : > { %v2569_v34 = vmul.f32 %v2566_v39, %v21585_v14 }
 0x296   : > { %19089 = vmatprep.subr.bf16.mxu1 %v21675_v28  ;;  %v3744_v56 = vand.u32 4294901760, %v3743_v59  ;;  %v3751_v20 = vand.u32 4294901760, %v3750_v42  ;;  %v21686_v62 = vpack.c.bf16 %v3750_v42, %v3743_v59 }
 0x297   : > { %19091 = vmatpush3.bf16.msra.mxu1 %v21675_v28 }
 0x298   : > { %v3745_v43 = vsub.f32 %v3743_v59, %v3744_v56  ;;  %v3752_v33 = vsub.f32 %v3750_v42, %v3751_v20  ;;  %19093 = vmatprep.subr.bf16.mxu1 %v21679_v23  ;;  %v21690_v51 = vpack.c.bf16 %v3751_v20, %v3744_v56  ;;  %v2567_v56 = vmul.f32 %v2566_v39, %v21558_v13 }
 0x29a   : > { %v3746_v5 = vand.u32 4294901760, %v3745_v43  ;;  %v3753_v29 = vand.u32 4294901760, %v3752_v33  ;;  %v2568_v33 = vmul.f32 %v2566_v39, %v21555_v15  ;;  %v21718_v15 = vpop.permute.xlu0 %3439 }
 0x29b   : > { %23600 = vst [vmem:[#allocation75_spill] sm:$0xff] %v21718_v15 }
 0x29c   : > { %v21682_v50 = vpack.c.bf16 %v3753_v29, %v3746_v5  ;;  %v3460_v29 = vrot.slane %v21695_v0, %v21325_v37  ;;  %v21702_v5 = vsub.s32 2, %v20975_v1  ;;  %v2570_v37 = vmul.f32 %v2566_v39, %v21573_v46 }
 0x29e   : > { %23599 = vst [vmem:[#allocation74_spill] sm:$0xff] %v21702_v5  ;;  %v3462_v31 = vmul.f32 %v3460_v29, %v21327_v38  ;;  %v3480_v41 = vrot.slane %v21695_v0, %v21702_v5  ;;  %v3461_v2 = vmul.f32 %v3460_v29, %v21547_v6  ;;  %v3464_v30 = vmul.f32 %v3460_v29, %v21544_v58 }
 0x332   : > { %v17304_v32 = vpop.f32.mrb[8].mxu0 }
 0x333   : > { %v20100_v20 = vadd.f32 %v17304_v32, %v2568_v33  ;;  %v3371_v25 = vpop.f32.mrb[9].mxu0  ;;  %v3463_v33 = vmul.f32 %v3460_v29, %v21367_v4 }
 0x334   : > { %v20101_v42 = vadd.f32 %v3371_v25, %v2567_v56 }
 0x335   : > { %v3470_v59 = vadd.f32 %v20100_v20, %v3462_v31  ;;  %v2572_v20 = vmul.f32 %v2566_v39, %v21604_v22  ;;  %v2574_v22 = vmul.f32 %v2566_v39, %v21607_v26 }
 0x336   : > { %v3469_v43 = vadd.f32 %v20101_v42, %v3461_v2  ;;  %v17307_v57 = vpop.f32.mrb[10].mxu0 }
 0x337   : > { %v21713_v54 = vadd.f32 %v3480_v41, %v3470_v59  ;;  %v20102_v38 = vadd.f32 %v17307_v57, %v2570_v37  ;;  %v3383_v7 = vpop.f32.mrb[11].mxu0  ;;  %v2571_v59 = vmul.f32 %v2566_v39, %v21588_v45  ;;  %v3466_v37 = vmul.f32 %v3460_v29, %v21622_v24 }
 0x338   : > { %v21716_v32 = vadd.f32 %v3480_v41, %v3469_v43  ;;  %v20103_v13 = vadd.f32 %v3383_v7, %v2569_v34  ;;  %v21727_v34 = vpop.permute.xlu1 %3454  ;;  %v3465_v7 = vmul.f32 %v3460_v29, %v21718_v15 }
 0x339   : > { %v15716_v56 = vmul.f32 -1.442695, %v21713_v54  ;;  %v3472_v31 = vadd.f32 %v20102_v38, %v3464_v30  ;;  %23601 = vst [vmem:[#allocation76_spill] sm:$0xff] %v21727_v34 }
 0x33a   : > { %v15715_v25 = vmul.f32 -1.442695, %v21716_v32  ;;  %v3471_v2 = vadd.f32 %v20103_v13, %v3463_v33  ;;  %v17310_v42 = vpop.f32.mrb[12].mxu0 }
 0x33b   : > { %20587 = vpow2.f32 %v15716_v56  ;;  %v21725_v4 = vadd.f32 %v3480_v41, %v3472_v31  ;;  %v20104_v43 = vadd.f32 %v17310_v42, %v2572_v20  ;;  %v3395_v57 = vpop.f32.mrb[13].mxu0  ;;  %v2573_v20 = vmul.f32 %v2566_v39, %v21651_v44 }
 0x33c   : > { %20589 = vpow2.f32 %v15715_v25  ;;  %v21730_v30 = vadd.f32 %v3480_v41, %v3471_v2  ;;  %v20105_v38 = vadd.f32 %v3395_v57, %v2571_v59  ;;  %v3468_v42 = vmul.f32 %v3460_v29, %v21727_v34 }
 0x33d   : > { %v15718_v13 = vmul.f32 -1.442695, %v21725_v4  ;;  %v3474_v33 = vadd.f32 %v20104_v43, %v3466_v37  ;;  %v3467_v59 = vmul.f32 %v3460_v29, %v21634_v16 }
 0x33e   : > { %v15717_v24 = vmul.f32 -1.442695, %v21730_v30  ;;  %v3473_v56 = vadd.f32 %v20105_v38, %v3465_v7  ;;  %v17313_v31 = vpop.f32.mrb[14].mxu0 }
 0x33f   : > { %20591 = vpow2.f32 %v15718_v13  ;;  %v21737_v45 = vadd.f32 %v3480_v41, %v3474_v33  ;;  %v20106_v25 = vadd.f32 %v17313_v31, %v2574_v22  ;;  %v3407_v2 = vpop.f32.mrb[15].mxu0 }
 0x340   : > { %20593 = vpow2.f32 %v15717_v24  ;;  %v3485_v57 = vadd.f32 %v3480_v41, %v3473_v56  ;;  %v20107_v37 = vadd.f32 %v3407_v2, %v2573_v20 }
 0x341   : > { %v15720_v43 = vmul.f32 -1.442695, %v21737_v45  ;;  %v3476_v26 = vadd.f32 %v20106_v25, %v3468_v42 }
 0x342   : > { %v15719_v14 = vmul.f32 -1.442695, %v3485_v57  ;;  %v3475_v7 = vadd.f32 %v20107_v37, %v3467_v59 }
 0x343   : > { %20595 = vpow2.f32 %v15720_v43  ;;  %v21741_v38 = vadd.f32 %v3480_v41, %v3476_v26 }
 0x344   : > { %20597 = vpow2.f32 %v15719_v14  ;;  %v21743_v39 = vadd.f32 %v3480_v41, %v3475_v7 }
 0x345   : > { %v20588_v13 = vpop.eup %20587  ;;  %v15722_v22 = vmul.f32 -1.442695, %v21741_v38 }
 0x346   : > { %v20590_v33 = vpop.eup %20589  ;;  %v3514_v31 = vadd.f32 1.0, %v20588_v13  ;;  %v15721_v16 = vmul.f32 -1.442695, %v21743_v39 }
 0x347   : > { %v3513_v29 = vadd.f32 1.0, %v20590_v33  ;;  %20599 = vpow2.f32 %v15722_v22 }
 0x348   : > { %20601 = vrcp.f32 %v3514_v31 }
 0x349   : > { %v20592_v24 = vpop.eup %20591  ;;  %20603 = vrcp.f32 %v3513_v29 }
 0x34a   : > { %v20594_v56 = vpop.eup %20593  ;;  %v3516_v20 = vadd.f32 1.0, %v20592_v24  ;;  %20605 = vpow2.f32 %v15721_v16 }
 0x34b   : > { %v3515_v26 = vadd.f32 1.0, %v20594_v56 }
 0x34c   : > { %20607 = vrcp.f32 %v3516_v20 }
 0x34d   : > { %v20596_v14 = vpop.eup %20595  ;;  %20609 = vrcp.f32 %v3515_v26 }
 0x34e   : > { %v20598_v41 = vpop.eup %20597  ;;  %v3518_v42 = vadd.f32 1.0, %v20596_v14 }
 0x34f   : > { %v3517_v25 = vadd.f32 1.0, %v20598_v41 }
 0x350   : > { %20611 = vrcp.f32 %v3518_v42 }
 0x351   : > { %v20600_v2 = vpop.eup %20599  ;;  %20613 = vrcp.f32 %v3517_v25 }
 0x352   : > { %v20602_v59 = vpop.eup %20601  ;;  %v3520_v37 = vadd.f32 1.0, %v20600_v2 }
 0x353   : > { %v20604_v43 = vpop.eup %20603  ;;  %v3538_v7 = vmul.f32 %v20602_v59, %v21713_v54 }
 0x354   : > { %v20606_v13 = vpop.eup %20605  ;;  %v3537_v22 = vmul.f32 %v20604_v43, %v21716_v32  ;;  %20615 = vrcp.f32 %v3520_v37 }
 0x355   : > { %v3558_v33 = vsel %vm1500_vm13, %v3538_v7, 0  ;;  %v3519_v31 = vadd.f32 1.0, %v20606_v13 }
 0x356   : > { %v20608_v16 = vpop.eup %20607  ;;  %v21750_v29 = vand.u32 4294901760, %v3558_v33  ;;  %v3555_v24 = vsel %vm1500_vm13, %v3537_v22, 0 }
 0x357   : > { %v20610_v56 = vpop.eup %20609  ;;  %v21753_v20 = vand.u32 4294901760, %v3555_v24  ;;  %v3540_v26 = vmul.f32 %v20608_v16, %v21725_v4  ;;  %20617 = vrcp.f32 %v3519_v31 }
 0x358   : > { %v21757_v54 = vsub.f32 %v3558_v33, %v21750_v29  ;;  %v3539_v32 = vmul.f32 %v20610_v56, %v21730_v30 }
 0x359   : > { %v3564_v14 = vsel %vm1500_vm13, %v3540_v26, 0  ;;  %v21762_v41 = vsub.f32 %v3555_v24, %v21753_v20 }
 0x35a   : > { %v20612_v42 = vpop.eup %20611  ;;  %v21764_v25 = vand.u32 4294901760, %v3564_v14  ;;  %v3561_v2 = vsel %vm1500_vm13, %v3539_v32, 0  ;;  %v23466_v59 = vand.u32 4294901760, %v21757_v54 }
 0x35b   : > { %v20614_v37 = vpop.eup %20613  ;;  %v21768_v4 = vand.u32 4294901760, %v3561_v2  ;;  %v3542_v43 = vmul.f32 %v20612_v42, %v21737_v45  ;;  %v23467_v7 = vand.u32 4294901760, %v21762_v41 }
 0x35c   : > { %v3541_v30 = vmul.f32 %v20614_v37, %v3485_v57  ;;  %v3660_v13 = vsub.f32 %v21757_v54, %v23466_v59  ;;  %v21776_v22 = vsub.f32 %v3564_v14, %v21764_v25 }
 0x35d   : > { %v3570_v33 = vsel %vm1500_vm13, %v3542_v43, 0  ;;  %v3650_v31 = vsub.f32 %v21762_v41, %v23467_v7  ;;  %v21783_v16 = vsub.f32 %v3561_v2, %v21768_v4 }
 0x35e   : > { %v20616_v45 = vpop.eup %20615  ;;  %v21785_v24 = vand.u32 4294901760, %v3570_v33  ;;  %v3567_v57 = vsel %vm1500_vm13, %v3541_v30, 0  ;;  %v23468_v56 = vand.u32 4294901760, %v21776_v22  ;;  %v3661_v37 = vand.u32 4294901760, %v3660_v13 }
 0x35f   : > { %v21789_v26 = vand.u32 4294901760, %v3567_v57  ;;  %v3544_v32 = vmul.f32 %v20616_v45, %v21741_v38  ;;  %v3651_v14 = vand.u32 4294901760, %v3650_v31  ;;  %v23470_v42 = vand.u32 4294901760, %v21783_v16 }
 0x360   : > { %v3680_v2 = vsub.f32 %v21776_v22, %v23468_v56  ;;  %v21797_v43 = vsub.f32 %v3570_v33, %v21785_v24 }
 0x361   : > { %v20618_v59 = vpop.eup %20617  ;;  %v3576_v30 = vsel %vm1500_vm13, %v3544_v32, 0  ;;  %17322 = vmatprep.mubr.f32.mxu1 %v3651_v14  ;;  %v3670_v7 = vsub.f32 %v21783_v16, %v23470_v42  ;;  %v3688_v38 = vsub.f32 %v3567_v57, %v21789_v26 }
 0x362   : > { %v21804_v31 = vand.u32 4294901760, %v3576_v30  ;;  %v3543_v13 = vmul.f32 %v20618_v59, %v21743_v39  ;;  %17323 = vmatmul.mubr.f32.vlgmr.msra.gmra.mrb[12].mxu1 %v3661_v37  ;;  %v3699_v45 = vand.u32 4294901760, %v21797_v43  ;;  %v3681_v14 = vand.u32 4294901760, %v3680_v2 }
 0x363   : > { %v3671_v56 = vand.u32 4294901760, %v3670_v7  ;;  %19095 = vmatpush3.bf16.msra.mxu1 %v21679_v23  ;;  %v3689_v33 = vand.u32 4294901760, %v3688_v38 }
 0x364   : > { %v3573_v32 = vsel %vm1500_vm13, %v3543_v13, 0  ;;  %v3700_v44 = vsub.f32 %v21797_v43, %v3699_v45  ;;  %v3718_v42 = vsub.f32 %v3576_v30, %v21804_v31  ;;  %19097 = vmatprep.subr.bf16.mxu1 %v21682_v50 }
 0x365   : > { %v21813_v57 = vand.u32 4294901760, %v3573_v32  ;;  %17325 = vmatprep.mubr.f32.mxu1 %v3671_v56  ;;  %v3690_v39 = vsub.f32 %v3688_v38, %v3689_v33 }
 0x366   : > { %17326 = vmatmul.mubr.f32.gmra.mrb[14].mxu1 %v3681_v14  ;;  %v3719_v59 = vand.u32 4294901760, %v3718_v42  ;;  %v3701_v23 = vand.u32 4294901760, %v3700_v44  ;;  %v23602_v44 = vand.u32 4294901760, %v21762_v41 }
 0x367   : > { %v3691_v37 = vand.u32 4294901760, %v3690_v39  ;;  %v3708_v7 = vsub.f32 %v3573_v32, %v21813_v57  ;;  %19099 = vmatpush3.bf16.msra.mxu1 %v21682_v50  ;;  %v23604_v50 = vand.u32 4294901760, %v21783_v16 }
 0x368   : > { %19101 = vmatprep.subr.bf16.mxu1 %v21684_v27  ;;  %v3720_v30 = vsub.f32 %v3718_v42, %v3719_v59 }
 0x369   : > { %17328 = vmatprep.mubr.f32.mxu1 %v3691_v37  ;;  %v3709_v2 = vand.u32 4294901760, %v3708_v7 }
 0x36a   : > { %17329 = vmatmul.mubr.f32.gmra.mrb[16].mxu1 %v3701_v23  ;;  %v3721_v34 = vand.u32 4294901760, %v3720_v30 }
 0x36b   : > { %v3710_v13 = vsub.f32 %v3708_v7, %v3709_v2 }
 0x36d   : > { %v3711_v46 = vand.u32 4294901760, %v3710_v13 }
 0x36f   : > { %17331 = vmatprep.mubr.f32.mxu1 %v3711_v46  ;;  %v23603_v46 = vand.u32 4294901760, %v21757_v54 }
 0x370   : > { %17332 = vmatmul.mubr.f32.gmra.mrb[18].mxu1 %v3721_v34 }
 0x371   : > { %17342 = vmatprep.mubr.f32.mxu1 %v21753_v20 }
 0x374   : > { %17343 = vmatmul.mubr.f32.vlgmr.msra.gmra.mrb[12].mxu1 %v21750_v29 }
 0x375   : > { %17345 = vmatprep.mubr.f32.mxu1 %v21768_v4  ;;  %19103 = vmatpush3.bf16.msra.mxu1 %v21684_v27  ;;  %v23605_v27 = vand.u32 4294901760, %v21776_v22 }
 0x376   : > { %19105 = vmatprep.subr.bf16.mxu1 %v21686_v62 }
 0x378   : > { %17346 = vmatmul.mubr.f32.gmra.mrb[14].mxu1 %v21764_v25 }
 0x379   : > { %17348 = vmatprep.mubr.f32.mxu1 %v21789_v26  ;;  %19107 = vmatpush3.bf16.msra.mxu1 %v21686_v62 }
 0x37a   : > { %19109 = vmatprep.subr.bf16.mxu1 %v21665_v61 }
 0x37c   : > { %17349 = vmatmul.mubr.f32.gmra.mrb[16].mxu1 %v21785_v24 }
 0x37d   : > { %17351 = vmatprep.mubr.f32.mxu1 %v21813_v57 }
 0x380   : > { %17352 = vmatmul.mubr.f32.gmra.mrb[18].mxu1 %v21804_v31 }
 0x381   : > { %17362 = vmatprep.mubr.f32.mxu1 %v21762_v41 }
 0x384   : > { %17363 = vmatmul.mubr.f32.vlgmr.msra.gmra.mrb[12].mxu1 %v21757_v54 }
 0x385   : > { %17365 = vmatprep.mubr.f32.mxu1 %v21783_v16  ;;  %19111 = vmatpush3.bf16.msra.mxu1 %v21665_v61 }
 0x386   : > { %19113 = vmatprep.subr.bf16.mxu1 %v21675_v28 }
 0x388   : > { %17366 = vmatmul.mubr.f32.gmra.mrb[14].mxu1 %v21776_v22 }
 0x389   : > { %17368 = vmatprep.mubr.f32.mxu1 %v3688_v38  ;;  %19115 = vmatpush3.bf16.msra.mxu1 %v21675_v28 }
 0x38a   : > { %19117 = vmatprep.subr.bf16.mxu1 %v21688_v53 }
 0x38c   : > { %17369 = vmatmul.mubr.f32.gmra.mrb[16].mxu1 %v21797_v43 }
 0x38d   : > { %17371 = vmatprep.mubr.f32.mxu1 %v3708_v7 }
 0x390   : > { %17372 = vmatmul.mubr.f32.gmra.mrb[18].mxu1 %v3718_v42 }
 0x391   : > { %17382 = vmatprep.mubr.f32.mxu1 %v23602_v44 }
 0x394   : > { %17383 = vmatmul.mubr.f32.vlgmr.msra.gmra.mrb[12].mxu1 %v23603_v46  ;;  %v21879_v46 = vsub.s32 4, %v20975_v1 }
 0x395   : > { %17385 = vmatprep.mubr.f32.mxu1 %v23604_v50  ;;  %19119 = vmatpush3.bf16.msra.mxu1 %v21688_v53 }
 0x396   : > { %19121 = vmatprep.subr.bf16.mxu1 %v21690_v51 }
 0x398   : > { %17386 = vmatmul.mubr.f32.gmra.mrb[14].mxu1 %v23605_v27 }
 0x399   : > { %17388 = vmatprep.mubr.f32.mxu1 %v3689_v33  ;;  %19123 = vmatpush3.bf16.msra.mxu1 %v21690_v51 }
 0x39a   : > { %19125 = vmatprep.subr.bf16.mxu1 %v21665_v61 }
 0x39c   : > { %17389 = vmatmul.mubr.f32.gmra.mrb[16].mxu1 %v3699_v45 }
 0x39d   : > { %17391 = vmatprep.mubr.f32.mxu1 %v3709_v2 }
 0x3a0   : > { %17392 = vmatmul.mubr.f32.gmra.mrb[18].mxu1 %v3719_v59 }
 0x3a1   : > { %17402 = vmatprep.mubr.f32.mxu1 %v21753_v20 }
 0x3a4   : > { %17403 = vmatmul.mubr.f32.vlgmr.msra.gmra.mrb[12].mxu1 %v21750_v29 }
 0x3a5   : > { %17405 = vmatprep.mubr.f32.mxu1 %v21768_v4  ;;  %19127 = vmatpush3.bf16.msra.mxu1 %v21665_v61  ;;  %v21871_v61 = vsub.s32 3, %v20975_v1 }
 0x3a6   : > { %19129 = vmatprep.subr.bf16.mxu1 %v21675_v28 }
 0x3a8   : > { %17406 = vmatmul.mubr.f32.gmra.mrb[14].mxu1 %v21764_v25 }
 0x3a9   : > { %17408 = vmatprep.mubr.f32.mxu1 %v21789_v26  ;;  %19131 = vmatpush3.bf16.msra.mxu1 %v21675_v28  ;;  %v3553_v28 = vrot.slane %v21695_v0, %v21871_v61 }
 0x3ac   : > { %17409 = vmatmul.mubr.f32.gmra.mrb[16].mxu1 %v21785_v24 }
 0x3ad   : > { %17411 = vmatprep.mubr.f32.mxu1 %v21813_v57 }
 0x3b0   : > { %17412 = vmatmul.mubr.f32.gmra.mrb[18].mxu1 %v21804_v31 }
 0x3b1   : > { %17422 = vmatprep.mubr.f32.mxu1 %v21753_v20 }
 0x3b4   : > { %17423 = vmatmul.mubr.f32.vlgmr.msra.gmra.mrb[12].mxu1 %v21750_v29 }
 0x3b5   : > { %17425 = vmatprep.mubr.f32.mxu1 %v21768_v4 }
 0x3b8   : > { %17426 = vmatmul.mubr.f32.gmra.mrb[14].mxu1 %v21764_v25 }
 0x3b9   : > { %17428 = vmatprep.mubr.f32.mxu1 %v21789_v26 }
 0x3bc   : > { %17429 = vmatmul.mubr.f32.gmra.mrb[16].mxu1 %v21785_v24 }
 0x3bd   : > { %17431 = vmatprep.mubr.f32.mxu1 %v21813_v57 }
 0x3c0   : > { %17432 = vmatmul.mubr.f32.gmra.mrb[18].mxu1 %v21804_v31 }
 0x487   : > { %v17424_v62 = vpop.f32.mrb[12].mxu1 }
 0x488   : > { %v20108_v53 = vadd.f32 %v17424_v62, %v3553_v28  ;;  %v4318_v51 = vpop.f32.mrb[13].mxu1 }
 0x489   : > { %v20109_v34 = vadd.f32 %v4318_v51, %v3553_v28  ;;  %v4423_v51 = vrot.slane %v21695_v0, %v21879_v46 }
 0x48a   : > { %v15728_v29 = vmul.f32 -1.442695, %v20108_v53 }
 0x48b   : > { %v15727_v20 = vmul.f32 -1.442695, %v20109_v34  ;;  %v17427_v54 = vpop.f32.mrb[14].mxu1 }
 0x48c   : > { %20619 = vpow2.f32 %v15728_v29  ;;  %v20110_v41 = vadd.f32 %v17427_v54, %v3553_v28  ;;  %v4330_v25 = vpop.f32.mrb[15].mxu1 }
 0x48d   : > { %20621 = vpow2.f32 %v15727_v20  ;;  %v20111_v4 = vadd.f32 %v4330_v25, %v3553_v28 }
 0x48e   : > { %v15730_v22 = vmul.f32 -1.442695, %v20110_v41 }
 0x48f   : > { %v15729_v16 = vmul.f32 -1.442695, %v20111_v4  ;;  %v17430_v24 = vpop.f32.mrb[16].mxu1 }
 0x490   : > { %20623 = vpow2.f32 %v15730_v22  ;;  %v20112_v56 = vadd.f32 %v17430_v24, %v3553_v28  ;;  %v4342_v26 = vpop.f32.mrb[17].mxu1 }
 0x491   : > { %20625 = vpow2.f32 %v15729_v16  ;;  %v20113_v42 = vadd.f32 %v4342_v26, %v3553_v28 }
 0x492   : > { %v15732_v43 = vmul.f32 -1.442695, %v20112_v56 }
 0x493   : > { %v15731_v38 = vmul.f32 -1.442695, %v20113_v42  ;;  %v17433_v31 = vpop.f32.mrb[18].mxu1 }
 0x494   : > { %20627 = vpow2.f32 %v15732_v43  ;;  %v20114_v45 = vadd.f32 %v17433_v31, %v3553_v28  ;;  %v4354_v33 = vpop.f32.mrb[19].mxu1 }
 0x495   : > { %20629 = vpow2.f32 %v15731_v38  ;;  %v21875_v32 = vadd.f32 %v4354_v33, %v3553_v28 }
 0x496   : > { %v20620_v14 = vpop.eup %20619  ;;  %v15734_v57 = vmul.f32 -1.442695, %v20114_v45 }
 0x497   : > { %v20622_v39 = vpop.eup %20621  ;;  %v4389_v59 = vadd.f32 1.0, %v20620_v14  ;;  %v15733_v37 = vmul.f32 -1.442695, %v21875_v32 }
 0x498   : > { %v4388_v7 = vadd.f32 1.0, %v20622_v39  ;;  %20631 = vpow2.f32 %v15734_v57 }
 0x499   : > { %20633 = vrcp.f32 %v4389_v59 }
 0x49a   : > { %v20624_v23 = vpop.eup %20623  ;;  %20635 = vrcp.f32 %v4388_v7 }
 0x49b   : > { %v20626_v2 = vpop.eup %20625  ;;  %v4391_v30 = vadd.f32 1.0, %v20624_v23  ;;  %20637 = vpow2.f32 %v15733_v37 }
 0x49c   : > { %v4390_v13 = vadd.f32 1.0, %v20626_v2 }
 0x49d   : > { %20639 = vrcp.f32 %v4391_v30 }
 0x49e   : > { %v20628_v44 = vpop.eup %20627  ;;  %20641 = vrcp.f32 %v4390_v13 }
 0x49f   : > { %v20630_v50 = vpop.eup %20629  ;;  %v4393_v27 = vadd.f32 1.0, %v20628_v44 }
 0x4a0   : > { %v4392_v28 = vadd.f32 1.0, %v20630_v50 }
 0x4a1   : > { %20643 = vrcp.f32 %v4393_v27 }
 0x4a2   : > { %v20632_v62 = vpop.eup %20631  ;;  %20645 = vrcp.f32 %v4392_v28 }
 0x4a3   : > { %v20634_v29 = vpop.eup %20633  ;;  %v4395_v20 = vadd.f32 1.0, %v20632_v62 }
 0x4a4   : > { %v20636_v54 = vpop.eup %20635  ;;  %v21883_v25 = vmul.f32 %v20634_v29, %v20108_v53 }
 0x4a5   : > { %v20638_v22 = vpop.eup %20637  ;;  %v21885_v16 = vmul.f32 %v20636_v54, %v20109_v34  ;;  %20647 = vrcp.f32 %v4395_v20  ;;  %v503_v20 = vld [vmem:[%s21921_s19 + $0x18] sm:$0xff]  ;;  %v501_v54 = vld [vmem:[%s21921_s19 + $0x8] sm:$0xff] }
 0x4a6   : > { %v4394_v24 = vadd.f32 1.0, %v20638_v22  ;;  %v4425_v26 = vmul.f32 %v4423_v51, %v21883_v25  ;;  %v502_v22 = vld [vmem:[%s21921_s19 + $0x10] sm:$0xff] }
 0x4a7   : > { %v20640_v43 = vpop.eup %20639  ;;  %v4424_v38 = vmul.f32 %v4423_v51, %v21885_v16 }
 0x4a8   : > { %v20642_v31 = vpop.eup %20641  ;;  %v21889_v33 = vmul.f32 %v20640_v43, %v20110_v41  ;;  %20649 = vrcp.f32 %v4394_v24  ;;  %v4435_v14 = vsel %vm1500_vm13, %v4425_v26, 0.0  ;;  %v504_v24 = vld [vmem:[%s21921_s19 + $0x20] sm:$0xff]  ;;  %v23474_v26 = vsub.s32 7, %v20975_v1 }
 0x4a9   : > { %v21892_v57 = vmul.f32 %v20642_v31, %v20111_v4  ;;  %4436 = vadd.xlane.f32.xlu0 %v4435_v14  ;;  %v4432_v53 = vsel %vm1500_vm13, %v4424_v38, 0.0 }
 0x4aa   : > { %4433 = vadd.xlane.f32.xlu1 %v4432_v53  ;;  %v4427_v34 = vmul.f32 %v4423_v51, %v21889_v33  ;;  %v4459_v43 = vrot.slane %v21695_v0, %v23474_v26 }
 0x4ab   : > { %v20644_v39 = vpop.eup %20643  ;;  %v4426_v59 = vmul.f32 %v4423_v51, %v21892_v57 }
 0x4ac   : > { %v20646_v37 = vpop.eup %20645  ;;  %v21897_v7 = vmul.f32 %v20644_v39, %v20112_v56  ;;  %v4441_v41 = vsel %vm1500_vm13, %v4427_v34, 0.0 }
 0x4ad   : > { %v21900_v23 = vmul.f32 %v20646_v37, %v20113_v42  ;;  %4442 = vadd.xlane.f32.xlu0 %v4441_v41  ;;  %v4438_v4 = vsel %vm1500_vm13, %v4426_v59, 0.0 }
 0x4ae   : > { %4439 = vadd.xlane.f32.xlu1 %v4438_v4  ;;  %v4429_v2 = vmul.f32 %v4423_v51, %v21897_v7 }
 0x4af   : > { %v20648_v30 = vpop.eup %20647  ;;  %v4428_v13 = vmul.f32 %v4423_v51, %v21900_v23 }
 0x4b0   : > { %v21905_v44 = vmul.f32 %v20648_v30, %v20114_v45  ;;  %v4447_v50 = vsel %vm1500_vm13, %v4429_v2, 0.0 }
 0x4b1   : > { %4448 = vadd.xlane.f32.xlu0 %v4447_v50  ;;  %v4444_v56 = vsel %vm1500_vm13, %v4428_v13, 0.0 }
 0x4b2   : > { %v20650_v27 = vpop.eup %20649  ;;  %4445 = vadd.xlane.f32.xlu1 %v4444_v56  ;;  %v4431_v42 = vmul.f32 %v4423_v51, %v21905_v44 }
 0x4b3   : > { %v21911_v28 = vmul.f32 %v20650_v27, %v21875_v32  ;;  %v500_v32 = vld [vmem:[%s21921_s19] sm:$0xff] }
 0x4b4   : > { %v4453_v62 = vsel %vm1500_vm13, %v4431_v42, 0.0 }
 0x4b5   : > { %4454 = vadd.xlane.f32.xlu0 %v4453_v62  ;;  %v4430_v29 = vmul.f32 %v4423_v51, %v21911_v28  ;;  %v505_v51 = vld [vmem:[%s21921_s19 + $0x28] sm:$0xff] }
 0x4b7   : > { %v4450_v45 = vsel %vm1500_vm13, %v4430_v29, 0.0 }
 0x4b8   : > { %4451 = vadd.xlane.f32.xlu1 %v4450_v45 }
 0x4c9   : > { %4566 = vperm.xlu1 %20586, %v500_v32  }
 0x4cb   : > { %4581 = vperm.xlu0 %20585, %v503_v20  }
 0x4cd   : > { %4571 = vperm.xlu1 %20586, %v501_v54  }
 0x4cf   : > { %4591 = vperm.xlu0 %20585, %v505_v51  }
 0x4d1   : > { %4576 = vperm.xlu1 %20586, %v502_v22  }
 0x4d5   : > { %4586 = vperm.xlu1 %20586, %v504_v24  }
 0x536   : > { %v4437_v38 = vpop.xlane.xlu0 %4436 }
 0x537   : > { %v4461_v31 = vadd.f32 %v4459_v43, %v4437_v38  ;;  %v4434_v14 = vpop.xlane.xlu1 %4433 }
 0x538   : > { %v4460_v53 = vadd.f32 %v4459_v43, %v4434_v14 }
 0x539   : > { %v15736_v34 = vmul.f32 -1.442695, %v4461_v31 }
 0x53a   : > { %v15735_v39 = vmul.f32 -1.442695, %v4460_v53  ;;  %v4443_v59 = vpop.xlane.xlu0 %4442 }
 0x53b   : > { %20651 = vpow2.f32 %v15736_v34  ;;  %v4463_v37 = vadd.f32 %v4459_v43, %v4443_v59  ;;  %v4440_v41 = vpop.xlane.xlu1 %4439 }
 0x53c   : > { %20653 = vpow2.f32 %v15735_v39  ;;  %v4462_v4 = vadd.f32 %v4459_v43, %v4440_v41 }
 0x53d   : > { %v15738_v2 = vmul.f32 -1.442695, %v4463_v37 }
 0x53e   : > { %v15737_v30 = vmul.f32 -1.442695, %v4462_v4  ;;  %v4449_v13 = vpop.xlane.xlu0 %4448 }
 0x53f   : > { %20655 = vpow2.f32 %v15738_v2  ;;  %v4465_v50 = vadd.f32 %v4459_v43, %v4449_v13  ;;  %v4446_v56 = vpop.xlane.xlu1 %4445 }
 0x540   : > { %20657 = vpow2.f32 %v15737_v30  ;;  %v4464_v0 = vadd.f32 %v4459_v43, %v4446_v56 }
 0x541   : > { %v15740_v27 = vmul.f32 -1.442695, %v4465_v50 }
 0x542   : > { %v15739_v42 = vmul.f32 -1.442695, %v4464_v0  ;;  %v4455_v62 = vpop.xlane.xlu0 %4454 }
 0x543   : > { %20659 = vpow2.f32 %v15740_v27  ;;  %v4467_v29 = vadd.f32 %v4459_v43, %v4455_v62 }
 0x544   : > { %20661 = vpow2.f32 %v15739_v42 }
 0x545   : > { %v20652_v45 = vpop.eup %20651  ;;  %v15742_v32 = vmul.f32 -1.442695, %v4467_v29  ;;  %v4452_v20 = vpop.xlane.xlu1 %4451  ;;  %v507_v29 = vld [vmem:[%s21921_s19 + $0x38] sm:$0xff] }
 0x546   : > { %v20654_v54 = vpop.eup %20653  ;;  %v4493_v51 = vadd.f32 1.0, %v20652_v45  ;;  %v4466_v22 = vadd.f32 %v4459_v43, %v4452_v20  ;;  %v509_v20 = vld [vmem:[%s477_s20 + $0x8] sm:$0xff] }
 0x547   : > { %v4492_v24 = vadd.f32 1.0, %v20654_v54  ;;  %20663 = vpow2.f32 %v15742_v32  ;;  %v506_v32 = vld [vmem:[%s21921_s19 + $0x30] sm:$0xff]  ;;  %v508_v54 = vld [vmem:[%s477_s20] sm:$0xff] }
 0x548   : > { %20665 = vrcp.f32 %v4493_v51  ;;  %v15741_v38 = vmul.f32 -1.442695, %v4466_v22  ;;  %v4614_v51 = vsel %vm4612_vm15, %v20994_v11, 0 }
 0x549   : > { %v20656_v31 = vpop.eup %20655  ;;  %20667 = vrcp.f32 %v4492_v24  ;;  %v21941_v22 = vsub.f32 %v4614_v51, %v4614_v51 }
 0x54a   : > { %v20658_v14 = vpop.eup %20657  ;;  %v4495_v53 = vadd.f32 1.0, %v20656_v31  ;;  %20669 = vpow2.f32 %v15741_v38 }
 0x54b   : > { %v4494_v34 = vadd.f32 1.0, %v20658_v14  ;;  %23606 = vst [vmem:[#allocation77_spill] sm:$0xff] %v21941_v22  ;;  %v21944_v24 = vand.u32 4294901760, %v21941_v22  ;;  %v21951_v14 = vpop.permute.xlu1 %4566 }
 0x54c   : > { %20671 = vrcp.f32 %v4495_v53 }
 0x54d   : > { %v20660_v39 = vpop.eup %20659  ;;  %20673 = vrcp.f32 %v4494_v34  ;;  %23607 = vst [vmem:[#allocation78_spill] sm:$0xff] %v21944_v24  ;;  %v4695_v38 = vsub.f32 %v21941_v22, %v21944_v24  ;;  %v21955_v34 = vpop.permute.xlu0 %4581 }
 0x54e   : > { %v20662_v59 = vpop.eup %20661  ;;  %v4497_v37 = vadd.f32 1.0, %v20660_v39 }
 0x54f   : > { %v4496_v41 = vadd.f32 1.0, %v20662_v59  ;;  %v21948_v31 = vand.u32 4294901760, %v4695_v38  ;;  %v21953_v53 = vpop.permute.xlu1 %4571 }
 0x550   : > { %20675 = vrcp.f32 %v4497_v37 }
 0x551   : > { %v20664_v4 = vpop.eup %20663  ;;  %20677 = vrcp.f32 %v4496_v41  ;;  %23608 = vst [vmem:[#allocation79_spill] sm:$0xff] %v21948_v31  ;;  %17450 = vmatprep.mubr.f32.mxu0 %v21948_v31  ;;  %v21959_v59 = vpop.permute.xlu0 %4591 }
 0x552   : > { %v20666_v43 = vpop.eup %20665  ;;  %v4499_v2 = vadd.f32 1.0, %v20664_v4  ;;  %23610 = vst [vmem:[#allocation81_spill] sm:$0xff] %v21959_v59 }
 0x553   : > { %v20668_v30 = vpop.eup %20667  ;;  %4523 = vperm.xlu0 %20585, %v20666_v43   ;;  %v21957_v39 = vpop.permute.xlu1 %4576 }
 0x554   : > { %v20670_v13 = vpop.eup %20669  ;;  %20679 = vrcp.f32 %v4499_v2  ;;  %4518 = vperm.xlu1 %20586, %v20668_v30   ;;  %23609 = vst [vmem:[#allocation80_spill] sm:$0xff] %v21957_v39 }
 0x555   : > { %v4498_v50 = vadd.f32 1.0, %v20670_v13 }
 0x556   : > { %v20672_v56 = vpop.eup %20671 }
 0x557   : > { %v20674_v0 = vpop.eup %20673  ;;  %20681 = vrcp.f32 %v4498_v50  ;;  %4533 = vperm.xlu0 %20585, %v20672_v56   ;;  %v21961_v37 = vpop.permute.xlu1 %4586 }
 0x558   : > { %4528 = vperm.xlu1 %20586, %v20674_v0   ;;  %23611 = vst [vmem:[#allocation82_spill] sm:$0xff] %v21961_v37 }
 0x55a   : > { %v20676_v27 = vpop.eup %20675 }
 0x55b   : > { %v20678_v42 = vpop.eup %20677  ;;  %4543 = vperm.xlu0 %20585, %v20676_v27  }
 0x55c   : > { %4538 = vperm.xlu1 %20586, %v20678_v42  }
 0x55e   : > { %v20680_v62 = vpop.eup %20679 }
 0x55f   : > { %4553 = vperm.xlu0 %20585, %v20680_v62  }
 0x561   : > { %v20682_v45 = vpop.eup %20681 }
 0x562   : > { %4548 = vperm.xlu1 %20586, %v20682_v45  }
 0x563   : > { %4601 = vperm.xlu0 %20585, %v507_v29  }
 0x566   : > { %4596 = vperm.xlu1 %20586, %v506_v32  }
 0x567   : > { %6845 = vperm.xlu0 %20585, %v509_v20  }
 0x56a   : > { %6840 = vperm.xlu1 %20586, %v508_v54  }
 0x5d2   : > { %v4524_v41 = vpop.permute.xlu0 %4523 }
 0x5d3   : > { %v4557_v4 = vmul.f32 %v4524_v41, %v21883_v25  ;;  %v4519_v43 = vpop.permute.xlu1 %4518 }
 0x5d4   : > { %v4556_v2 = vmul.f32 %v4519_v43, %v21885_v16 }
 0x5d5   : > { %v4605_v30 = vmul.f32 %v21953_v53, %v4557_v4 }
 0x5d6   : > { %v4604_v13 = vmul.f32 %v21951_v14, %v4556_v2  ;;  %v4534_v50 = vpop.permute.xlu0 %4533 }
 0x5d7   : > { %v4623_v56 = vand.u32 4294901760, %v4605_v30  ;;  %v4559_v0 = vmul.f32 %v4534_v50, %v21889_v33  ;;  %v4529_v27 = vpop.permute.xlu1 %4528  ;;  %v4617_v33 = vsel %vm4612_vm15, %v20997_v12, 0 }
 0x5d8   : > { %v4620_v42 = vand.u32 4294901760, %v4604_v13  ;;  %v4558_v62 = vmul.f32 %v4529_v27, %v21892_v57 }
 0x5d9   : > { %v4607_v29 = vmul.f32 %v21955_v34, %v4559_v0  ;;  %v21970_v45 = vsub.f32 %v4605_v30, %v4623_v56 }
 0x5da   : > { %v21972_v25 = vpack.c.bf16 %v4623_v56, %v4620_v42  ;;  %v4606_v16 = vmul.f32 %v21957_v39, %v4558_v62  ;;  %v4544_v32 = vpop.permute.xlu0 %4543  ;;  %v21975_v20 = vsub.f32 %v4604_v13, %v4620_v42  ;;  %v21988_v13 = vsub.f32 %v4617_v33, %v4617_v33 }
 0x5db   : > { %v4629_v54 = vand.u32 4294901760, %v4607_v29  ;;  %v4561_v51 = vmul.f32 %v4544_v32, %v21897_v7  ;;  %v4539_v38 = vpop.permute.xlu1 %4538  ;;  %v23475_v7 = vand.u32 4294901760, %v21970_v45 }
 0x5dc   : > { %v4626_v41 = vand.u32 4294901760, %v4606_v16  ;;  %v4560_v57 = vmul.f32 %v4539_v38, %v21900_v23  ;;  %19133 = vmatprep.subr.bf16.mxu0 %v21972_v25  ;;  %23612 = vst [vmem:[#allocation83_spill] sm:$0xff] %v21988_v13  ;;  %v23476_v0 = vand.u32 4294901760, %v21975_v20 }
 0x5dd   : > { %v4609_v4 = vmul.f32 %v21959_v59, %v4561_v51  ;;  %19135 = vmatpush3.bf16.msra.mxu0 %v21972_v25  ;;  %v21990_v50 = vsub.f32 %v4607_v29, %v4629_v54  ;;  %v4723_v29 = vsub.f32 %v21970_v45, %v23475_v7 }
 0x5de   : > { %v21984_v43 = vpack.c.bf16 %v4629_v54, %v4626_v41  ;;  %v4608_v2 = vmul.f32 %v21961_v37, %v4560_v57  ;;  %v4554_v30 = vpop.permute.xlu0 %4553  ;;  %v21992_v56 = vsub.f32 %v4606_v16, %v4626_v41  ;;  %v22006_v16 = vand.u32 4294901760, %v21988_v13 }
 0x5df   : > { %v4635_v23 = vand.u32 4294901760, %v4609_v4  ;;  %v4563_v42 = vmul.f32 %v4554_v30, %v21905_v44  ;;  %v4716_v44 = vsub.f32 %v21975_v20, %v23476_v0  ;;  %v4724_v33 = vand.u32 4294901760, %v4723_v29 }
 0x5e0   : > { %v4632_v27 = vand.u32 4294901760, %v4608_v2  ;;  %19137 = vmatprep.subr.bf16.mxu0 %v21984_v43  ;;  %23614 = vst [vmem:[#allocation85_spill] sm:$0xff] %v22006_v16  ;;  %v4705_v0 = vsub.f32 %v21988_v13, %v22006_v16 }
 0x5e1   : > { %v4549_v62 = vpop.permute.xlu1 %4548  ;;  %19139 = vmatpush3.bf16.msra.mxu0 %v21984_v43  ;;  %v22014_v41 = vsub.f32 %v4609_v4, %v4635_v23  ;;  %v4717_v38 = vand.u32 4294901760, %v4716_v44  ;;  %v23616_v4 = vand.u32 4294901760, %v21992_v56 }
 0x5e2   : > { %v21998_v32 = vpack.c.bf16 %v4635_v23, %v4632_v27  ;;  %v22000_v51 = vpop.permute.xlu0 %4601  ;;  %v22016_v57 = vsub.f32 %v4608_v2, %v4632_v27  ;;  %v4562_v30 = vmul.f32 %v4549_v62, %v21911_v28  ;;  %v23617_v28 = vand.u32 4294901760, %v21990_v50 }
 0x5e3   : > { %23613 = vst [vmem:[#allocation84_spill] sm:$0xff] %v22000_v51  ;;  %v4611_v54 = vmul.f32 %v22000_v51, %v4563_v42  ;;  %v4730_v2 = vsub.f32 %v21992_v56, %v23616_v4  ;;  %v19148_v29 = vpack.c.bf16 %v4724_v33, %v4717_v38  ;;  %v22040_v44 = vand.u32 4294901760, %v4705_v0 }
 0x5e4   : > { %19141 = vmatprep.subr.bf16.mxu0 %v21998_v32  ;;  %v4737_v23 = vsub.f32 %v21990_v50, %v23617_v28  ;;  %v23486_v51 = vand.u32 4294901760, %v22016_v57 }
 0x5e5   : > { %v4641_v26 = vand.u32 4294901760, %v4611_v54  ;;  %v22020_v7 = vpop.permute.xlu1 %4596  ;;  %19143 = vmatpush3.bf16.msra.mxu0 %v21998_v32  ;;  %23618 = vst [vmem:[#allocation87_spill] sm:$0xff] %v22040_v44  ;;  %v4731_v59 = vand.u32 4294901760, %v4730_v2 }
 0x5e6   : > { %23615 = vst [vmem:[#allocation86_spill] sm:$0xff] %v22020_v7  ;;  %v4610_v42 = vmul.f32 %v22020_v7, %v4562_v30  ;;  %v23485_v30 = vand.u32 4294901760, %v22014_v41  ;;  %v4738_v4 = vand.u32 4294901760, %v4737_v23 }
 0x5e7   : > { %v22032_v27 = vsub.f32 %v4611_v54, %v4641_v26  ;;  %v4744_v54 = vsub.f32 %v22016_v57, %v23486_v51 }
 0x5e8   : > { %v4638_v62 = vand.u32 4294901760, %v4610_v42  ;;  %v4751_v28 = vsub.f32 %v22014_v41, %v23485_v30  ;;  %v19152_v0 = vpack.c.bf16 %v4738_v4, %v4731_v59  ;;  %v19164_v59 = vpack.c.bf16 %v21970_v45, %v21975_v20 }
 0x5e9   : > { %v4745_v38 = vand.u32 4294901760, %v4744_v54  ;;  %v23621_v4 = vand.u32 4294901760, %v21992_v56  ;;  %v23622_v54 = vand.u32 4294901760, %v21990_v50 }
 0x5ea   : > { %v22036_v7 = vpack.c.bf16 %v4641_v26, %v4638_v62  ;;  %v22038_v37 = vsub.f32 %v4610_v42, %v4638_v62  ;;  %v4764_v42 = vand.u32 4294901760, %v22032_v27  ;;  %v4752_v33 = vand.u32 4294901760, %v4751_v28 }
 0x5eb   : > { %v19200_v28 = vpack.c.bf16 %v23622_v54, %v23621_v4 }
 0x5ec   : > { %19145 = vmatprep.subr.bf16.mxu0 %v22036_v7  ;;  %v4757_v26 = vand.u32 4294901760, %v22038_v37  ;;  %v4765_v23 = vsub.f32 %v22032_v27, %v4764_v42  ;;  %v19156_v62 = vpack.c.bf16 %v4752_v33, %v4745_v38 }
 0x5ed   : > { %19147 = vmatpush3.bf16.msra.mxu0 %v22036_v7 }
 0x5ee   : > { %19149 = vmatprep.subr.bf16.mxu0 %v19148_v29  ;;  %v4758_v2 = vsub.f32 %v22038_v37, %v4757_v26  ;;  %v4766_v51 = vand.u32 4294901760, %v4765_v23  ;;  %v19208_v38 = vpack.c.bf16 %v4764_v42, %v4757_v26  ;;  %v15756_v26 = vld [vmem:[%s23401_s8 + $0x98] sm:$0xff] }
 0x5ef   : > { %v5225_v33 = vand.u32 4294901760, %v15756_v26 }
 0x5f0   : > { %17451 = vmatmul.mubr.f32.vlgmr.msra.gmra.mrb[16].mxu0 %v22040_v44  ;;  %v4759_v30 = vand.u32 4294901760, %v4758_v2 }
 0x5f1   : > { %19151 = vmatpush3.bf16.msra.mxu0 %v19148_v29  ;;  %17469 = vmatprep.mubr.msk.f32.mxu0 %vm4612_vm15, %v20994_v11  ;;  %v19168_v29 = vpack.c.bf16 %v21990_v50, %v21992_v56  ;;  %v15754_v50 = vld [vmem:[%s23401_s8 + $0x88] sm:$0xff] }
 0x5f2   : > { %19153 = vmatprep.subr.bf16.mxu0 %v19152_v0  ;;  %v19160_v39 = vpack.c.bf16 %v4766_v51, %v4759_v30  ;;  %v19172_v51 = vpack.c.bf16 %v22014_v41, %v22016_v57  ;;  %v19176_v30 = vpack.c.bf16 %v22032_v27, %v22038_v37  ;;  %v23620_v37 = vand.u32 4294901760, %v21970_v45 }
 0x5f3   : > { %v23624_v45 = vand.u32 4294901760, %v22014_v41  ;;  %v5219_v56 = vand.u32 4294901760, %v15754_v50 }
 0x5f5   : > { %19155 = vmatpush3.bf16.msra.mxu0 %v19152_v0 }
 0x5f6   : > { %19157 = vmatprep.subr.bf16.mxu0 %v19156_v62 }
 0x5f9   : > { %19159 = vmatpush3.bf16.msra.mxu0 %v19156_v62 }
 0x5fa   : > { %19161 = vmatprep.subr.bf16.mxu0 %v19160_v39 }
 0x5fd   : > { %19163 = vmatpush3.bf16.msra.mxu0 %v19160_v39  ;;  %v23619_v39 = vand.u32 4294901760, %v21975_v20  ;;  %v23623_v20 = vand.u32 4294901760, %v22016_v57  ;;  %v5313_v57 = vsub.f32 %v15754_v50, %v5219_v56 }
 0x5fe   : > { %19165 = vmatprep.subr.bf16.mxu0 %v19164_v59 }
 0x5ff   : > { %v19196_v27 = vpack.c.bf16 %v23620_v37, %v23619_v39  ;;  %v19204_v0 = vpack.c.bf16 %v23624_v45, %v23623_v20  ;;  %v5314_v23 = vand.u32 4294901760, %v5313_v57 }
 0x600   : > { %17470 = vmatmul.mubr.msk.f32.vlgmr.msra.gmra.mrb[16].mxu0 %vm4612_vm15, %v20997_v12 }
 0x601   : > { %19167 = vmatpush3.bf16.msra.mxu0 %v19164_v59  ;;  %17488 = vmatprep.mubr.f32.mxu0 %v21941_v22 }
 0x602   : > { %19169 = vmatprep.subr.bf16.mxu0 %v19168_v29 }
 0x605   : > { %19171 = vmatpush3.bf16.msra.mxu0 %v19168_v29  ;;  %v5315_v29 = vsub.f32 %v5313_v57, %v5314_v23 }
 0x606   : > { %19173 = vmatprep.subr.bf16.mxu0 %v19172_v51 }
 0x607   : > { %v5316_v37 = vand.u32 4294901760, %v5315_v29 }
 0x609   : > { %19175 = vmatpush3.bf16.msra.mxu0 %v19172_v51 }
 0x60a   : > { %19177 = vmatprep.subr.bf16.mxu0 %v19176_v30 }
 0x60d   : > { %19179 = vmatpush3.bf16.msra.mxu0 %v19176_v30  ;;  %v5327_v30 = vsub.f32 %v15756_v26, %v5225_v33 }
 0x60e   : > { %19181 = vmatprep.subr.bf16.mxu0 %v21972_v25 }
 0x60f   : > { %v5328_v4 = vand.u32 4294901760, %v5327_v30 }
 0x610   : > { %17489 = vmatmul.mubr.f32.vlgmr.msra.gmra.mrb[16].mxu0 %v21988_v13 }
 0x611   : > { %19183 = vmatpush3.bf16.msra.mxu0 %v21972_v25  ;;  %17507 = vmatprep.mubr.f32.mxu0 %v21944_v24  ;;  %v5329_v20 = vsub.f32 %v5327_v30, %v5328_v4 }
 0x612   : > { %19185 = vmatprep.subr.bf16.mxu0 %v21984_v43 }
 0x615   : > { %19187 = vmatpush3.bf16.msra.mxu0 %v21984_v43 }
 0x616   : > { %19189 = vmatprep.subr.bf16.mxu0 %v21998_v32 }
 0x619   : > { %19191 = vmatpush3.bf16.msra.mxu0 %v21998_v32 }
 0x61a   : > { %19193 = vmatprep.subr.bf16.mxu0 %v22036_v7 }
 0x61d   : > { %19195 = vmatpush3.bf16.msra.mxu0 %v22036_v7 }
 0x61e   : > { %19197 = vmatprep.subr.bf16.mxu0 %v19196_v27 }
 0x620   : > { %17508 = vmatmul.mubr.f32.vlgmr.msra.gmra.mrb[16].mxu0 %v22006_v16 }
 0x621   : > { %19199 = vmatpush3.bf16.msra.mxu0 %v19196_v27  ;;  %17526 = vmatprep.mubr.msk.f32.mxu0 %vm4612_vm15, %v20994_v11 }
 0x622   : > { %19201 = vmatprep.subr.bf16.mxu0 %v19200_v28 }
 0x625   : > { %19203 = vmatpush3.bf16.msra.mxu0 %v19200_v28 }
 0x626   : > { %19205 = vmatprep.subr.bf16.mxu0 %v19204_v0 }
 0x629   : > { %19207 = vmatpush3.bf16.msra.mxu0 %v19204_v0  ;;  %v5330_v0 = vand.u32 4294901760, %v5329_v20 }
 0x62a   : > { %19209 = vmatprep.subr.bf16.mxu0 %v19208_v38 }
 0x62d   : > { %19211 = vmatpush3.bf16.msra.mxu0 %v19208_v38 }
 0x62e   : > { %19213 = vmatprep.subr.bf16.mxu0 %v21972_v25 }
 0x630   : > { %17527 = vmatmul.mubr.msk.f32.vlgmr.msra.gmra.mrb[16].mxu0 %vm4612_vm15, %v20997_v12 }
 0x631   : > { %19215 = vmatpush3.bf16.msra.mxu0 %v21972_v25  ;;  %17545 = vmatprep.mubr.msk.f32.mxu0 %vm4612_vm15, %v20994_v11  ;;  %v15753_v25 = vld [vmem:[%s23401_s8 + $0x80] sm:$0xff] }
 0x632   : > { %19217 = vmatprep.subr.bf16.mxu0 %v21984_v43 }
 0x635   : > { %19219 = vmatpush3.bf16.msra.mxu0 %v21984_v43  ;;  %v5216_v43 = vand.u32 4294901760, %v15753_v25 }
 0x636   : > { %19221 = vmatprep.subr.bf16.mxu0 %v21998_v32 }
 0x637   : > { %v22113_v41 = vpack.c.bf16 %v5219_v56, %v5216_v43 }
 0x639   : > { %19223 = vmatpush3.bf16.msra.mxu0 %v21998_v32  ;;  %v5306_v32 = vsub.f32 %v15753_v25, %v5216_v43  ;;  %19229 = vmatprep.subr.bf16.mxu1 %v22113_v41 }
 0x63a   : > { %19225 = vmatprep.subr.bf16.mxu0 %v22036_v7  ;;  %19231 = vmatpush3.bf16.msra.mxu1 %v22113_v41 }
 0x63b   : > { %v5307_v2 = vand.u32 4294901760, %v5306_v32  ;;  %v19244_v25 = vpack.c.bf16 %v5313_v57, %v5306_v32 }
 0x63d   : > { %19227 = vmatpush3.bf16.msra.mxu0 %v22036_v7  ;;  %v15755_v7 = vld [vmem:[%s23401_s8 + $0x90] sm:$0xff]  ;;  %v5308_v59 = vsub.f32 %v5306_v32, %v5307_v2  ;;  %v19260_v43 = vpack.c.bf16 %v5314_v23, %v5307_v2  ;;  %v15749_v2 = vld [vmem:[%s23401_s8 + $0x60] sm:$0xff]  ;;  %v15750_v23 = vld [vmem:[%s23401_s8 + $0x68] sm:$0xff] }
 0x63e   : > { %v5222_v42 = vand.u32 4294901760, %v15755_v7 }
 0x63f   : > { %v5309_v39 = vand.u32 4294901760, %v5308_v59 }
 0x640   : > { %17546 = vmatmul.mubr.msk.f32.vlgmr.msra.gmra.mrb[16].mxu0 %vm4612_vm15, %v20997_v12  ;;  %v22123_v62 = vpack.c.bf16 %v5225_v33, %v5222_v42  ;;  %v5320_v51 = vsub.f32 %v15755_v7, %v5222_v42 }
 0x641   : > { %v19236_v54 = vpack.c.bf16 %v5316_v37, %v5309_v39 }
 0x642   : > { %19233 = vmatprep.subr.bf16.mxu1 %v22123_v62  ;;  %v5321_v27 = vand.u32 4294901760, %v5320_v51  ;;  %v19248_v50 = vpack.c.bf16 %v5327_v30, %v5320_v51  ;;  %v5747_v30 = vand.u32 4294901760, %v15750_v23 }
 0x643   : > { %19235 = vmatpush3.bf16.msra.mxu1 %v22123_v62 }
 0x644   : > { %v5322_v28 = vsub.f32 %v5320_v51, %v5321_v27  ;;  %19237 = vmatprep.subr.bf16.mxu1 %v19236_v54  ;;  %v19264_v56 = vpack.c.bf16 %v5328_v4, %v5321_v27  ;;  %v5744_v51 = vand.u32 4294901760, %v15749_v2  ;;  %v15751_v27 = vld [vmem:[%s23401_s8 + $0x70] sm:$0xff]  ;;  %v15752_v4 = vld [vmem:[%s23401_s8 + $0x78] sm:$0xff] }
 0x646   : > { %v5323_v45 = vand.u32 4294901760, %v5322_v28 }
 0x648   : > { %v19240_v38 = vpack.c.bf16 %v5330_v0, %v5323_v45  ;;  %v5753_v0 = vand.u32 4294901760, %v15752_v4 }
 0x713   : > { %v17547_v7 = vpop.f32.mrb[16].mxu0 }
 0x714   : > { %v5213_v26 = vsel %vm1500_vm13, %v17547_v7, 0  ;;  %v5189_v42 = vpop.f32.mrb[17].mxu0 }
 0x715   : > { %v22128_v33 = vand.u32 4294901760, %v5213_v26  ;;  %v5210_v59 = vsel %vm1500_vm13, %v5189_v42, 0  ;;  %v5855_v42 = vsub.f32 %v15752_v4, %v5753_v0 }
 0x716   : > { %v5284_v29 = vand.u32 4294901760, %v5210_v59 }
 0x717   : > { %v5295_v39 = vsub.f32 %v5213_v26, %v22128_v33 }
 0x718   : > { %v5285_v37 = vsub.f32 %v5210_v59, %v5284_v29 }
 0x719   : > { %v5296_v16 = vand.u32 4294901760, %v5295_v39 }
 0x71a   : > { %v5286_v28 = vand.u32 4294901760, %v5285_v37 }
 0x71b   : > { %v5297_v20 = vsub.f32 %v5295_v39, %v5296_v16 }
 0x71c   : > { %v5287_v45 = vsub.f32 %v5285_v37, %v5286_v28 }
 0x71d   : > { %v5298_v57 = vand.u32 4294901760, %v5297_v20 }
 0x71e   : > { %v5288_v32 = vand.u32 4294901760, %v5287_v45 }
 0x720   : > { %17556 = vmatprep.mubr.f32.mxu1 %v5288_v32 }
 0x721   : > { %17557 = vmatmul.mubr.f32.vlgmr.msra.gmra.mrb[20].mxu1 %v5298_v57 }
 0x722   : > { %19239 = vmatpush3.bf16.msra.mxu1 %v19236_v54  ;;  %17567 = vmatprep.mubr.f32.mxu1 %v5284_v29  ;;  %v5750_v54 = vand.u32 4294901760, %v15751_v27 }
 0x723   : > { %19241 = vmatprep.subr.bf16.mxu1 %v19240_v38 }
 0x724   : > { %v5848_v26 = vsub.f32 %v15751_v27, %v5750_v54 }
 0x726   : > { %19243 = vmatpush3.bf16.msra.mxu1 %v19240_v38  ;;  %v5834_v38 = vsub.f32 %v15749_v2, %v5744_v51 }
 0x727   : > { %19245 = vmatprep.subr.bf16.mxu1 %v19244_v25 }
 0x729   : > { %17568 = vmatmul.mubr.f32.vlgmr.msra.gmra.mrb[20].mxu1 %v22128_v33 }
 0x72a   : > { %19247 = vmatpush3.bf16.msra.mxu1 %v19244_v25  ;;  %17578 = vmatprep.mubr.f32.mxu1 %v5285_v37  ;;  %v5841_v25 = vsub.f32 %v15750_v23, %v5747_v30  ;;  %v5856_v37 = vand.u32 4294901760, %v5855_v42 }
 0x72b   : > { %19249 = vmatprep.subr.bf16.mxu1 %v19248_v50 }
 0x72c   : > { %v5842_v7 = vand.u32 4294901760, %v5841_v25  ;;  %v5857_v32 = vsub.f32 %v5855_v42, %v5856_v37 }
 0x72e   : > { %19251 = vmatpush3.bf16.msra.mxu1 %v19248_v50  ;;  %v5835_v50 = vand.u32 4294901760, %v5834_v38  ;;  %v5843_v59 = vsub.f32 %v5841_v25, %v5842_v7  ;;  %v5858_v57 = vand.u32 4294901760, %v5857_v32 }
 0x72f   : > { %19253 = vmatprep.subr.bf16.mxu1 %v22113_v41 }
 0x730   : > { %v5844_v20 = vand.u32 4294901760, %v5843_v59 }
 0x731   : > { %17579 = vmatmul.mubr.f32.vlgmr.msra.gmra.mrb[20].mxu1 %v5295_v39  ;;  %v5849_v39 = vand.u32 4294901760, %v5848_v26 }
 0x732   : > { %19255 = vmatpush3.bf16.msra.mxu1 %v22113_v41  ;;  %17589 = vmatprep.mubr.f32.mxu1 %v5286_v28 }
 0x733   : > { %19257 = vmatprep.subr.bf16.mxu1 %v22123_v62  ;;  %v5850_v45 = vsub.f32 %v5848_v26, %v5849_v39 }
 0x736   : > { %19259 = vmatpush3.bf16.msra.mxu1 %v22123_v62 }
 0x737   : > { %19261 = vmatprep.subr.bf16.mxu1 %v19260_v43 }
 0x739   : > { %17590 = vmatmul.mubr.f32.vlgmr.msra.gmra.mrb[20].mxu1 %v5296_v16  ;;  %v19276_v16 = vpack.c.bf16 %v5747_v30, %v5744_v51 }
 0x73a   : > { %19263 = vmatpush3.bf16.msra.mxu1 %v19260_v43  ;;  %17600 = vmatprep.mubr.f32.mxu1 %v5284_v29  ;;  %v5836_v43 = vsub.f32 %v5834_v38, %v5835_v50 }
 0x73b   : > { %19265 = vmatprep.subr.bf16.mxu1 %v19264_v56 }
 0x73c   : > { %v5837_v28 = vand.u32 4294901760, %v5836_v43 }
 0x73e   : > { %19267 = vmatpush3.bf16.msra.mxu1 %v19264_v56  ;;  %v19280_v56 = vpack.c.bf16 %v5753_v0, %v5750_v54 }
 0x73f   : > { %19269 = vmatprep.subr.bf16.mxu1 %v22113_v41 }
 0x741   : > { %17601 = vmatmul.mubr.f32.vlgmr.msra.gmra.mrb[20].mxu1 %v22128_v33 }
 0x742   : > { %19271 = vmatpush3.bf16.msra.mxu1 %v22113_v41  ;;  %17611 = vmatprep.mubr.f32.mxu1 %v5284_v29  ;;  %v19284_v41 = vpack.c.bf16 %v5844_v20, %v5837_v28  ;;  %v5851_v29 = vand.u32 4294901760, %v5850_v45 }
 0x743   : > { %19273 = vmatprep.subr.bf16.mxu1 %v22123_v62 }
 0x744   : > { %v19288_v2 = vpack.c.bf16 %v5858_v57, %v5851_v29 }
 0x746   : > { %19275 = vmatpush3.bf16.msra.mxu1 %v22123_v62  ;;  %v19292_v62 = vpack.c.bf16 %v5841_v25, %v5834_v38 }
 0x747   : > { %19277 = vmatprep.subr.bf16.mxu1 %v19276_v16 }
 0x749   : > { %17612 = vmatmul.mubr.f32.vlgmr.msra.gmra.mrb[20].mxu1 %v22128_v33  ;;  %v19296_v33 = vpack.c.bf16 %v5855_v42, %v5848_v26 }
 0x74a   : > { %19279 = vmatpush3.bf16.msra.mxu1 %v19276_v16  ;;  %17622 = vmatprep.mubr.f32.mxu1 %v21211_v18  ;;  %v19308_v18 = vpack.c.bf16 %v5842_v7, %v5835_v50 }
 0x74b   : > { %19281 = vmatprep.subr.bf16.mxu1 %v19280_v56 }
 0x74e   : > { %19283 = vmatpush3.bf16.msra.mxu1 %v19280_v56 }
 0x74f   : > { %19285 = vmatprep.subr.bf16.mxu1 %v19284_v41 }
 0x751   : > { %17623 = vmatmul.mubr.f32.vlgmr.msra.gmra.mrb[20].mxu1 %v21217_v21  ;;  %v19312_v21 = vpack.c.bf16 %v5856_v37, %v5849_v39 }
 0x752   : > { %19287 = vmatpush3.bf16.msra.mxu1 %v19284_v41  ;;  %17633 = vmatprep.mubr.f32.mxu1 %v21154_v63 }
 0x753   : > { %19289 = vmatprep.subr.bf16.mxu1 %v19288_v2 }
 0x756   : > { %19291 = vmatpush3.bf16.msra.mxu1 %v19288_v2  ;;  %v23491_v2 = vsub.s32 5, %v20975_v1 }
 0x757   : > { %19293 = vmatprep.subr.bf16.mxu1 %v19292_v62 }
 0x759   : > { %17634 = vmatmul.mubr.f32.vlgmr.msra.gmra.mrb[20].mxu1 %v21167_v40 }
 0x75a   : > { %19295 = vmatpush3.bf16.msra.mxu1 %v19292_v62  ;;  %17644 = vmatprep.mubr.f32.mxu1 %v21174_v48  ;;  %v15759_v48 = vld [vmem:[%s23401_s8 + $0xa0] sm:$0xff] }
 0x75b   : > { %19297 = vmatprep.subr.bf16.mxu1 %v19296_v33  ;;  %v22191_v62 = vld [vmem:[%s23402_s9] sm:$0xff] }
 0x75e   : > { %19299 = vmatpush3.bf16.msra.mxu1 %v19296_v33  ;;  %v6274_v33 = vrot.slane %v22191_v62, %v23491_v2 }
 0x75f   : > { %19301 = vmatprep.subr.bf16.mxu1 %v19276_v16 }
 0x761   : > { %17645 = vmatmul.mubr.f32.vlgmr.msra.gmra.mrb[20].mxu1 %v21186_v8  ;;  %v15760_v8 = vld [vmem:[%s23401_s8 + $0xa8] sm:$0xff] }
 0x762   : > { %19303 = vmatpush3.bf16.msra.mxu1 %v19276_v16  ;;  %17655 = vmatprep.mubr.f32.mxu1 %v21191_v60  ;;  %v6303_v60 = vand.u32 4294901760, %v15759_v48 }
 0x763   : > { %19305 = vmatprep.subr.bf16.mxu1 %v19280_v56 }
 0x764   : > { %v6393_v51 = vsub.f32 %v15759_v48, %v6303_v60 }
 0x766   : > { %19307 = vmatpush3.bf16.msra.mxu1 %v19280_v56  ;;  %v6394_v54 = vand.u32 4294901760, %v6393_v51 }
 0x767   : > { %19309 = vmatprep.subr.bf16.mxu1 %v19308_v18 }
 0x768   : > { %v6395_v25 = vsub.f32 %v6393_v51, %v6394_v54 }
 0x769   : > { %17656 = vmatmul.mubr.f32.vlgmr.msra.gmra.mrb[20].mxu1 %v21198_v10  ;;  %v6306_v10 = vand.u32 4294901760, %v15760_v8 }
 0x76a   : > { %19311 = vmatpush3.bf16.msra.mxu1 %v19308_v18  ;;  %17666 = vmatprep.mubr.f32.mxu1 %v21154_v63  ;;  %v6396_v42 = vand.u32 4294901760, %v6395_v25 }
 0x76b   : > { %19313 = vmatprep.subr.bf16.mxu1 %v19312_v21  ;;  %v22173_v23 = vpack.c.bf16 %v6306_v10, %v6303_v60  ;;  %v6400_v30 = vsub.f32 %v15760_v8, %v6306_v10 }
 0x76d   : > { %19325 = vmatprep.subr.bf16.mxu0 %v22173_v23  ;;  %v6401_v0 = vand.u32 4294901760, %v6400_v30  ;;  %v19340_v32 = vpack.c.bf16 %v6400_v30, %v6393_v51 }
 0x76e   : > { %19315 = vmatpush3.bf16.msra.mxu1 %v19312_v21  ;;  %19327 = vmatpush3.bf16.msra.mxu0 %v22173_v23 }
 0x76f   : > { %19317 = vmatprep.subr.bf16.mxu1 %v19276_v16  ;;  %v6402_v50 = vsub.f32 %v6400_v30, %v6401_v0  ;;  %v19356_v29 = vpack.c.bf16 %v6401_v0, %v6394_v54 }
 0x771   : > { %17667 = vmatmul.mubr.f32.vlgmr.msra.gmra.mrb[20].mxu1 %v21167_v40 }
 0x772   : > { %19319 = vmatpush3.bf16.msra.mxu1 %v19276_v16  ;;  %17677 = vmatprep.mubr.f32.mxu1 %v21154_v63  ;;  %v15761_v63 = vld [vmem:[%s23401_s8 + $0xb0] sm:$0xff]  ;;  %v6403_v16 = vand.u32 4294901760, %v6402_v50 }
 0x773   : > { %19321 = vmatprep.subr.bf16.mxu1 %v19280_v56  ;;  %v6309_v27 = vand.u32 4294901760, %v15761_v63 }
 0x774   : > { %v19332_v39 = vpack.c.bf16 %v6403_v16, %v6396_v42 }
 0x775   : > { %v6407_v7 = vsub.f32 %v15761_v63, %v6309_v27 }
 0x776   : > { %19323 = vmatpush3.bf16.msra.mxu1 %v19280_v56 }
 0x777   : > { %v6408_v43 = vand.u32 4294901760, %v6407_v7 }
 0x779   : > { %17678 = vmatmul.mubr.f32.vlgmr.msra.gmra.mrb[20].mxu1 %v21167_v40  ;;  %v15762_v40 = vld [vmem:[%s23401_s8 + $0xb8] sm:$0xff]  ;;  %v6409_v37 = vsub.f32 %v6407_v7, %v6408_v43 }
 0x77a   : > { %v6312_v4 = vand.u32 4294901760, %v15762_v40 }
 0x77b   : > { %v6410_v28 = vand.u32 4294901760, %v6409_v37 }
 0x77c   : > { %v22183_v38 = vpack.c.bf16 %v6312_v4, %v6309_v27  ;;  %v6414_v26 = vsub.f32 %v15762_v40, %v6312_v4 }
 0x77e   : > { %19329 = vmatprep.subr.bf16.mxu0 %v22183_v38  ;;  %v6415_v59 = vand.u32 4294901760, %v6414_v26  ;;  %v19344_v41 = vpack.c.bf16 %v6414_v26, %v6407_v7 }
 0x77f   : > { %19331 = vmatpush3.bf16.msra.mxu0 %v22183_v38 }
 0x780   : > { %v6416_v56 = vsub.f32 %v6414_v26, %v6415_v59  ;;  %19333 = vmatprep.subr.bf16.mxu0 %v19332_v39  ;;  %v19360_v57 = vpack.c.bf16 %v6415_v59, %v6408_v43 }
 0x782   : > { %v6417_v20 = vand.u32 4294901760, %v6416_v56 }
 0x784   : > { %v19336_v45 = vpack.c.bf16 %v6417_v20, %v6410_v28 }
 0x84c   : > { %v17679_v18 = vpop.f32.mrb[20].mxu1 }
 0x84d   : > { %v6276_v21 = vadd.f32 %v17679_v18, %v6274_v33  ;;  %v6261_v48 = vpop.f32.mrb[21].mxu1  ;;  %v15765_v18 = vld [vmem:[%s23401_s8 + $0xd0] sm:$0xff] }
 0x84e   : > { %v6275_v8 = vadd.f32 %v6274_v33, %v6261_v48  ;;  %v15769_v48 = vld [vmem:[%s23401_s8 + $0xf0] sm:$0xff] }
 0x84f   : > { %v15758_v60 = vmul.f32 -1.442695, %v6276_v21 }
 0x850   : > { %v15757_v10 = vmul.f32 -1.442695, %v6275_v8 }
 0x851   : > { %20683 = vpow2.f32 %v15758_v60 }
 0x852   : > { %20685 = vpow2.f32 %v15757_v10 }
 0x85b   : > { %v20684_v63 = vpop.eup %20683 }
 0x85c   : > { %v20686_v40 = vpop.eup %20685  ;;  %v6284_v51 = vadd.f32 1.0, %v20684_v63 }
 0x85d   : > { %v6283_v30 = vadd.f32 1.0, %v20686_v40  ;;  %v6873_v40 = vand.u32 4294901760, %v15765_v18 }
 0x85e   : > { %20687 = vrcp.f32 %v6284_v51 }
 0x85f   : > { %20689 = vrcp.f32 %v6283_v30  ;;  %v15770_v30 = vld [vmem:[%s23401_s8 + $0xf8] sm:$0xff] }
 0x868   : > { %v20688_v27 = vpop.eup %20687 }
 0x869   : > { %v20690_v4 = vpop.eup %20689  ;;  %v6290_v54 = vmul.f32 %v20688_v27, %v6276_v21  ;;  %v15766_v21 = vld [vmem:[%s23401_s8 + $0xd8] sm:$0xff]  ;;  %v7401_v27 = vand.u32 4294901760, %v15769_v48 }
 0x86a   : > { %v6289_v0 = vmul.f32 %v20690_v4, %v6275_v8  ;;  %v6876_v51 = vand.u32 4294901760, %v15766_v21  ;;  %v7404_v4 = vand.u32 4294901760, %v15770_v30 }
 0x86b   : > { %v6300_v25 = vsel %vm1500_vm13, %v6290_v54, 0 }
 0x86c   : > { %v6381_v50 = vand.u32 4294901760, %v6300_v25  ;;  %v6297_v7 = vsel %vm1500_vm13, %v6289_v0, 0 }
 0x86d   : > { %v6371_v26 = vand.u32 4294901760, %v6297_v7 }
 0x86e   : > { %v6382_v42 = vsub.f32 %v6300_v25, %v6381_v50 }
 0x86f   : > { %v6372_v16 = vsub.f32 %v6297_v7, %v6371_v26 }
 0x870   : > { %v6383_v43 = vand.u32 4294901760, %v6382_v42 }
 0x871   : > { %v6373_v59 = vand.u32 4294901760, %v6372_v16 }
 0x872   : > { %v6384_v37 = vsub.f32 %v6382_v42, %v6383_v43 }
 0x873   : > { %v6374_v56 = vsub.f32 %v6372_v16, %v6373_v59 }
 0x874   : > { %v6385_v20 = vand.u32 4294901760, %v6384_v37  ;;  %v6971_v37 = vsub.f32 %v15765_v18, %v6873_v40 }
 0x875   : > { %v6375_v28 = vand.u32 4294901760, %v6374_v56  ;;  %v6978_v56 = vsub.f32 %v15766_v21, %v6876_v51 }
 0x877   : > { %17688 = vmatprep.mubr.f32.mxu0 %v6375_v28  ;;  %v7499_v28 = vsub.f32 %v15769_v48, %v7401_v27 }
 0x878   : > { %17689 = vmatmul.mubr.f32.vlgmr.msra.gmra.mrb[18].mxu0 %v6385_v20 }
 0x879   : > { %19335 = vmatpush3.bf16.msra.mxu0 %v19332_v39  ;;  %17699 = vmatprep.mubr.f32.mxu0 %v6371_v26  ;;  %v15763_v39 = vld [vmem:[%s23401_s8 + $0xc0] sm:$0xff] }
 0x87a   : > { %19337 = vmatprep.subr.bf16.mxu0 %v19336_v45 }
 0x87d   : > { %19339 = vmatpush3.bf16.msra.mxu0 %v19336_v45  ;;  %v15764_v45 = vld [vmem:[%s23401_s8 + $0xc8] sm:$0xff] }
 0x87e   : > { %19341 = vmatprep.subr.bf16.mxu0 %v19340_v32 }
 0x880   : > { %17700 = vmatmul.mubr.f32.vlgmr.msra.gmra.mrb[18].mxu0 %v6381_v50 }
 0x881   : > { %19343 = vmatpush3.bf16.msra.mxu0 %v19340_v32  ;;  %17710 = vmatprep.mubr.f32.mxu0 %v6372_v16  ;;  %v15767_v32 = vld [vmem:[%s23401_s8 + $0xe0] sm:$0xff] }
 0x882   : > { %19345 = vmatprep.subr.bf16.mxu0 %v19344_v41 }
 0x885   : > { %19347 = vmatpush3.bf16.msra.mxu0 %v19344_v41  ;;  %v6867_v41 = vand.u32 4294901760, %v15763_v39 }
 0x886   : > { %19349 = vmatprep.subr.bf16.mxu0 %v22173_v23 }
 0x887   : > { %v6957_v8 = vsub.f32 %v15763_v39, %v6867_v41 }
 0x888   : > { %17711 = vmatmul.mubr.f32.vlgmr.msra.gmra.mrb[18].mxu0 %v6382_v42 }
 0x889   : > { %19351 = vmatpush3.bf16.msra.mxu0 %v22173_v23  ;;  %17721 = vmatprep.mubr.f32.mxu0 %v6373_v59  ;;  %v6958_v54 = vand.u32 4294901760, %v6957_v8 }
 0x88a   : > { %19353 = vmatprep.subr.bf16.mxu0 %v22183_v38 }
 0x88b   : > { %v6959_v42 = vsub.f32 %v6957_v8, %v6958_v54 }
 0x88d   : > { %19355 = vmatpush3.bf16.msra.mxu0 %v22183_v38  ;;  %v6960_v20 = vand.u32 4294901760, %v6959_v42 }
 0x88e   : > { %19357 = vmatprep.subr.bf16.mxu0 %v19356_v29 }
 0x890   : > { %17722 = vmatmul.mubr.f32.vlgmr.msra.gmra.mrb[18].mxu0 %v6383_v43 }
 0x891   : > { %19359 = vmatpush3.bf16.msra.mxu0 %v19356_v29  ;;  %17732 = vmatprep.mubr.f32.mxu0 %v6371_v26  ;;  %v15768_v29 = vld [vmem:[%s23401_s8 + $0xe8] sm:$0xff] }
 0x892   : > { %19361 = vmatprep.subr.bf16.mxu0 %v19360_v57 }
 0x895   : > { %19363 = vmatpush3.bf16.msra.mxu0 %v19360_v57  ;;  %v7398_v57 = vand.u32 4294901760, %v15768_v29 }
 0x896   : > { %19365 = vmatprep.subr.bf16.mxu0 %v22173_v23 }
 0x897   : > { %v7492_v7 = vsub.f32 %v15768_v29, %v7398_v57  ;;  %v6979_v29 = vand.u32 4294901760, %v6978_v56 }
 0x898   : > { %17733 = vmatmul.mubr.f32.vlgmr.msra.gmra.mrb[18].mxu0 %v6381_v50 }
 0x899   : > { %19367 = vmatpush3.bf16.msra.mxu0 %v22173_v23  ;;  %17743 = vmatprep.mubr.f32.mxu0 %v6371_v26  ;;  %v6870_v23 = vand.u32 4294901760, %v15764_v45  ;;  %v22240_v26 = vpack.c.bf16 %v7404_v4, %v7401_v27  ;;  %v7493_v59 = vand.u32 4294901760, %v7492_v7  ;;  %v6980_v21 = vsub.f32 %v6978_v56, %v6979_v29 }
 0x89a   : > { %19369 = vmatprep.subr.bf16.mxu0 %v22183_v38 }
 0x89b   : > { %v22218_v33 = vpack.c.bf16 %v6870_v23, %v6867_v41  ;;  %v6964_v60 = vsub.f32 %v15764_v45, %v6870_v23  ;;  %v7494_v41 = vsub.f32 %v7492_v7, %v7493_v59  ;;  %v6972_v23 = vand.u32 4294901760, %v6971_v37 }
 0x89c   : > { %v6981_v42 = vand.u32 4294901760, %v6980_v21 }
 0x89d   : > { %19371 = vmatpush3.bf16.msra.mxu0 %v22183_v38  ;;  %v7395_v38 = vand.u32 4294901760, %v15767_v32  ;;  %19373 = vmatprep.subr.bf16.mxu1 %v22218_v33  ;;  %v6965_v0 = vand.u32 4294901760, %v6964_v60  ;;  %v7495_v24 = vand.u32 4294901760, %v7494_v41  ;;  %v6973_v18 = vsub.f32 %v6971_v37, %v6972_v23 }
 0x89e   : > { %19375 = vmatpush3.bf16.msra.mxu1 %v22218_v33  ;;  %v19388_v13 = vpack.c.bf16 %v6964_v60, %v6957_v8  ;;  %v22250_v11 = vpack.c.bf16 %v6979_v29, %v6972_v23 }
 0x89f   : > { %v7485_v10 = vsub.f32 %v15767_v32, %v7395_v38  ;;  %v22229_v63 = vpack.c.bf16 %v7398_v57, %v7395_v38  ;;  %v6966_v16 = vsub.f32 %v6964_v60, %v6965_v0  ;;  %v7506_v32 = vsub.f32 %v15770_v30, %v7404_v4 }
 0x8a0   : > { %17744 = vmatmul.mubr.f32.vlgmr.msra.gmra.mrb[18].mxu0 %v6381_v50  ;;  %v22237_v50 = vpack.c.bf16 %v6876_v51, %v6873_v40  ;;  %v7500_v38 = vand.u32 4294901760, %v7499_v28  ;;  %v6974_v27 = vand.u32 4294901760, %v6973_v18  ;;  %v22246_v41 = vpack.c.bf16 %v6965_v0, %v6958_v54  ;;  %v22260_v0 = vpop.permute.xlu0 %6845 }
 0x8a1   : > { %v7486_v25 = vand.u32 4294901760, %v7485_v10  ;;  %19421 = vmatprep.subr.bf16.mxu0 %v22229_v63  ;;  %v6967_v39 = vand.u32 4294901760, %v6966_v16  ;;  %v7507_v2 = vand.u32 4294901760, %v7506_v32  ;;  %v19436_v22 = vpack.c.bf16 %v7492_v7, %v7485_v10 }
 0x8a2   : > { %19423 = vmatpush3.bf16.msra.mxu0 %v22229_v63  ;;  %19377 = vmatprep.subr.bf16.mxu1 %v22237_v50  ;;  %v7501_v48 = vsub.f32 %v7499_v28, %v7500_v38  ;;  %v19384_v16 = vpack.c.bf16 %v6981_v42, %v6974_v27 }
 0x8a3   : > { %v7487_v43 = vsub.f32 %v7485_v10, %v7486_v25  ;;  %19425 = vmatprep.subr.bf16.mxu0 %v22240_v26  ;;  %19379 = vmatpush3.bf16.msra.mxu1 %v22237_v50  ;;  %v19380_v57 = vpack.c.bf16 %v6967_v39, %v6960_v20  ;;  %v7508_v40 = vsub.f32 %v7506_v32, %v7507_v2  ;;  %v20893_v10 = vld [vmem:[%s21121_s17] sm:$0xff] }
 0x8a4   : > { %v7502_v30 = vand.u32 4294901760, %v7501_v48  ;;  %v19392_v20 = vpack.c.bf16 %v6978_v56, %v6971_v37  ;;  %v19440_v39 = vpack.c.bf16 %v7506_v32, %v7499_v28  ;;  %v22248_v12 = vpack.c.bf16 %v7493_v59, %v7486_v25  ;;  %v20892_v48 = vld [vmem:[%s21121_s17 + $0x8] sm:$0xff]  ;;  %v22262_v59 = vpop.permute.xlu1 %6840  ;;  %s487_s17 = scalar_lea.vmem %s23403_s10, %s21000_s21 }
 0x8a5   : > { %v7488_v45 = vand.u32 4294901760, %v7487_v43  ;;  %19381 = vmatprep.subr.bf16.mxu1 %v19380_v57  ;;  %v7509_v4 = vand.u32 4294901760, %v7508_v40 }
 0x8a6   : > { %19427 = vmatpush3.bf16.msra.mxu0 %v22240_v26 }
 0x8a7   : > { %v19428_v51 = vpack.c.bf16 %v7495_v24, %v7488_v45  ;;  %v19432_v43 = vpack.c.bf16 %v7509_v4, %v7502_v30  ;;  %v22252_v24 = vpack.c.bf16 %v7507_v2, %v7500_v38  ;;  %v23502_v45 = vsub.s32 6, %v20975_v1 }
 0x8a9   : > { %19429 = vmatprep.subr.bf16.mxu0 %v19428_v51  ;;  %v6835_v18 = vrot.slane %v22191_v62, %v23502_v45 }
 0x973   : > { %v17745_v21 = vpop.f32.mrb[18].mxu0 }
 0x974   : > { %v6831_v8 = vadd.f32 %v20892_v48, %v17745_v21  ;;  %v6820_v60 = vpop.f32.mrb[19].mxu0 }
 0x975   : > { %v6830_v7 = vadd.f32 %v20893_v10, %v6820_v60 }
 0x976   : > { %v6837_v54 = vadd.f32 %v6835_v18, %v6831_v8 }
 0x977   : > { %v6836_v25 = vadd.f32 %v6835_v18, %v6830_v7 }
 0x978   : > { %v22265_v2 = vmul.f32 %v22260_v0, %v6837_v54 }
 0x979   : > { %v22268_v37 = vmul.f32 %v22262_v59, %v6836_v25 }
 0x97a   : > { %v6864_v62 = vsel %vm1500_vm13, %v22265_v2, 0 }
 0x97b   : > { %v22272_v56 = vand.u32 4294901760, %v6864_v62  ;;  %v6861_v28 = vsel %vm1500_vm13, %v22268_v37, 0 }
 0x97c   : > { %v22276_v32 = vand.u32 4294901760, %v6861_v28 }
 0x97d   : > { %v22279_v23 = vsub.f32 %v6864_v62, %v22272_v56 }
 0x97e   : > { %v22282_v29 = vsub.f32 %v6861_v28, %v22276_v32 }
 0x97f   : > { %v22285_v38 = vand.u32 4294901760, %v22279_v23 }
 0x980   : > { %v22288_v40 = vand.u32 4294901760, %v22282_v29 }
 0x981   : > { %v6948_v27 = vsub.f32 %v22279_v23, %v22285_v38 }
 0x982   : > { %v6938_v42 = vsub.f32 %v22282_v29, %v22288_v40 }
 0x983   : > { %v22296_v4 = vand.u32 4294901760, %v6948_v27 }
 0x984   : > { %v22294_v30 = vand.u32 4294901760, %v6938_v42 }
 0x986   : > { %17754 = vmatprep.mubr.f32.mxu1 %v22294_v30  ;;  %17820 = vmatprep.mubr.f32.mxu0 %v22294_v30 }
 0x987   : > { %17755 = vmatmul.mubr.f32.vlgmr.msra.gmra.mrb[22].mxu1 %v22296_v4  ;;  %17821 = vmatmul.mubr.f32.vlgmr.msra.gmra.mrb[20].mxu0 %v22296_v4 }
 0x988   : > { %19383 = vmatpush3.bf16.msra.mxu1 %v19380_v57  ;;  %17765 = vmatprep.mubr.f32.mxu1 %v22276_v32 }
 0x989   : > { %19431 = vmatpush3.bf16.msra.mxu0 %v19428_v51  ;;  %17831 = vmatprep.mubr.f32.mxu0 %v22276_v32 }
 0x98a   : > { %19385 = vmatprep.subr.bf16.mxu1 %v19384_v16  ;;  %19433 = vmatprep.subr.bf16.mxu0 %v19432_v43 }
 0x98c   : > { %19387 = vmatpush3.bf16.msra.mxu1 %v19384_v16 }
 0x98d   : > { %19435 = vmatpush3.bf16.msra.mxu0 %v19432_v43  ;;  %19389 = vmatprep.subr.bf16.mxu1 %v19388_v13 }
 0x98e   : > { %19437 = vmatprep.subr.bf16.mxu0 %v19436_v22 }
 0x98f   : > { %17766 = vmatmul.mubr.f32.vlgmr.msra.gmra.mrb[22].mxu1 %v22272_v56 }
 0x990   : > { %17832 = vmatmul.mubr.f32.vlgmr.msra.gmra.mrb[20].mxu0 %v22272_v56  ;;  %19391 = vmatpush3.bf16.msra.mxu1 %v19388_v13 }
 0x991   : > { %17776 = vmatprep.mubr.f32.mxu1 %v22282_v29  ;;  %19439 = vmatpush3.bf16.msra.mxu0 %v19436_v22 }
 0x992   : > { %17842 = vmatprep.mubr.f32.mxu0 %v22282_v29  ;;  %19393 = vmatprep.subr.bf16.mxu1 %v19392_v20 }
 0x993   : > { %19441 = vmatprep.subr.bf16.mxu0 %v19440_v39 }
 0x994   : > { %19395 = vmatpush3.bf16.msra.mxu1 %v19392_v20 }
 0x995   : > { %19443 = vmatpush3.bf16.msra.mxu0 %v19440_v39  ;;  %19397 = vmatprep.subr.bf16.mxu1 %v22218_v33 }
 0x996   : > { %19445 = vmatprep.subr.bf16.mxu0 %v22229_v63 }
 0x997   : > { %17777 = vmatmul.mubr.f32.vlgmr.msra.gmra.mrb[22].mxu1 %v22279_v23 }
 0x998   : > { %17843 = vmatmul.mubr.f32.vlgmr.msra.gmra.mrb[20].mxu0 %v22279_v23  ;;  %19399 = vmatpush3.bf16.msra.mxu1 %v22218_v33 }
 0x999   : > { %17787 = vmatprep.mubr.f32.mxu1 %v22288_v40  ;;  %19447 = vmatpush3.bf16.msra.mxu0 %v22229_v63 }
 0x99a   : > { %17853 = vmatprep.mubr.f32.mxu0 %v22288_v40  ;;  %19401 = vmatprep.subr.bf16.mxu1 %v22237_v50 }
 0x99b   : > { %19449 = vmatprep.subr.bf16.mxu0 %v22240_v26 }
 0x99c   : > { %19403 = vmatpush3.bf16.msra.mxu1 %v22237_v50 }
 0x99d   : > { %19451 = vmatpush3.bf16.msra.mxu0 %v22240_v26  ;;  %19405 = vmatprep.subr.bf16.mxu1 %v22246_v41 }
 0x99e   : > { %19453 = vmatprep.subr.bf16.mxu0 %v22248_v12 }
 0x99f   : > { %17788 = vmatmul.mubr.f32.vlgmr.msra.gmra.mrb[22].mxu1 %v22285_v38 }
 0x9a0   : > { %17854 = vmatmul.mubr.f32.vlgmr.msra.gmra.mrb[20].mxu0 %v22285_v38  ;;  %19407 = vmatpush3.bf16.msra.mxu1 %v22246_v41 }
 0x9a1   : > { %17798 = vmatprep.mubr.f32.mxu1 %v22276_v32  ;;  %19455 = vmatpush3.bf16.msra.mxu0 %v22248_v12 }
 0x9a2   : > { %17864 = vmatprep.mubr.f32.mxu0 %v22276_v32  ;;  %19409 = vmatprep.subr.bf16.mxu1 %v22250_v11 }
 0x9a3   : > { %19457 = vmatprep.subr.bf16.mxu0 %v22252_v24 }
 0x9a4   : > { %19411 = vmatpush3.bf16.msra.mxu1 %v22250_v11 }
 0x9a5   : > { %19459 = vmatpush3.bf16.msra.mxu0 %v22252_v24  ;;  %19413 = vmatprep.subr.bf16.mxu1 %v22218_v33 }
 0x9a6   : > { %19461 = vmatprep.subr.bf16.mxu0 %v22229_v63 }
 0x9a7   : > { %17799 = vmatmul.mubr.f32.vlgmr.msra.gmra.mrb[22].mxu1 %v22272_v56 }
 0x9a8   : > { %17865 = vmatmul.mubr.f32.vlgmr.msra.gmra.mrb[20].mxu0 %v22272_v56  ;;  %19415 = vmatpush3.bf16.msra.mxu1 %v22218_v33 }
 0x9a9   : > { %17809 = vmatprep.mubr.f32.mxu1 %v22276_v32  ;;  %19463 = vmatpush3.bf16.msra.mxu0 %v22229_v63 }
 0x9aa   : > { %17875 = vmatprep.mubr.f32.mxu0 %v22276_v32  ;;  %19417 = vmatprep.subr.bf16.mxu1 %v22237_v50 }
 0x9ab   : > { %19465 = vmatprep.subr.bf16.mxu0 %v22240_v26 }
 0x9ac   : > { %19419 = vmatpush3.bf16.msra.mxu1 %v22237_v50 }
 0x9ad   : > { %19467 = vmatpush3.bf16.msra.mxu0 %v22240_v26 }
 0x9af   : > { %17810 = vmatmul.mubr.f32.vlgmr.msra.gmra.mrb[22].mxu1 %v22272_v56 }
 0x9b0   : > { %17876 = vmatmul.mubr.f32.vlgmr.msra.gmra.mrb[20].mxu0 %v22272_v56  ;;  %17886 = vmatprep.mubr.f32.mxu1 %v21296_v9 }
 0xa82   : > { %v17811_v11 = vpop.f32.mrb[22].mxu1 }
 0xa83   : > { %v7938_v12 = vand.u32 4294901760, %v17811_v11  ;;  %v17877_v22 = vpop.f32.mrb[20].mxu0  ;;  %v7384_v13 = vpop.f32.mrb[23].mxu1 }
 0xa84   : > { %v7944_v33 = vand.u32 4294901760, %v17877_v22  ;;  %v7935_v63 = vand.u32 4294901760, %v7384_v13  ;;  %v7912_v57 = vpop.f32.mrb[21].mxu0 }
 0xa85   : > { %v8092_v51 = vsub.f32 %v17811_v11, %v7938_v12  ;;  %v7941_v16 = vand.u32 4294901760, %v7912_v57 }
 0xa86   : > { %v8106_v43 = vsub.f32 %v17877_v22, %v7944_v33  ;;  %v22347_v20 = vpack.c.bf16 %v7938_v12, %v7935_v63  ;;  %v8085_v50 = vsub.f32 %v7384_v13, %v7935_v63  ;;  %v23625_v13 = vld [vmem:[#allocation22_spill] sm:$0xff]  ;;  %v23627_v63 = vld [vmem:[#allocation25_spill] sm:$0xff] }
 0xa87   : > { %v8093_v26 = vand.u32 4294901760, %v8092_v51  ;;  %v22349_v39 = vpack.c.bf16 %v7944_v33, %v7941_v16  ;;  %v8099_v41 = vsub.f32 %v7912_v57, %v7941_v16  ;;  %v23626_v33 = vld [vmem:[#allocation24_spill] sm:$0xff]  ;;  %v23628_v57 = vld [vmem:[#allocation30_spill] sm:$0xff]  ;;  %v23630_v16 = vld [vmem:[#allocation35_spill] sm:$0xff] }
 0xa88   : > { %v8107_v24 = vand.u32 4294901760, %v8106_v43  ;;  %v8086_v18 = vand.u32 4294901760, %v8085_v50  ;;  %19469 = vmatprep.subr.bf16.mxu1 %v22347_v20  ;;  %v19484_v21 = vpack.c.bf16 %v8092_v51, %v8085_v50 }
 0xa89   : > { %v8094_v48 = vsub.f32 %v8092_v51, %v8093_v26  ;;  %v8100_v8 = vand.u32 4294901760, %v8099_v41  ;;  %19471 = vmatpush3.bf16.msra.mxu1 %v22347_v20  ;;  %v19488_v60 = vpack.c.bf16 %v8106_v43, %v8099_v41  ;;  %v23629_v51 = vld [vmem:[#allocation31_spill] sm:$0xff] }
 0xa8a   : > { %v8108_v10 = vsub.f32 %v8106_v43, %v8107_v24  ;;  %v8087_v7 = vsub.f32 %v8085_v50, %v8086_v18  ;;  %19473 = vmatprep.subr.bf16.mxu1 %v22349_v39  ;;  %v19500_v54 = vpack.c.bf16 %v8093_v26, %v8086_v18  ;;  %v23631_v43 = vld [vmem:[#allocation5_spill] sm:$0xff]  ;;  %v23632_v50 = vld [vmem:[#allocation23_spill] sm:$0xff]  ;;  %v23633_v26 = vld [vmem:[#allocation26_spill] sm:$0xff] }
 0xa8b   : > { %v8101_v25 = vsub.f32 %v8099_v41, %v8100_v8  ;;  %v8095_v62 = vand.u32 4294901760, %v8094_v48  ;;  %v19504_v28 = vpack.c.bf16 %v8107_v24, %v8100_v8  ;;  %v23634_v41 = vld [vmem:[#allocation28_spill] sm:$0xff]  ;;  %v23635_v24 = vld [vmem:[#allocation29_spill] sm:$0xff]  ;;  %v23636_v18 = vld [vmem:[#allocation34_spill] sm:$0xff] }
 0xa8c   : > { %v8088_v27 = vand.u32 4294901760, %v8087_v7  ;;  %v8109_v42 = vand.u32 4294901760, %v8108_v10  ;;  %v23638_v48 = vld [vmem:[#allocation38_spill] sm:$0xff]  ;;  %v23641_v10 = vld [vmem:[#allocation32_spill] sm:$0xff]  ;;  %v23642_v7 = vld [vmem:[#allocation33_spill] sm:$0xff] }
 0xa8d   : > { %19475 = vmatpush3.bf16.msra.mxu1 %v22349_v39  ;;  %v8102_v11 = vand.u32 4294901760, %v8101_v25  ;;  %v23639_v8 = vld [vmem:[#allocation6_spill] sm:$0xff]  ;;  %v23643_v25 = vld [vmem:[#allocation37_spill] sm:$0xff] }
 0xa8e   : > { %v19476_v12 = vpack.c.bf16 %v8095_v62, %v8088_v27  ;;  %v23644_v62 = vld [vmem:[#allocation39_spill] sm:$0xff]  ;;  %v23645_v27 = vld [vmem:[#allocation40_spill] sm:$0xff] }
 0xa8f   : > { %v19480_v22 = vpack.c.bf16 %v8109_v42, %v8102_v11  ;;  %v23646_v42 = vld [vmem:[#allocation41_spill] sm:$0xff] }
 0xa90   : > { %17887 = vmatmul.mubr.f32.vlgmr.msra.gmra.mrb[24].mxu1 %v21471_v17  ;;  %19477 = vmatprep.subr.bf16.mxu1 %v19476_v12 }
 0xa91   : > { %17889 = vmatprep.mubr.f32.mxu1 %v21481_v36  ;;  %19479 = vmatpush3.bf16.msra.mxu1 %v19476_v12  ;;  %v15781_v12 = vld [vmem:[%s23401_s8 + $0x110] sm:$0xff] }
 0xa92   : > { %19481 = vmatprep.subr.bf16.mxu1 %v19480_v22  ;;  %v8848_v45 = vand.u32 4294901760, %v15781_v12 }
 0xa94   : > { %17890 = vmatmul.mubr.f32.gmra.mrb[26].mxu1 %v21490_v49 }
 0xa95   : > { %17892 = vmatprep.mubr.f32.mxu1 %v21497_v55  ;;  %19483 = vmatpush3.bf16.msra.mxu1 %v19480_v22  ;;  %v15782_v22 = vld [vmem:[%s23401_s8 + $0x118] sm:$0xff] }
 0xa96   : > { %19485 = vmatprep.subr.bf16.mxu1 %v19484_v21 }
 0xa98   : > { %17893 = vmatmul.mubr.f32.gmra.mrb[28].mxu1 %v21505_v19 }
 0xa99   : > { %17895 = vmatprep.mubr.f32.mxu1 %v21509_v47 }
 0xa9c   : > { %17896 = vmatmul.mubr.f32.gmra.mrb[30].mxu1 %v21513_v3 }
 0xa9d   : > { %17906 = vmatprep.mubr.f32.mxu1 %v21286_v52 }
 0xaa0   : > { %17907 = vmatmul.mubr.f32.vlgmr.msra.gmra.mrb[24].mxu1 %v21406_v35 }
 0xaa1   : > { %19487 = vmatpush3.bf16.msra.mxu1 %v19484_v21  ;;  %17909 = vmatprep.mubr.f32.mxu1 %v23625_v13  ;;  %v23637_v21 = vld [vmem:[#allocation36_spill] sm:$0xff] }
 0xaa2   : > { %19489 = vmatprep.subr.bf16.mxu1 %v19488_v60 }
 0xaa4   : > { %17910 = vmatmul.mubr.f32.gmra.mrb[26].mxu1 %v23626_v33 }
 0xaa5   : > { %19491 = vmatpush3.bf16.msra.mxu1 %v19488_v60  ;;  %17912 = vmatprep.mubr.f32.mxu1 %v23627_v63  ;;  %v23640_v60 = vld [vmem:[#allocation27_spill] sm:$0xff] }
 0xaa6   : > { %19493 = vmatprep.subr.bf16.mxu1 %v22347_v20 }
 0xaa8   : > { %17913 = vmatmul.mubr.f32.gmra.mrb[28].mxu1 %v23628_v57 }
 0xaa9   : > { %17915 = vmatprep.mubr.f32.mxu1 %v23629_v51 }
 0xaac   : > { %17916 = vmatmul.mubr.f32.gmra.mrb[30].mxu1 %v23630_v16 }
 0xaad   : > { %17926 = vmatprep.mubr.f32.mxu1 %v23631_v43 }
 0xab0   : > { %17927 = vmatmul.mubr.f32.vlgmr.msra.gmra.mrb[24].mxu1 %v23632_v50 }
 0xab1   : > { %19495 = vmatpush3.bf16.msra.mxu1 %v22347_v20  ;;  %17929 = vmatprep.mubr.f32.mxu1 %v23633_v26 }
 0xab2   : > { %19497 = vmatprep.subr.bf16.mxu1 %v22349_v39 }
 0xab4   : > { %17930 = vmatmul.mubr.f32.gmra.mrb[26].mxu1 %v23634_v41 }
 0xab5   : > { %19499 = vmatpush3.bf16.msra.mxu1 %v22349_v39  ;;  %17932 = vmatprep.mubr.f32.mxu1 %v23635_v24 }
 0xab6   : > { %19501 = vmatprep.subr.bf16.mxu1 %v19500_v54 }
 0xab8   : > { %17933 = vmatmul.mubr.f32.gmra.mrb[28].mxu1 %v23636_v18 }
 0xab9   : > { %17935 = vmatprep.mubr.f32.mxu1 %v23637_v21 }
 0xabc   : > { %17936 = vmatmul.mubr.f32.gmra.mrb[30].mxu1 %v23638_v48 }
 0xabd   : > { %17946 = vmatprep.mubr.f32.mxu1 %v23639_v8  ;;  %v9006_v8 = vsub.f32 %v15781_v12, %v8848_v45 }
 0xabf   : > { %v9007_v24 = vand.u32 4294901760, %v9006_v8 }
 0xac0   : > { %17947 = vmatmul.mubr.f32.vlgmr.msra.gmra.mrb[24].mxu1 %v23640_v60 }
 0xac1   : > { %19503 = vmatpush3.bf16.msra.mxu1 %v19500_v54  ;;  %17949 = vmatprep.mubr.f32.mxu1 %v23641_v10  ;;  %v9008_v50 = vsub.f32 %v9006_v8, %v9007_v24 }
 0xac2   : > { %19505 = vmatprep.subr.bf16.mxu1 %v19504_v28 }
 0xac4   : > { %17950 = vmatmul.mubr.f32.gmra.mrb[26].mxu1 %v23642_v7 }
 0xac5   : > { %19507 = vmatpush3.bf16.msra.mxu1 %v19504_v28  ;;  %17952 = vmatprep.mubr.f32.mxu1 %v23643_v25 }
 0xac6   : > { %19509 = vmatprep.subr.bf16.mxu1 %v22347_v20 }
 0xac8   : > { %17953 = vmatmul.mubr.f32.gmra.mrb[28].mxu1 %v23644_v62 }
 0xac9   : > { %17955 = vmatprep.mubr.f32.mxu1 %v23645_v27 }
 0xacc   : > { %17956 = vmatmul.mubr.f32.gmra.mrb[30].mxu1 %v23646_v42 }
 0xacd   : > { %17966 = vmatprep.mubr.f32.mxu1 %v21286_v52 }
 0xad0   : > { %17967 = vmatmul.mubr.f32.vlgmr.msra.gmra.mrb[24].mxu1 %v21406_v35 }
 0xad1   : > { %19511 = vmatpush3.bf16.msra.mxu1 %v22347_v20  ;;  %17969 = vmatprep.mubr.f32.mxu1 %v23625_v13  ;;  %v15779_v20 = vld [vmem:[%s23401_s8 + $0x100] sm:$0xff] }
 0xad2   : > { %19513 = vmatprep.subr.bf16.mxu1 %v22349_v39  ;;  %v8842_v54 = vand.u32 4294901760, %v15779_v20 }
 0xad4   : > { %17970 = vmatmul.mubr.f32.gmra.mrb[26].mxu1 %v23626_v33  ;;  %v8992_v27 = vsub.f32 %v15779_v20, %v8842_v54 }
 0xad5   : > { %19515 = vmatpush3.bf16.msra.mxu1 %v22349_v39  ;;  %17972 = vmatprep.mubr.f32.mxu1 %v23627_v63  ;;  %v15780_v39 = vld [vmem:[%s23401_s8 + $0x108] sm:$0xff] }
 0xad6   : > { %v8845_v28 = vand.u32 4294901760, %v15780_v39  ;;  %v8993_v25 = vand.u32 4294901760, %v8992_v27 }
 0xad8   : > { %17973 = vmatmul.mubr.f32.gmra.mrb[28].mxu1 %v23628_v57  ;;  %v22417_v11 = vpack.c.bf16 %v8845_v28, %v8842_v54  ;;  %v8999_v62 = vsub.f32 %v15780_v39, %v8845_v28  ;;  %v8994_v10 = vsub.f32 %v8992_v27, %v8993_v25  ;;  %v23651_v28 = vld [vmem:[#allocation53_spill] sm:$0xff] }
 0xad9   : > { %17975 = vmatprep.mubr.f32.mxu1 %v23629_v51 }
 0xada   : > { %19517 = vmatprep.subr.bf16.mxu0 %v22417_v11  ;;  %v9000_v7 = vand.u32 4294901760, %v8999_v62  ;;  %v8995_v21 = vand.u32 4294901760, %v8994_v10  ;;  %v22436_v39 = vpack.c.bf16 %v8999_v62, %v8992_v27  ;;  %v23647_v10 = vld [vmem:[#allocation48_spill] sm:$0xff] }
 0xadb   : > { %19519 = vmatpush3.bf16.msra.mxu0 %v22417_v11 }
 0xadc   : > { %17976 = vmatmul.mubr.f32.gmra.mrb[30].mxu1 %v23630_v16  ;;  %v9001_v60 = vsub.f32 %v8999_v62, %v9000_v7 }
 0xadd   : > { %17986 = vmatprep.mubr.f32.mxu1 %v21286_v52 }
 0xade   : > { %v9002_v18 = vand.u32 4294901760, %v9001_v60 }
 0xae0   : > { %17987 = vmatmul.mubr.f32.vlgmr.msra.gmra.mrb[24].mxu1 %v21406_v35  ;;  %v22431_v26 = vpack.c.bf16 %v9002_v18, %v8995_v21  ;;  %v22448_v21 = vld [vmem:[%s23402_s9 + $0x8] sm:$0xff] }
 0xae1   : > { %17989 = vmatprep.mubr.f32.mxu1 %v23625_v13  ;;  %v23660_v13 = vld [vmem:[#allocation69_spill] sm:$0xff] }
 0xae4   : > { %17990 = vmatmul.mubr.f32.gmra.mrb[26].mxu1 %v23626_v33 }
 0xae5   : > { %17992 = vmatprep.mubr.f32.mxu1 %v23627_v63 }
 0xae8   : > { %17993 = vmatmul.mubr.f32.gmra.mrb[28].mxu1 %v23628_v57 }
 0xae9   : > { %17995 = vmatprep.mubr.f32.mxu1 %v23629_v51 }
 0xaec   : > { %17996 = vmatmul.mubr.f32.gmra.mrb[30].mxu1 %v23630_v16  ;;  %v9009_v16 = vand.u32 4294901760, %v9008_v50 }
 0xaed   : > { %18134 = vmatprep.mubr.f32.mxu1 %v21948_v31  ;;  %v8851_v31 = vand.u32 4294901760, %v15782_v22 }
 0xaef   : > { %v22427_v42 = vpack.c.bf16 %v8851_v31, %v8848_v45  ;;  %v9013_v48 = vsub.f32 %v15782_v22, %v8851_v31  ;;  %v22440_v45 = vpack.c.bf16 %v9000_v7, %v8993_v25  ;;  %v23650_v7 = vld [vmem:[#allocation14_spill] sm:$0xff] }
 0xaf1   : > { %19521 = vmatprep.subr.bf16.mxu0 %v22427_v42  ;;  %v9014_v41 = vand.u32 4294901760, %v9013_v48  ;;  %v22438_v54 = vpack.c.bf16 %v9013_v48, %v9006_v8 }
 0xaf2   : > { %19523 = vmatpush3.bf16.msra.mxu0 %v22427_v42 }
 0xaf3   : > { %v9015_v43 = vsub.f32 %v9013_v48, %v9014_v41  ;;  %19525 = vmatprep.subr.bf16.mxu0 %v22431_v26  ;;  %v22442_v31 = vpack.c.bf16 %v9014_v41, %v9007_v24  ;;  %v23649_v48 = vld [vmem:[#allocation50_spill] sm:$0xff] }
 0xaf5   : > { %v9016_v51 = vand.u32 4294901760, %v9015_v43  ;;  %v23648_v43 = vld [vmem:[#allocation11_spill] sm:$0xff] }
 0xaf6   : > { %v8724_v50 = vmul.f32 %v23648_v43, %v21547_v6  ;;  %v8727_v62 = vmul.f32 %v23648_v43, %v21544_v58 }
 0xaf7   : > { %v22434_v20 = vpack.c.bf16 %v9016_v51, %v9009_v16  ;;  %v8743_v51 = vrot.slane %v22448_v21, %v21702_v5 }
 0xbb3   : > { %v17988_v60 = vpop.f32.mrb[24].mxu1 }
 0xbb4   : > { %v20116_v18 = vadd.f32 %v17988_v60, %v23647_v10  ;;  %v8674_v16 = vpop.f32.mrb[25].mxu1  ;;  %v23652_v10 = vld [vmem:[#allocation57_spill] sm:$0xff] }
 0xbb5   : > { %v20117_v8 = vadd.f32 %v8674_v16, %v23649_v48 }
 0xbb6   : > { %v8733_v41 = vadd.f32 %v20116_v18, %v23650_v7  ;;  %v23653_v18 = vld [vmem:[#allocation17_spill] sm:$0xff]  ;;  %v23654_v7 = vld [vmem:[#allocation63_spill] sm:$0xff] }
 0xbb7   : > { %v8732_v24 = vadd.f32 %v20117_v8, %v8724_v50  ;;  %v17991_v25 = vpop.f32.mrb[26].mxu1 }
 0xbb8   : > { %v22458_v27 = vadd.f32 %v8743_v51, %v8733_v41  ;;  %v20118_v12 = vadd.f32 %v17991_v25, %v23651_v28  ;;  %v8686_v22 = vpop.f32.mrb[27].mxu1  ;;  %v23655_v28 = vld [vmem:[#allocation59_spill] sm:$0xff] }
 0xbb9   : > { %v22461_v60 = vadd.f32 %v8743_v51, %v8732_v24  ;;  %v20119_v5 = vadd.f32 %v8686_v22, %v23652_v10  ;;  %v8728_v24 = vmul.f32 %v23648_v43, %v21718_v15  ;;  %v23658_v15 = vld [vmem:[#allocation65_spill] sm:$0xff] }
 0xbba   : > { %v15772_v6 = vmul.f32 -1.442695, %v22458_v27  ;;  %v8735_v57 = vadd.f32 %v20118_v12, %v8727_v62  ;;  %v23656_v12 = vld [vmem:[#allocation67_spill] sm:$0xff] }
 0xbbb   : > { %v15771_v16 = vmul.f32 -1.442695, %v22461_v60  ;;  %v8734_v50 = vadd.f32 %v20119_v5, %v23653_v18  ;;  %v17994_v48 = vpop.f32.mrb[28].mxu1  ;;  %v23657_v18 = vld [vmem:[#allocation76_spill] sm:$0xff] }
 0xbbc   : > { %20691 = vpow2.f32 %v15772_v6  ;;  %v22467_v8 = vadd.f32 %v8743_v51, %v8735_v57  ;;  %v20120_v41 = vadd.f32 %v17994_v48, %v23654_v7  ;;  %v8698_v58 = vpop.f32.mrb[29].mxu1  ;;  %v8731_v48 = vmul.f32 %v23648_v43, %v23657_v18 }
 0xbbd   : > { %20693 = vpow2.f32 %v15771_v16  ;;  %v22472_v25 = vadd.f32 %v8743_v51, %v8734_v50  ;;  %v20121_v22 = vadd.f32 %v8698_v58, %v23655_v28  ;;  %v23659_v58 = vld [vmem:[#allocation72_spill] sm:$0xff] }
 0xbbe   : > { %v15774_v62 = vmul.f32 -1.442695, %v22467_v8  ;;  %v8737_v10 = vadd.f32 %v20120_v41, %v23656_v12 }
 0xbbf   : > { %v15773_v5 = vmul.f32 -1.442695, %v22472_v25  ;;  %v8736_v6 = vadd.f32 %v20121_v22, %v8728_v24  ;;  %v17997_v57 = vpop.f32.mrb[30].mxu1 }
 0xbc0   : > { %20695 = vpow2.f32 %v15774_v62  ;;  %v22480_v7 = vadd.f32 %v8743_v51, %v8737_v10  ;;  %v20122_v16 = vadd.f32 %v17997_v57, %v23658_v15  ;;  %v8710_v50 = vpop.f32.mrb[31].mxu1 }
 0xbc1   : > { %20697 = vpow2.f32 %v15773_v5  ;;  %v8748_v63 = vadd.f32 %v8743_v51, %v8736_v6  ;;  %v20123_v28 = vadd.f32 %v8710_v50, %v23659_v58 }
 0xbc2   : > { %v15776_v33 = vmul.f32 -1.442695, %v22480_v7  ;;  %v8739_v41 = vadd.f32 %v20122_v16, %v8731_v48 }
 0xbc3   : > { %v15775_v12 = vmul.f32 -1.442695, %v8748_v63  ;;  %v8738_v24 = vadd.f32 %v20123_v28, %v23660_v13 }
 0xbc4   : > { %20699 = vpow2.f32 %v15776_v33  ;;  %v22486_v22 = vadd.f32 %v8743_v51, %v8739_v41 }
 0xbc5   : > { %20701 = vpow2.f32 %v15775_v12  ;;  %v22488_v43 = vadd.f32 %v8743_v51, %v8738_v24 }
 0xbc6   : > { %v20692_v62 = vpop.eup %20691  ;;  %v15778_v15 = vmul.f32 -1.442695, %v22486_v22 }
 0xbc7   : > { %v20694_v10 = vpop.eup %20693  ;;  %v8777_v5 = vadd.f32 1.0, %v20692_v62  ;;  %v15777_v6 = vmul.f32 -1.442695, %v22488_v43 }
 0xbc8   : > { %v8776_v57 = vadd.f32 1.0, %v20694_v10  ;;  %20703 = vpow2.f32 %v15778_v15 }
 0xbc9   : > { %20705 = vrcp.f32 %v8777_v5 }
 0xbca   : > { %v20696_v48 = vpop.eup %20695  ;;  %20707 = vrcp.f32 %v8776_v57 }
 0xbcb   : > { %v20698_v16 = vpop.eup %20697  ;;  %v8779_v13 = vadd.f32 1.0, %v20696_v48  ;;  %20709 = vpow2.f32 %v15777_v6 }
 0xbcc   : > { %v8778_v33 = vadd.f32 1.0, %v20698_v16 }
 0xbcd   : > { %20711 = vrcp.f32 %v8779_v13 }
 0xbce   : > { %v20700_v50 = vpop.eup %20699  ;;  %20713 = vrcp.f32 %v8778_v33 }
 0xbcf   : > { %v20702_v51 = vpop.eup %20701  ;;  %v8781_v58 = vadd.f32 1.0, %v20700_v50 }
 0xbd0   : > { %v8780_v28 = vadd.f32 1.0, %v20702_v51 }
 0xbd1   : > { %20715 = vrcp.f32 %v8781_v58 }
 0xbd2   : > { %v20704_v41 = vpop.eup %20703  ;;  %20717 = vrcp.f32 %v8780_v28 }
 0xbd3   : > { %v20706_v12 = vpop.eup %20705  ;;  %v8783_v24 = vadd.f32 1.0, %v20704_v41 }
 0xbd4   : > { %v20708_v62 = vpop.eup %20707  ;;  %v8801_v15 = vmul.f32 %v20706_v12, %v22458_v27 }
 0xbd5   : > { %v20710_v10 = vpop.eup %20709  ;;  %v8800_v5 = vmul.f32 %v20708_v62, %v22461_v60  ;;  %20719 = vrcp.f32 %v8783_v24 }
 0xbd6   : > { %v8821_v6 = vsel %vm1500_vm13, %v8801_v15, 0  ;;  %v8782_v57 = vadd.f32 1.0, %v20710_v10 }
 0xbd7   : > { %v20712_v48 = vpop.eup %20711  ;;  %v22495_v16 = vand.u32 4294901760, %v8821_v6  ;;  %v8818_v13 = vsel %vm1500_vm13, %v8800_v5, 0 }
 0xbd8   : > { %v20714_v33 = vpop.eup %20713  ;;  %v22498_v50 = vand.u32 4294901760, %v8818_v13  ;;  %v8803_v51 = vmul.f32 %v20712_v48, %v22467_v8  ;;  %20721 = vrcp.f32 %v8782_v57 }
 0xbd9   : > { %v22502_v27 = vsub.f32 %v8821_v6, %v22495_v16  ;;  %v8802_v60 = vmul.f32 %v20714_v33, %v22472_v25 }
 0xbda   : > { %v8827_v58 = vsel %vm1500_vm13, %v8803_v51, 0  ;;  %v22507_v28 = vsub.f32 %v8818_v13, %v22498_v50 }
 0xbdb   : > { %v20716_v41 = vpop.eup %20715  ;;  %v22509_v12 = vand.u32 4294901760, %v8827_v58  ;;  %v8824_v24 = vsel %vm1500_vm13, %v8802_v60, 0  ;;  %v23514_v62 = vand.u32 4294901760, %v22502_v27 }
 0xbdc   : > { %v20718_v15 = vpop.eup %20717  ;;  %v22513_v8 = vand.u32 4294901760, %v8824_v24  ;;  %v8805_v10 = vmul.f32 %v20716_v41, %v22480_v7  ;;  %v23515_v5 = vand.u32 4294901760, %v22507_v28 }
 0xbdd   : > { %v8804_v25 = vmul.f32 %v20718_v15, %v8748_v63  ;;  %v8923_v6 = vsub.f32 %v22502_v27, %v23514_v62  ;;  %v22521_v57 = vsub.f32 %v8827_v58, %v22509_v12 }
 0xbde   : > { %v8833_v48 = vsel %vm1500_vm13, %v8805_v10, 0  ;;  %v8913_v13 = vsub.f32 %v22507_v28, %v23515_v5  ;;  %v22528_v33 = vsub.f32 %v8824_v24, %v22513_v8 }
 0xbdf   : > { %v20720_v7 = vpop.eup %20719  ;;  %v22530_v51 = vand.u32 4294901760, %v8833_v48  ;;  %v8830_v63 = vsel %vm1500_vm13, %v8804_v25, 0  ;;  %v23518_v60 = vand.u32 4294901760, %v22521_v57  ;;  %v8924_v62 = vand.u32 4294901760, %v8923_v6 }
 0xbe0   : > { %v22534_v41 = vand.u32 4294901760, %v8830_v63  ;;  %v8807_v58 = vmul.f32 %v20720_v7, %v22486_v22  ;;  %v8914_v15 = vand.u32 4294901760, %v8913_v13  ;;  %v23521_v10 = vand.u32 4294901760, %v22528_v33 }
 0xbe1   : > { %v8943_v24 = vsub.f32 %v22521_v57, %v23518_v60  ;;  %v22542_v5 = vsub.f32 %v8833_v48, %v22530_v51 }
 0xbe2   : > { %v20722_v18 = vpop.eup %20721  ;;  %v8839_v25 = vsel %vm1500_vm13, %v8807_v58, 0  ;;  %18006 = vmatprep.mubr.f32.mxu0 %v8914_v15  ;;  %v8933_v35 = vsub.f32 %v22528_v33, %v23521_v10  ;;  %v8951_v22 = vsub.f32 %v8830_v63, %v22534_v41 }
 0xbe3   : > { %v22549_v13 = vand.u32 4294901760, %v8839_v25  ;;  %v8806_v6 = vmul.f32 %v20722_v18, %v22488_v43  ;;  %18007 = vmatmul.mubr.f32.vlgmr.msra.gmra.mrb[22].mxu0 %v8924_v62  ;;  %v8962_v7 = vand.u32 4294901760, %v22542_v5  ;;  %v8944_v15 = vand.u32 4294901760, %v8943_v24 }
 0xbe4   : > { %v8934_v60 = vand.u32 4294901760, %v8933_v35  ;;  %19527 = vmatpush3.bf16.msra.mxu0 %v22431_v26  ;;  %v8952_v48 = vand.u32 4294901760, %v8951_v22 }
 0xbe5   : > { %v8836_v58 = vsel %vm1500_vm13, %v8806_v6, 0  ;;  %v8963_v52 = vsub.f32 %v22542_v5, %v8962_v7  ;;  %v8981_v10 = vsub.f32 %v8839_v25, %v22549_v13  ;;  %19529 = vmatprep.subr.bf16.mxu0 %v22434_v20 }
 0xbe6   : > { %v22558_v63 = vand.u32 4294901760, %v8836_v58  ;;  %18009 = vmatprep.mubr.f32.mxu0 %v8934_v60  ;;  %v8953_v18 = vsub.f32 %v8951_v22, %v8952_v48 }
 0xbe7   : > { %18010 = vmatmul.mubr.f32.gmra.mrb[24].mxu0 %v8944_v15  ;;  %v8982_v43 = vand.u32 4294901760, %v8981_v10  ;;  %v8964_v26 = vand.u32 4294901760, %v8963_v52  ;;  %v23661_v52 = vand.u32 4294901760, %v22507_v28 }
 0xbe8   : > { %v8954_v62 = vand.u32 4294901760, %v8953_v18  ;;  %v8971_v35 = vsub.f32 %v8836_v58, %v22558_v63  ;;  %19531 = vmatpush3.bf16.msra.mxu0 %v22434_v20  ;;  %v23664_v20 = vand.u32 4294901760, %v22521_v57 }
 0xbe9   : > { %19533 = vmatprep.subr.bf16.mxu0 %v22436_v39  ;;  %v8983_v25 = vsub.f32 %v8981_v10, %v8982_v43 }
 0xbea   : > { %18012 = vmatprep.mubr.f32.mxu0 %v8954_v62  ;;  %v8972_v24 = vand.u32 4294901760, %v8971_v35 }
 0xbeb   : > { %18013 = vmatmul.mubr.f32.gmra.mrb[26].mxu0 %v8964_v26  ;;  %v8984_v47 = vand.u32 4294901760, %v8983_v25 }
 0xbec   : > { %v8973_v6 = vsub.f32 %v8971_v35, %v8972_v24 }
 0xbee   : > { %v8974_v3 = vand.u32 4294901760, %v8973_v6 }
 0xbf0   : > { %18015 = vmatprep.mubr.f32.mxu0 %v8974_v3  ;;  %v23663_v3 = vand.u32 4294901760, %v22528_v33 }
 0xbf1   : > { %18016 = vmatmul.mubr.f32.gmra.mrb[28].mxu0 %v8984_v47  ;;  %v23662_v47 = vand.u32 4294901760, %v22502_v27 }
 0xbf2   : > { %18026 = vmatprep.mubr.f32.mxu0 %v22498_v50 }
 0xbf5   : > { %18027 = vmatmul.mubr.f32.vlgmr.msra.gmra.mrb[22].mxu0 %v22495_v16 }
 0xbf6   : > { %18029 = vmatprep.mubr.f32.mxu0 %v22513_v8  ;;  %19535 = vmatpush3.bf16.msra.mxu0 %v22436_v39 }
 0xbf7   : > { %19537 = vmatprep.subr.bf16.mxu0 %v22438_v54 }
 0xbf9   : > { %18030 = vmatmul.mubr.f32.gmra.mrb[24].mxu0 %v22509_v12 }
 0xbfa   : > { %18032 = vmatprep.mubr.f32.mxu0 %v22534_v41  ;;  %19539 = vmatpush3.bf16.msra.mxu0 %v22438_v54 }
 0xbfb   : > { %19541 = vmatprep.subr.bf16.mxu0 %v22417_v11 }
 0xbfd   : > { %18033 = vmatmul.mubr.f32.gmra.mrb[26].mxu0 %v22530_v51 }
 0xbfe   : > { %18035 = vmatprep.mubr.f32.mxu0 %v22558_v63 }
 0xc01   : > { %18036 = vmatmul.mubr.f32.gmra.mrb[28].mxu0 %v22549_v13 }
 0xc02   : > { %18046 = vmatprep.mubr.f32.mxu0 %v22507_v28 }
 0xc05   : > { %18047 = vmatmul.mubr.f32.vlgmr.msra.gmra.mrb[22].mxu0 %v22502_v27 }
 0xc06   : > { %18049 = vmatprep.mubr.f32.mxu0 %v22528_v33  ;;  %19543 = vmatpush3.bf16.msra.mxu0 %v22417_v11 }
 0xc07   : > { %19545 = vmatprep.subr.bf16.mxu0 %v22427_v42 }
 0xc09   : > { %18050 = vmatmul.mubr.f32.gmra.mrb[24].mxu0 %v22521_v57 }
 0xc0a   : > { %18052 = vmatprep.mubr.f32.mxu0 %v8951_v22  ;;  %19547 = vmatpush3.bf16.msra.mxu0 %v22427_v42 }
 0xc0b   : > { %19549 = vmatprep.subr.bf16.mxu0 %v22440_v45 }
 0xc0d   : > { %18053 = vmatmul.mubr.f32.gmra.mrb[26].mxu0 %v22542_v5 }
 0xc0e   : > { %18055 = vmatprep.mubr.f32.mxu0 %v8971_v35 }
 0xc11   : > { %18056 = vmatmul.mubr.f32.gmra.mrb[28].mxu0 %v8981_v10 }
 0xc12   : > { %18066 = vmatprep.mubr.f32.mxu0 %v23661_v52 }
 0xc15   : > { %18067 = vmatmul.mubr.f32.vlgmr.msra.gmra.mrb[22].mxu0 %v23662_v47 }
 0xc16   : > { %18069 = vmatprep.mubr.f32.mxu0 %v23663_v3  ;;  %19551 = vmatpush3.bf16.msra.mxu0 %v22440_v45 }
 0xc17   : > { %19553 = vmatprep.subr.bf16.mxu0 %v22442_v31 }
 0xc19   : > { %18070 = vmatmul.mubr.f32.gmra.mrb[24].mxu0 %v23664_v20 }
 0xc1a   : > { %18072 = vmatprep.mubr.f32.mxu0 %v8952_v48  ;;  %19555 = vmatpush3.bf16.msra.mxu0 %v22442_v31 }
 0xc1b   : > { %19557 = vmatprep.subr.bf16.mxu0 %v22417_v11 }
 0xc1d   : > { %18073 = vmatmul.mubr.f32.gmra.mrb[26].mxu0 %v8962_v7 }
 0xc1e   : > { %18075 = vmatprep.mubr.f32.mxu0 %v8972_v24 }
 0xc21   : > { %18076 = vmatmul.mubr.f32.gmra.mrb[28].mxu0 %v8982_v43 }
 0xc22   : > { %18086 = vmatprep.mubr.f32.mxu0 %v22498_v50 }
 0xc25   : > { %18087 = vmatmul.mubr.f32.vlgmr.msra.gmra.mrb[22].mxu0 %v22495_v16 }
 0xc26   : > { %18089 = vmatprep.mubr.f32.mxu0 %v22513_v8  ;;  %19559 = vmatpush3.bf16.msra.mxu0 %v22417_v11 }
 0xc27   : > { %19561 = vmatprep.subr.bf16.mxu0 %v22427_v42 }
 0xc29   : > { %18090 = vmatmul.mubr.f32.gmra.mrb[24].mxu0 %v22509_v12 }
 0xc2a   : > { %18092 = vmatprep.mubr.f32.mxu0 %v22534_v41  ;;  %19563 = vmatpush3.bf16.msra.mxu0 %v22427_v42  ;;  %v8816_v42 = vrot.slane %v22448_v21, %v21871_v61 }
 0xc2d   : > { %18093 = vmatmul.mubr.f32.gmra.mrb[26].mxu0 %v22530_v51 }
 0xc2e   : > { %18095 = vmatprep.mubr.f32.mxu0 %v22558_v63 }
 0xc31   : > { %18096 = vmatmul.mubr.f32.gmra.mrb[28].mxu0 %v22549_v13 }
 0xc32   : > { %18106 = vmatprep.mubr.f32.mxu0 %v22498_v50 }
 0xc35   : > { %18107 = vmatmul.mubr.f32.vlgmr.msra.gmra.mrb[22].mxu0 %v22495_v16 }
 0xc36   : > { %18109 = vmatprep.mubr.f32.mxu0 %v22513_v8 }
 0xc39   : > { %18110 = vmatmul.mubr.f32.gmra.mrb[24].mxu0 %v22509_v12 }
 0xc3a   : > { %18112 = vmatprep.mubr.f32.mxu0 %v22534_v41 }
 0xc3d   : > { %18113 = vmatmul.mubr.f32.gmra.mrb[26].mxu0 %v22530_v51 }
 0xc3e   : > { %18115 = vmatprep.mubr.f32.mxu0 %v22558_v63 }
 0xc41   : > { %18116 = vmatmul.mubr.f32.gmra.mrb[28].mxu0 %v22549_v13 }
 0xd08   : > { %v18108_v11 = vpop.f32.mrb[22].mxu0 }
 0xd09   : > { %v20124_v39 = vadd.f32 %v18108_v11, %v8816_v42  ;;  %v9581_v54 = vpop.f32.mrb[23].mxu0 }
 0xd0a   : > { %v20125_v45 = vadd.f32 %v9581_v54, %v8816_v42 }
 0xd0b   : > { %v15784_v31 = vmul.f32 -1.442695, %v20124_v39 }
 0xd0c   : > { %v15783_v16 = vmul.f32 -1.442695, %v20125_v45  ;;  %v18111_v50 = vpop.f32.mrb[24].mxu0 }
 0xd0d   : > { %20723 = vpow2.f32 %v15784_v31  ;;  %v20126_v27 = vadd.f32 %v18111_v50, %v8816_v42  ;;  %v9593_v28 = vpop.f32.mrb[25].mxu0 }
 0xd0e   : > { %20725 = vpow2.f32 %v15783_v16  ;;  %v20127_v12 = vadd.f32 %v9593_v28, %v8816_v42 }
 0xd0f   : > { %v15786_v8 = vmul.f32 -1.442695, %v20126_v27 }
 0xd10   : > { %v15785_v5 = vmul.f32 -1.442695, %v20127_v12  ;;  %v18114_v57 = vpop.f32.mrb[26].mxu0 }
 0xd11   : > { %20727 = vpow2.f32 %v15786_v8  ;;  %v20128_v33 = vadd.f32 %v18114_v57, %v8816_v42  ;;  %v9605_v51 = vpop.f32.mrb[27].mxu0 }
 0xd12   : > { %20729 = vpow2.f32 %v15785_v5  ;;  %v20129_v60 = vadd.f32 %v9605_v51, %v8816_v42 }
 0xd13   : > { %v15788_v41 = vmul.f32 -1.442695, %v20128_v33 }
 0xd14   : > { %v15787_v10 = vmul.f32 -1.442695, %v20129_v60  ;;  %v18117_v22 = vpop.f32.mrb[28].mxu0 }
 0xd15   : > { %20731 = vpow2.f32 %v15788_v41  ;;  %v20130_v13 = vadd.f32 %v18117_v22, %v8816_v42  ;;  %v9617_v7 = vpop.f32.mrb[29].mxu0 }
 0xd16   : > { %20733 = vpow2.f32 %v15787_v10  ;;  %v20131_v48 = vadd.f32 %v9617_v7, %v8816_v42  ;;  %v9686_v42 = vrot.slane %v22448_v21, %v21879_v46 }
 0xd17   : > { %v20724_v58 = vpop.eup %20723  ;;  %v15790_v15 = vmul.f32 -1.442695, %v20130_v13 }
 0xd18   : > { %v20726_v63 = vpop.eup %20725  ;;  %v9652_v18 = vadd.f32 1.0, %v20724_v58  ;;  %v15789_v43 = vmul.f32 -1.442695, %v20131_v48 }
 0xd19   : > { %v9651_v62 = vadd.f32 1.0, %v20726_v63  ;;  %20735 = vpow2.f32 %v15790_v15 }
 0xd1a   : > { %20737 = vrcp.f32 %v9652_v18 }
 0xd1b   : > { %v20728_v35 = vpop.eup %20727  ;;  %20739 = vrcp.f32 %v9651_v62 }
 0xd1c   : > { %v20730_v26 = vpop.eup %20729  ;;  %v9654_v24 = vadd.f32 1.0, %v20728_v35  ;;  %20741 = vpow2.f32 %v15789_v43 }
 0xd1d   : > { %v9653_v25 = vadd.f32 1.0, %v20730_v26 }
 0xd1e   : > { %20743 = vrcp.f32 %v9654_v24 }
 0xd1f   : > { %v20732_v6 = vpop.eup %20731  ;;  %20745 = vrcp.f32 %v9653_v25 }
 0xd20   : > { %v20734_v52 = vpop.eup %20733  ;;  %v9656_v47 = vadd.f32 1.0, %v20732_v6 }
 0xd21   : > { %v9655_v3 = vadd.f32 1.0, %v20734_v52 }
 0xd22   : > { %20747 = vrcp.f32 %v9656_v47 }
 0xd23   : > { %v20736_v20 = vpop.eup %20735  ;;  %20749 = vrcp.f32 %v9655_v3 }
 0xd24   : > { %v20738_v11 = vpop.eup %20737  ;;  %v9658_v54 = vadd.f32 1.0, %v20736_v20  ;;  %v23665_v20 = vsub.s32 7, %v20975_v1 }
 0xd25   : > { %v20740_v31 = vpop.eup %20739  ;;  %v22619_v16 = vmul.f32 %v20738_v11, %v20124_v39 }
 0xd26   : > { %v20742_v50 = vpop.eup %20741  ;;  %v22621_v28 = vmul.f32 %v20740_v31, %v20125_v45  ;;  %20751 = vrcp.f32 %v9658_v54  ;;  %v9722_v11 = vrot.slane %v22448_v21, %v23665_v20 }
 0xd27   : > { %v9657_v8 = vadd.f32 1.0, %v20742_v50  ;;  %v9688_v5 = vmul.f32 %v9686_v42, %v22619_v16 }
 0xd28   : > { %v20744_v57 = vpop.eup %20743  ;;  %v9687_v51 = vmul.f32 %v9686_v42, %v22621_v28 }
 0xd29   : > { %v20746_v41 = vpop.eup %20745  ;;  %v22625_v10 = vmul.f32 %v20744_v57, %v20126_v27  ;;  %20753 = vrcp.f32 %v9657_v8  ;;  %v9698_v22 = vsel %vm1500_vm13, %v9688_v5, 0.0 }
 0xd2a   : > { %v22628_v7 = vmul.f32 %v20746_v41, %v20127_v12  ;;  %9699 = vadd.xlane.f32.xlu0 %v9698_v22  ;;  %v9695_v39 = vsel %vm1500_vm13, %v9687_v51, 0.0 }
 0xd2b   : > { %9696 = vadd.xlane.f32.xlu1 %v9695_v39  ;;  %v9690_v45 = vmul.f32 %v9686_v42, %v22625_v10 }
 0xd2c   : > { %v20748_v58 = vpop.eup %20747  ;;  %v9689_v27 = vmul.f32 %v9686_v42, %v22628_v7 }
 0xd2d   : > { %v20750_v15 = vpop.eup %20749  ;;  %v22632_v63 = vmul.f32 %v20748_v58, %v20128_v33  ;;  %v9704_v18 = vsel %vm1500_vm13, %v9690_v45, 0.0 }
 0xd2e   : > { %v22636_v43 = vmul.f32 %v20750_v15, %v20129_v60  ;;  %9705 = vadd.xlane.f32.xlu0 %v9704_v18  ;;  %v9701_v26 = vsel %vm1500_vm13, %v9689_v27, 0.0 }
 0xd2f   : > { %v9692_v24 = vmul.f32 %v9686_v42, %v22632_v63 }
 0xd30   : > { %v20752_v62 = vpop.eup %20751  ;;  %v9691_v12 = vmul.f32 %v9686_v42, %v22636_v43 }
 0xd31   : > { %v22639_v35 = vmul.f32 %v20752_v62, %v20130_v13  ;;  %v9710_v60 = vsel %vm1500_vm13, %v9692_v24, 0.0 }
 0xd32   : > { %9702 = vadd.xlane.f32.xlu0 %v9701_v26  ;;  %v9707_v33 = vsel %vm1500_vm13, %v9691_v12, 0.0 }
 0xd33   : > { %v20754_v25 = vpop.eup %20753  ;;  %9708 = vadd.xlane.f32.xlu1 %v9707_v33  ;;  %v9694_v52 = vmul.f32 %v9686_v42, %v22639_v35 }
 0xd34   : > { %v22644_v6 = vmul.f32 %v20754_v25, %v20131_v48 }
 0xd35   : > { %v9716_v3 = vsel %vm1500_vm13, %v9694_v52, 0.0 }
 0xd36   : > { %9711 = vadd.xlane.f32.xlu0 %v9710_v60  ;;  %v9693_v47 = vmul.f32 %v9686_v42, %v22644_v6 }
 0xd38   : > { %v9713_v13 = vsel %vm1500_vm13, %v9693_v47, 0.0 }
 0xd39   : > { %9714 = vadd.xlane.f32.xlu1 %v9713_v13 }
 0xd3a   : > { %9717 = vadd.xlane.f32.xlu0 %v9716_v3 }
 0xdb7   : > { %v9700_v54 = vpop.xlane.xlu0 %9699 }
 0xdb8   : > { %v9724_v48 = vadd.f32 %v9722_v11, %v9700_v54  ;;  %v9697_v31 = vpop.xlane.xlu1 %9696 }
 0xdb9   : > { %v9723_v50 = vadd.f32 %v9722_v11, %v9697_v31 }
 0xdba   : > { %v15792_v8 = vmul.f32 -1.442695, %v9724_v48 }
 0xdbb   : > { %v15791_v5 = vmul.f32 -1.442695, %v9723_v50  ;;  %v9706_v57 = vpop.xlane.xlu0 %9705 }
 0xdbc   : > { %20755 = vpow2.f32 %v15792_v8  ;;  %v9726_v51 = vadd.f32 %v9722_v11, %v9706_v57 }
 0xdbd   : > { %20757 = vpow2.f32 %v15791_v5 }
 0xdbe   : > { %v15794_v42 = vmul.f32 -1.442695, %v9726_v51 }
 0xdbf   : > { %v9703_v41 = vpop.xlane.xlu0 %9702 }
 0xdc0   : > { %20759 = vpow2.f32 %v15794_v42  ;;  %v9725_v22 = vadd.f32 %v9722_v11, %v9703_v41  ;;  %v9709_v39 = vpop.xlane.xlu1 %9708 }
 0xdc1   : > { %v9727_v45 = vadd.f32 %v9722_v11, %v9709_v39 }
 0xdc2   : > { %v15793_v58 = vmul.f32 -1.442695, %v9725_v22 }
 0xdc3   : > { %v15795_v15 = vmul.f32 -1.442695, %v9727_v45  ;;  %v9712_v18 = vpop.xlane.xlu0 %9711 }
 0xdc4   : > { %20761 = vpow2.f32 %v15793_v58  ;;  %v9728_v21 = vadd.f32 %v9722_v11, %v9712_v18 }
 0xdc5   : > { %20763 = vpow2.f32 %v15795_v15 }
 0xdc6   : > { %v20756_v27 = vpop.eup %20755  ;;  %v15796_v62 = vmul.f32 -1.442695, %v9728_v21  ;;  %v9715_v12 = vpop.xlane.xlu1 %9714 }
 0xdc7   : > { %v20758_v26 = vpop.eup %20757  ;;  %v9756_v24 = vadd.f32 1.0, %v20756_v27  ;;  %v9729_v33 = vadd.f32 %v9722_v11, %v9715_v12  ;;  %v9718_v25 = vpop.xlane.xlu0 %9717 }
 0xdc8   : > { %v9755_v60 = vadd.f32 1.0, %v20758_v26  ;;  %20765 = vpow2.f32 %v15796_v62  ;;  %v9730_v52 = vadd.f32 %v9722_v11, %v9718_v25 }
 0xdc9   : > { %20767 = vrcp.f32 %v9756_v24  ;;  %v15797_v47 = vmul.f32 -1.442695, %v9729_v33 }
 0xdca   : > { %v20760_v13 = vpop.eup %20759  ;;  %20769 = vrcp.f32 %v9755_v60  ;;  %v15798_v3 = vmul.f32 -1.442695, %v9730_v52 }
 0xdcb   : > { %v9758_v20 = vadd.f32 1.0, %v20760_v13  ;;  %20771 = vpow2.f32 %v15797_v47 }
 0xdcc   : > { %20773 = vpow2.f32 %v15798_v3 }
 0xdcd   : > { %20775 = vrcp.f32 %v9758_v20 }
 0xdce   : > { %v20762_v54 = vpop.eup %20761 }
 0xdcf   : > { %v20764_v48 = vpop.eup %20763  ;;  %v9757_v31 = vadd.f32 1.0, %v20762_v54 }
 0xdd0   : > { %v9759_v8 = vadd.f32 1.0, %v20764_v48 }
 0xdd1   : > { %20777 = vrcp.f32 %v9757_v31  ;;  %v23666_v31 = vld [vmem:[#allocation80_spill] sm:$0xff] }
 0xdd2   : > { %v20766_v50 = vpop.eup %20765 }
 0xdd3   : > { %v20768_v5 = vpop.eup %20767  ;;  %v9760_v57 = vadd.f32 1.0, %v20766_v50 }
 0xdd4   : > { %v20770_v51 = vpop.eup %20769  ;;  %9786 = vperm.xlu0 %20585, %v20768_v5  }
 0xdd5   : > { %v20772_v11 = vpop.eup %20771  ;;  %20779 = vrcp.f32 %v9760_v57  ;;  %9781 = vperm.xlu1 %20586, %v20770_v51  }
 0xdd6   : > { %v20774_v42 = vpop.eup %20773  ;;  %20781 = vrcp.f32 %v9759_v8  ;;  %v9761_v41 = vadd.f32 1.0, %v20772_v11 }
 0xdd7   : > { %v20776_v22 = vpop.eup %20775  ;;  %v9762_v39 = vadd.f32 1.0, %v20774_v42 }
 0xdd9   : > { %20783 = vrcp.f32 %v9762_v39  ;;  %9796 = vperm.xlu1 %20586, %v20776_v22  }
 0xdda   : > { %20785 = vrcp.f32 %v9761_v41 }
 0xddb   : > { %v20778_v45 = vpop.eup %20777 }
 0xddd   : > { %9791 = vperm.xlu1 %20586, %v20778_v45  }
 0xddf   : > { %v20780_v58 = vpop.eup %20779 }
 0xde0   : > { %v20782_v15 = vpop.eup %20781  ;;  %9806 = vperm.xlu0 %20585, %v20780_v58   ;;  %v23668_v58 = vld [vmem:[#allocation82_spill] sm:$0xff] }
 0xde1   : > { %9801 = vperm.xlu1 %20586, %v20782_v15  }
 0xde3   : > { %v20784_v18 = vpop.eup %20783 }
 0xde4   : > { %v20786_v21 = vpop.eup %20785  ;;  %9816 = vperm.xlu0 %20585, %v20784_v18  }
 0xde5   : > { %9811 = vperm.xlu1 %20586, %v20786_v21  }
 0xe53   : > { %v9787_v27 = vpop.permute.xlu0 %9786 }
 0xe54   : > { %v9820_v62 = vmul.f32 %v9787_v27, %v22619_v16  ;;  %v9782_v12 = vpop.permute.xlu1 %9781 }
 0xe55   : > { %v9819_v26 = vmul.f32 %v9782_v12, %v22621_v28 }
 0xe56   : > { %v9828_v24 = vmul.f32 %v9820_v62, %v21953_v53 }
 0xe57   : > { %v9827_v33 = vmul.f32 %v9819_v26, %v21951_v14 }
 0xe58   : > { %v9839_v25 = vand.u32 4294901760, %v9828_v24  ;;  %v9797_v60 = vpop.permute.xlu1 %9796 }
 0xe59   : > { %v9836_v52 = vand.u32 4294901760, %v9827_v33  ;;  %v9822_v47 = vmul.f32 %v9797_v60, %v22625_v10 }
 0xe5a   : > { %v22662_v20 = vsub.f32 %v9828_v24, %v9839_v25 }
 0xe5b   : > { %v22659_v13 = vpack.c.bf16 %v9839_v25, %v9836_v52  ;;  %v9830_v3 = vmul.f32 %v9822_v47, %v21955_v34  ;;  %v22664_v54 = vsub.f32 %v9827_v33, %v9836_v52  ;;  %v23669_v25 = vld [vmem:[#allocation84_spill] sm:$0xff] }
 0xe5c   : > { %v9792_v16 = vpop.permute.xlu1 %9791  ;;  %v9938_v51 = vand.u32 4294901760, %v22662_v20 }
 0xe5d   : > { %v9821_v28 = vmul.f32 %v9792_v16, %v22628_v7  ;;  %19565 = vmatprep.subr.bf16.mxu1 %v22659_v13  ;;  %v9845_v48 = vand.u32 4294901760, %v9830_v3  ;;  %v9931_v57 = vand.u32 4294901760, %v22664_v54  ;;  %v23667_v7 = vld [vmem:[#allocation81_spill] sm:$0xff] }
 0xe5e   : > { %19567 = vmatpush3.bf16.msra.mxu1 %v22659_v13 }
 0xe5f   : > { %v9829_v50 = vmul.f32 %v9821_v28, %v23666_v31  ;;  %v9807_v8 = vpop.permute.xlu0 %9806  ;;  %v22674_v41 = vsub.f32 %v9830_v3, %v9845_v48  ;;  %v9932_v62 = vsub.f32 %v22664_v54, %v9931_v57  ;;  %v23670_v3 = vld [vmem:[#allocation86_spill] sm:$0xff] }
 0xe60   : > { %v9824_v10 = vmul.f32 %v9807_v8, %v22632_v63  ;;  %v9802_v5 = vpop.permute.xlu1 %9801 }
 0xe61   : > { %v9842_v11 = vand.u32 4294901760, %v9829_v50  ;;  %v9823_v42 = vmul.f32 %v9802_v5, %v22636_v43  ;;  %v9939_v43 = vsub.f32 %v22662_v20, %v9938_v51  ;;  %v9952_v60 = vand.u32 4294901760, %v22674_v41 }
 0xe62   : > { %v9832_v22 = vmul.f32 %v9824_v10, %v23667_v7 }
 0xe63   : > { %v22677_v39 = vpack.c.bf16 %v9845_v48, %v9842_v11  ;;  %v22679_v45 = vsub.f32 %v9829_v50, %v9842_v11  ;;  %v9831_v15 = vmul.f32 %v9823_v42, %v23668_v58  ;;  %v9817_v18 = vpop.permute.xlu0 %9816  ;;  %v9940_v48 = vand.u32 4294901760, %v9939_v43 }
 0xe64   : > { %v9851_v63 = vand.u32 4294901760, %v9832_v22  ;;  %v9826_v21 = vmul.f32 %v9817_v18, %v22639_v35  ;;  %v9812_v27 = vpop.permute.xlu1 %9811  ;;  %v9953_v42 = vsub.f32 %v22674_v41, %v9952_v60 }
 0xe65   : > { %v9848_v12 = vand.u32 4294901760, %v9831_v15  ;;  %v9825_v26 = vmul.f32 %v9812_v27, %v22644_v6  ;;  %19569 = vmatprep.subr.bf16.mxu1 %v22677_v39  ;;  %v9945_v24 = vand.u32 4294901760, %v22679_v45  ;;  %v9933_v6 = vand.u32 4294901760, %v9932_v62 }
 0xe66   : > { %v22692_v33 = vsub.f32 %v9832_v22, %v9851_v63  ;;  %v9834_v35 = vmul.f32 %v9826_v21, %v23669_v25  ;;  %19571 = vmatpush3.bf16.msra.mxu1 %v22677_v39 }
 0xe67   : > { %v22697_v52 = vpack.c.bf16 %v9851_v63, %v9848_v12  ;;  %v22699_v47 = vsub.f32 %v9831_v15, %v9848_v12  ;;  %v9833_v16 = vmul.f32 %v9825_v26, %v23670_v3  ;;  %v9946_v50 = vsub.f32 %v22679_v45, %v9945_v24 }
 0xe68   : > { %v9857_v28 = vand.u32 4294901760, %v9834_v35  ;;  %v23524_v5 = vand.u32 4294901760, %v22692_v33  ;;  %v19580_v18 = vpack.c.bf16 %v9940_v48, %v9933_v6  ;;  %v9954_v12 = vand.u32 4294901760, %v9953_v42  ;;  %v23671_v48 = vld [vmem:[#allocation2_spill] sm:$0xff] }
 0xe69   : > { %v9854_v8 = vand.u32 4294901760, %v9833_v16  ;;  %19573 = vmatprep.subr.bf16.mxu1 %v22697_v52  ;;  %v9959_v10 = vand.u32 4294901760, %v22699_v47  ;;  %v9947_v63 = vand.u32 4294901760, %v9946_v50 }
 0xe6a   : > { %v22708_v11 = vsub.f32 %v9834_v35, %v9857_v28  ;;  %19575 = vmatpush3.bf16.msra.mxu1 %v22697_v52  ;;  %v9967_v27 = vsub.f32 %v22692_v33, %v23524_v5 }
 0xe6b   : > { %v22714_v22 = vpack.c.bf16 %v9857_v28, %v9854_v8  ;;  %v22716_v15 = vsub.f32 %v9833_v16, %v9854_v8  ;;  %v9960_v21 = vsub.f32 %v22699_v47, %v9959_v10  ;;  %v19584_v26 = vpack.c.bf16 %v9954_v12, %v9947_v63 }
 0xe6c   : > { %v9980_v43 = vand.u32 4294901760, %v22708_v11  ;;  %v9968_v16 = vand.u32 4294901760, %v9967_v27  ;;  %v19596_v63 = vpack.c.bf16 %v22662_v20, %v22664_v54  ;;  %v23673_v27 = vld [vmem:[#allocation77_spill] sm:$0xff]  ;;  %v23677_v20 = vand.u32 4294901760, %v22692_v33 }
 0xe6d   : > { %19577 = vmatprep.subr.bf16.mxu1 %v22714_v22  ;;  %v9973_v62 = vand.u32 4294901760, %v22716_v15  ;;  %v9961_v35 = vand.u32 4294901760, %v9960_v21  ;;  %v23672_v21 = vld [vmem:[#allocation3_spill] sm:$0xff]  ;;  %v19608_v12 = vpack.c.bf16 %v22708_v11, %v22716_v15 }
 0xe6e   : > { %19579 = vmatpush3.bf16.msra.mxu1 %v22714_v22  ;;  %v9981_v6 = vsub.f32 %v22708_v11, %v9980_v43  ;;  %v19628_v11 = vpack.c.bf16 %v9938_v51, %v9931_v57  ;;  %v19636_v54 = vpack.c.bf16 %v23677_v20, %v9959_v10  ;;  %v15810_v51 = vld [vmem:[%s23401_s8 + $0x148] sm:$0xff] }
 0xe6f   : > { %19581 = vmatprep.subr.bf16.mxu1 %v19580_v18  ;;  %v9974_v28 = vsub.f32 %v22716_v15, %v9973_v62  ;;  %v19588_v50 = vpack.c.bf16 %v9968_v16, %v9961_v35  ;;  %v23675_v35 = vld [vmem:[#allocation78_spill] sm:$0xff]  ;;  %v23676_v15 = vld [vmem:[#allocation85_spill] sm:$0xff]  ;;  %v19632_v16 = vpack.c.bf16 %v9952_v60, %v9945_v24  ;;  %v19640_v57 = vpack.c.bf16 %v9980_v43, %v9973_v62  ;;  %v15811_v60 = vld [vmem:[%s23401_s8 + $0x150] sm:$0xff] }
 0xe70   : > { %v9982_v5 = vand.u32 4294901760, %v9981_v6 }
 0xe71   : > { %18135 = vmatmul.mubr.f32.vlgmr.msra.gmra.mrb[32].mxu1 %v22040_v44  ;;  %v9975_v8 = vand.u32 4294901760, %v9974_v28 }
 0xe72   : > { %19583 = vmatpush3.bf16.msra.mxu1 %v19580_v18  ;;  %18153 = vmatprep.mubr.msk.f32.mxu1 %vm4612_vm15, %v23671_v48  ;;  %v19600_v18 = vpack.c.bf16 %v22674_v41, %v22679_v45 }
 0xe73   : > { %19585 = vmatprep.subr.bf16.mxu1 %v19584_v26  ;;  %v19592_v42 = vpack.c.bf16 %v9982_v5, %v9975_v8  ;;  %v19604_v5 = vpack.c.bf16 %v22692_v33, %v22699_v47  ;;  %v10438_v47 = vand.u32 4294901760, %v15811_v60 }
 0xe76   : > { %19587 = vmatpush3.bf16.msra.mxu1 %v19584_v26  ;;  %v23674_v26 = vld [vmem:[#allocation83_spill] sm:$0xff] }
 0xe77   : > { %19589 = vmatprep.subr.bf16.mxu1 %v19588_v50 }
 0xe7a   : > { %19591 = vmatpush3.bf16.msra.mxu1 %v19588_v50  ;;  %v10536_v50 = vsub.f32 %v15811_v60, %v10438_v47 }
 0xe7b   : > { %19593 = vmatprep.subr.bf16.mxu1 %v19592_v42 }
 0xe7e   : > { %19595 = vmatpush3.bf16.msra.mxu1 %v19592_v42 }
 0xe7f   : > { %19597 = vmatprep.subr.bf16.mxu1 %v19596_v63 }
 0xe81   : > { %18154 = vmatmul.mubr.msk.f32.vlgmr.msra.gmra.mrb[32].mxu1 %vm4612_vm15, %v23672_v21 }
 0xe82   : > { %19599 = vmatpush3.bf16.msra.mxu1 %v19596_v63  ;;  %18172 = vmatprep.mubr.f32.mxu1 %v23673_v27 }
 0xe83   : > { %19601 = vmatprep.subr.bf16.mxu1 %v19600_v18 }
 0xe86   : > { %19603 = vmatpush3.bf16.msra.mxu1 %v19600_v18  ;;  %v10537_v18 = vand.u32 4294901760, %v10536_v50 }
 0xe87   : > { %19605 = vmatprep.subr.bf16.mxu1 %v19604_v5 }
 0xe8a   : > { %19607 = vmatpush3.bf16.msra.mxu1 %v19604_v5 }
 0xe8b   : > { %19609 = vmatprep.subr.bf16.mxu1 %v19608_v12 }
 0xe8e   : > { %19611 = vmatpush3.bf16.msra.mxu1 %v19608_v12 }
 0xe8f   : > { %19613 = vmatprep.subr.bf16.mxu1 %v22659_v13 }
 0xe91   : > { %18173 = vmatmul.mubr.f32.vlgmr.msra.gmra.mrb[32].mxu1 %v23674_v26 }
 0xe92   : > { %19615 = vmatpush3.bf16.msra.mxu1 %v22659_v13  ;;  %18191 = vmatprep.mubr.f32.mxu1 %v23675_v35 }
 0xe93   : > { %19617 = vmatprep.subr.bf16.mxu1 %v22677_v39 }
 0xe96   : > { %19619 = vmatpush3.bf16.msra.mxu1 %v22677_v39 }
 0xe97   : > { %19621 = vmatprep.subr.bf16.mxu1 %v22697_v52 }
 0xe9a   : > { %19623 = vmatpush3.bf16.msra.mxu1 %v22697_v52 }
 0xe9b   : > { %19625 = vmatprep.subr.bf16.mxu1 %v22714_v22 }
 0xe9e   : > { %19627 = vmatpush3.bf16.msra.mxu1 %v22714_v22 }
 0xe9f   : > { %19629 = vmatprep.subr.bf16.mxu1 %v19628_v11 }
 0xea1   : > { %18192 = vmatmul.mubr.f32.vlgmr.msra.gmra.mrb[32].mxu1 %v23676_v15 }
 0xea2   : > { %19631 = vmatpush3.bf16.msra.mxu1 %v19628_v11  ;;  %18210 = vmatprep.mubr.msk.f32.mxu1 %vm4612_vm15, %v23671_v48  ;;  %v10538_v11 = vsub.f32 %v10536_v50, %v10537_v18 }
 0xea3   : > { %19633 = vmatprep.subr.bf16.mxu1 %v19632_v16 }
 0xea4   : > { %v10539_v20 = vand.u32 4294901760, %v10538_v11 }
 0xea6   : > { %19635 = vmatpush3.bf16.msra.mxu1 %v19632_v16 }
 0xea7   : > { %19637 = vmatprep.subr.bf16.mxu1 %v19636_v54 }
 0xeaa   : > { %19639 = vmatpush3.bf16.msra.mxu1 %v19636_v54 }
 0xeab   : > { %19641 = vmatprep.subr.bf16.mxu1 %v19640_v57 }
 0xeae   : > { %19643 = vmatpush3.bf16.msra.mxu1 %v19640_v57 }
 0xeaf   : > { %19645 = vmatprep.subr.bf16.mxu1 %v22659_v13 }
 0xeb1   : > { %18211 = vmatmul.mubr.msk.f32.vlgmr.msra.gmra.mrb[32].mxu1 %vm4612_vm15, %v23672_v21 }
 0xeb2   : > { %19647 = vmatpush3.bf16.msra.mxu1 %v22659_v13  ;;  %18229 = vmatprep.mubr.msk.f32.mxu1 %vm4612_vm15, %v23671_v48  ;;  %v15809_v13 = vld [vmem:[%s23401_s8 + $0x140] sm:$0xff] }
 0xeb3   : > { %19649 = vmatprep.subr.bf16.mxu1 %v22677_v39  ;;  %v10432_v41 = vand.u32 4294901760, %v15809_v13 }
 0xeb5   : > { %v10522_v24 = vsub.f32 %v15809_v13, %v10432_v41 }
 0xeb6   : > { %19651 = vmatpush3.bf16.msra.mxu1 %v22677_v39  ;;  %v10435_v39 = vand.u32 4294901760, %v15810_v51 }
 0xeb7   : > { %19653 = vmatprep.subr.bf16.mxu1 %v22697_v52 }
 0xeb8   : > { %v22789_v45 = vpack.c.bf16 %v10435_v39, %v10432_v41  ;;  %v10529_v33 = vsub.f32 %v15810_v51, %v10435_v39 }
 0xeba   : > { %19655 = vmatpush3.bf16.msra.mxu1 %v22697_v52  ;;  %v15812_v52 = vld [vmem:[%s23401_s8 + $0x158] sm:$0xff]  ;;  %19661 = vmatprep.subr.bf16.mxu0 %v22789_v45  ;;  %v10530_v62 = vand.u32 4294901760, %v10529_v33  ;;  %v19676_v13 = vpack.c.bf16 %v10529_v33, %v10522_v24 }
 0xebb   : > { %19657 = vmatprep.subr.bf16.mxu1 %v22714_v22  ;;  %v10441_v10 = vand.u32 4294901760, %v15812_v52  ;;  %19663 = vmatpush3.bf16.msra.mxu0 %v22789_v45 }
 0xebc   : > { %v10531_v6 = vsub.f32 %v10529_v33, %v10530_v62 }
 0xebd   : > { %v22799_v43 = vpack.c.bf16 %v10441_v10, %v10438_v47  ;;  %v10543_v8 = vsub.f32 %v15812_v52, %v10441_v10 }
 0xebe   : > { %19659 = vmatpush3.bf16.msra.mxu1 %v22714_v22  ;;  %v10523_v22 = vand.u32 4294901760, %v10522_v24  ;;  %v10532_v63 = vand.u32 4294901760, %v10531_v6 }
 0xebf   : > { %19665 = vmatprep.subr.bf16.mxu0 %v22799_v43  ;;  %v10544_v5 = vand.u32 4294901760, %v10543_v8  ;;  %v19680_v51 = vpack.c.bf16 %v10543_v8, %v10536_v50 }
 0xec0   : > { %v10524_v28 = vsub.f32 %v10522_v24, %v10523_v22  ;;  %19667 = vmatpush3.bf16.msra.mxu0 %v22799_v43  ;;  %v19692_v41 = vpack.c.bf16 %v10530_v62, %v10523_v22  ;;  %v15805_v22 = vld [vmem:[%s23401_s8 + $0x120] sm:$0xff]  ;;  %v15806_v62 = vld [vmem:[%s23401_s8 + $0x128] sm:$0xff] }
 0xec1   : > { %18230 = vmatmul.mubr.msk.f32.vlgmr.msra.gmra.mrb[32].mxu1 %vm4612_vm15, %v23672_v21  ;;  %v10545_v16 = vsub.f32 %v10543_v8, %v10544_v5  ;;  %v19696_v39 = vpack.c.bf16 %v10544_v5, %v10537_v18  ;;  %v10960_v50 = vand.u32 4294901760, %v15805_v22  ;;  %v10963_v8 = vand.u32 4294901760, %v15806_v62  ;;  %v15807_v18 = vld [vmem:[%s23401_s8 + $0x130] sm:$0xff]  ;;  %v15808_v5 = vld [vmem:[%s23401_s8 + $0x138] sm:$0xff] }
 0xec2   : > { %v10525_v42 = vand.u32 4294901760, %v10524_v28 }
 0xec3   : > { %v10546_v54 = vand.u32 4294901760, %v10545_v16 }
 0xec4   : > { %v19668_v12 = vpack.c.bf16 %v10532_v63, %v10525_v42 }
 0xec5   : > { %v19672_v57 = vpack.c.bf16 %v10546_v54, %v10539_v20  ;;  %v10969_v54 = vand.u32 4294901760, %v15808_v5 }
 0xec6   : > { %19669 = vmatprep.subr.bf16.mxu0 %v19668_v12 }
 0xf94   : > { %v18231_v60 = vpop.f32.mrb[32].mxu1 }
 0xf95   : > { %v10429_v52 = vsel %vm1500_vm13, %v18231_v60, 0  ;;  %v10405_v47 = vpop.f32.mrb[33].mxu1 }
 0xf96   : > { %v22804_v10 = vand.u32 4294901760, %v10429_v52  ;;  %v10426_v28 = vsel %vm1500_vm13, %v10405_v47, 0  ;;  %v11071_v47 = vsub.f32 %v15808_v5, %v10969_v54 }
 0xf97   : > { %v10500_v6 = vand.u32 4294901760, %v10426_v28 }
 0xf98   : > { %v10511_v42 = vsub.f32 %v10429_v52, %v22804_v10 }
 0xf99   : > { %v10501_v63 = vsub.f32 %v10426_v28, %v10500_v6 }
 0xf9a   : > { %v10512_v15 = vand.u32 4294901760, %v10511_v42 }
 0xf9b   : > { %v10502_v11 = vand.u32 4294901760, %v10501_v63 }
 0xf9c   : > { %v10513_v16 = vsub.f32 %v10511_v42, %v10512_v15 }
 0xf9d   : > { %v10503_v20 = vsub.f32 %v10501_v63, %v10502_v11 }
 0xf9e   : > { %v10514_v33 = vand.u32 4294901760, %v10513_v16 }
 0xf9f   : > { %v10504_v24 = vand.u32 4294901760, %v10503_v20 }
 0xfa1   : > { %18240 = vmatprep.mubr.f32.mxu0 %v10504_v24 }
 0xfa2   : > { %18241 = vmatmul.mubr.f32.vlgmr.msra.gmra.mrb[30].mxu0 %v10514_v33 }
 0xfa3   : > { %19671 = vmatpush3.bf16.msra.mxu0 %v19668_v12  ;;  %18251 = vmatprep.mubr.f32.mxu0 %v10500_v6  ;;  %v10966_v12 = vand.u32 4294901760, %v15807_v18 }
 0xfa4   : > { %19673 = vmatprep.subr.bf16.mxu0 %v19672_v57 }
 0xfa5   : > { %v11064_v52 = vsub.f32 %v15807_v18, %v10966_v12 }
 0xfa7   : > { %19675 = vmatpush3.bf16.msra.mxu0 %v19672_v57  ;;  %v11050_v57 = vsub.f32 %v15805_v22, %v10960_v50 }
 0xfa8   : > { %19677 = vmatprep.subr.bf16.mxu0 %v19676_v13 }
 0xfaa   : > { %18252 = vmatmul.mubr.f32.vlgmr.msra.gmra.mrb[30].mxu0 %v22804_v10 }
 0xfab   : > { %19679 = vmatpush3.bf16.msra.mxu0 %v19676_v13  ;;  %18262 = vmatprep.mubr.f32.mxu0 %v10501_v63  ;;  %v11057_v13 = vsub.f32 %v15806_v62, %v10963_v8  ;;  %v11072_v63 = vand.u32 4294901760, %v11071_v47  ;;  %v15817_v62 = vld [vmem:[%s23401_s8 + $0x170] sm:$0xff] }
 0xfac   : > { %19681 = vmatprep.subr.bf16.mxu0 %v19680_v51 }
 0xfad   : > { %v11058_v60 = vand.u32 4294901760, %v11057_v13  ;;  %v11073_v24 = vsub.f32 %v11071_v47, %v11072_v63 }
 0xfaf   : > { %19683 = vmatpush3.bf16.msra.mxu0 %v19680_v51  ;;  %v11051_v51 = vand.u32 4294901760, %v11050_v57  ;;  %v11059_v28 = vsub.f32 %v11057_v13, %v11058_v60  ;;  %v11074_v33 = vand.u32 4294901760, %v11073_v24 }
 0xfb0   : > { %19685 = vmatprep.subr.bf16.mxu0 %v22789_v45 }
 0xfb1   : > { %v11060_v16 = vand.u32 4294901760, %v11059_v28 }
 0xfb2   : > { %18263 = vmatmul.mubr.f32.vlgmr.msra.gmra.mrb[30].mxu0 %v10511_v42  ;;  %v11065_v42 = vand.u32 4294901760, %v11064_v52 }
 0xfb3   : > { %19687 = vmatpush3.bf16.msra.mxu0 %v22789_v45  ;;  %18273 = vmatprep.mubr.f32.mxu0 %v10502_v11 }
 0xfb4   : > { %19689 = vmatprep.subr.bf16.mxu0 %v22799_v43  ;;  %v11066_v20 = vsub.f32 %v11064_v52, %v11065_v42 }
 0xfb7   : > { %19691 = vmatpush3.bf16.msra.mxu0 %v22799_v43 }
 0xfb8   : > { %19693 = vmatprep.subr.bf16.mxu0 %v19692_v41 }
 0xfba   : > { %18274 = vmatmul.mubr.f32.vlgmr.msra.gmra.mrb[30].mxu0 %v10512_v15  ;;  %v19708_v15 = vpack.c.bf16 %v10963_v8, %v10960_v50 }
 0xfbb   : > { %19695 = vmatpush3.bf16.msra.mxu0 %v19692_v41  ;;  %18284 = vmatprep.mubr.f32.mxu0 %v10500_v6  ;;  %v11052_v41 = vsub.f32 %v11050_v57, %v11051_v51 }
 0xfbc   : > { %19697 = vmatprep.subr.bf16.mxu0 %v19696_v39 }
 0xfbd   : > { %v11053_v11 = vand.u32 4294901760, %v11052_v41 }
 0xfbf   : > { %19699 = vmatpush3.bf16.msra.mxu0 %v19696_v39  ;;  %v19712_v39 = vpack.c.bf16 %v10969_v54, %v10966_v12 }
 0xfc0   : > { %19701 = vmatprep.subr.bf16.mxu0 %v22789_v45 }
 0xfc2   : > { %18285 = vmatmul.mubr.f32.vlgmr.msra.gmra.mrb[30].mxu0 %v22804_v10 }
 0xfc3   : > { %19703 = vmatpush3.bf16.msra.mxu0 %v22789_v45  ;;  %18295 = vmatprep.mubr.f32.mxu0 %v10500_v6  ;;  %v19716_v45 = vpack.c.bf16 %v11060_v16, %v11053_v11  ;;  %v11067_v6 = vand.u32 4294901760, %v11066_v20 }
 0xfc4   : > { %19705 = vmatprep.subr.bf16.mxu0 %v22799_v43 }
 0xfc5   : > { %v19720_v22 = vpack.c.bf16 %v11074_v33, %v11067_v6 }
 0xfc7   : > { %19707 = vmatpush3.bf16.msra.mxu0 %v22799_v43  ;;  %v19724_v43 = vpack.c.bf16 %v11057_v13, %v11050_v57 }
 0xfc8   : > { %19709 = vmatprep.subr.bf16.mxu0 %v19708_v15 }
 0xfca   : > { %18296 = vmatmul.mubr.f32.vlgmr.msra.gmra.mrb[30].mxu0 %v22804_v10  ;;  %v19728_v10 = vpack.c.bf16 %v11071_v47, %v11064_v52 }
 0xfcb   : > { %19711 = vmatpush3.bf16.msra.mxu0 %v19708_v15  ;;  %18306 = vmatprep.mubr.f32.mxu0 %v22294_v30  ;;  %v19740_v30 = vpack.c.bf16 %v11058_v60, %v11051_v51 }
 0xfcc   : > { %19713 = vmatprep.subr.bf16.mxu0 %v19712_v39 }
 0xfcf   : > { %19715 = vmatpush3.bf16.msra.mxu0 %v19712_v39 }
 0xfd0   : > { %19717 = vmatprep.subr.bf16.mxu0 %v19716_v45 }
 0xfd2   : > { %18307 = vmatmul.mubr.f32.vlgmr.msra.gmra.mrb[30].mxu0 %v22296_v4  ;;  %v19744_v4 = vpack.c.bf16 %v11072_v63, %v11065_v42 }
 0xfd3   : > { %19719 = vmatpush3.bf16.msra.mxu0 %v19716_v45  ;;  %18317 = vmatprep.mubr.f32.mxu0 %v22276_v32 }
 0xfd4   : > { %19721 = vmatprep.subr.bf16.mxu0 %v19720_v22 }
 0xfd7   : > { %19723 = vmatpush3.bf16.msra.mxu0 %v19720_v22  ;;  %v22866_v22 = vld [vmem:[%s23402_s9 + $0x8] sm:$0xff] }
 0xfd8   : > { %19725 = vmatprep.subr.bf16.mxu0 %v19724_v43 }
 0xfda   : > { %18318 = vmatmul.mubr.f32.vlgmr.msra.gmra.mrb[30].mxu0 %v22272_v56 }
 0xfdb   : > { %19727 = vmatpush3.bf16.msra.mxu0 %v19724_v43  ;;  %18328 = vmatprep.mubr.f32.mxu0 %v22282_v29  ;;  %v15816_v29 = vld [vmem:[%s23401_s8 + $0x168] sm:$0xff]  ;;  %v23678_v43 = vsub.s32 5, %v20975_v1 }
 0xfdc   : > { %19729 = vmatprep.subr.bf16.mxu0 %v19728_v10 }
 0xfdf   : > { %19731 = vmatpush3.bf16.msra.mxu0 %v19728_v10  ;;  %v11490_v10 = vrot.slane %v22866_v22, %v23678_v43  ;;  %v15821_v43 = vld [vmem:[%s23401_s8 + $0x190] sm:$0xff] }
 0xfe0   : > { %19733 = vmatprep.subr.bf16.mxu0 %v19708_v15 }
 0xfe2   : > { %18329 = vmatmul.mubr.f32.vlgmr.msra.gmra.mrb[30].mxu0 %v22279_v23  ;;  %v15815_v23 = vld [vmem:[%s23401_s8 + $0x160] sm:$0xff] }
 0xfe3   : > { %19735 = vmatpush3.bf16.msra.mxu0 %v19708_v15  ;;  %18339 = vmatprep.mubr.f32.mxu0 %v22288_v40  ;;  %v11522_v40 = vand.u32 4294901760, %v15816_v29 }
 0xfe4   : > { %19737 = vmatprep.subr.bf16.mxu0 %v19712_v39 }
 0xfe5   : > { %v11616_v5 = vsub.f32 %v15816_v29, %v11522_v40 }
 0xfe7   : > { %19739 = vmatpush3.bf16.msra.mxu0 %v19712_v39  ;;  %v11617_v57 = vand.u32 4294901760, %v11616_v5 }
 0xfe8   : > { %19741 = vmatprep.subr.bf16.mxu0 %v19740_v30 }
 0xfe9   : > { %v11618_v52 = vsub.f32 %v11616_v5, %v11617_v57 }
 0xfea   : > { %18340 = vmatmul.mubr.f32.vlgmr.msra.gmra.mrb[30].mxu0 %v22285_v38  ;;  %v11519_v38 = vand.u32 4294901760, %v15815_v23 }
 0xfeb   : > { %19743 = vmatpush3.bf16.msra.mxu0 %v19740_v30  ;;  %18350 = vmatprep.mubr.f32.mxu0 %v22276_v32  ;;  %v11619_v28 = vand.u32 4294901760, %v11618_v52 }
 0xfec   : > { %19745 = vmatprep.subr.bf16.mxu0 %v19744_v4  ;;  %v22855_v50 = vpack.c.bf16 %v11522_v40, %v11519_v38  ;;  %v11609_v18 = vsub.f32 %v15815_v23, %v11519_v38 }
 0xfee   : > { %19757 = vmatprep.subr.bf16.mxu1 %v22855_v50  ;;  %v11610_v54 = vand.u32 4294901760, %v11609_v18  ;;  %v19772_v24 = vpack.c.bf16 %v11616_v5, %v11609_v18 }
 0xfef   : > { %19747 = vmatpush3.bf16.msra.mxu0 %v19744_v4  ;;  %19759 = vmatpush3.bf16.msra.mxu1 %v22855_v50 }
 0xff0   : > { %19749 = vmatprep.subr.bf16.mxu0 %v19708_v15  ;;  %v11611_v13 = vsub.f32 %v11609_v18, %v11610_v54  ;;  %v19788_v6 = vpack.c.bf16 %v11617_v57, %v11610_v54 }
 0xff2   : > { %18351 = vmatmul.mubr.f32.vlgmr.msra.gmra.mrb[30].mxu0 %v22272_v56  ;;  %v11612_v47 = vand.u32 4294901760, %v11611_v13 }
 0xff3   : > { %19751 = vmatpush3.bf16.msra.mxu0 %v19708_v15  ;;  %18361 = vmatprep.mubr.f32.mxu0 %v22276_v32  ;;  %v15818_v32 = vld [vmem:[%s23401_s8 + $0x178] sm:$0xff] }
 0xff4   : > { %19753 = vmatprep.subr.bf16.mxu0 %v19712_v39  ;;  %v11528_v8 = vand.u32 4294901760, %v15818_v32 }
 0xff6   : > { %v11630_v60 = vsub.f32 %v15818_v32, %v11528_v8 }
 0xff7   : > { %19755 = vmatpush3.bf16.msra.mxu0 %v19712_v39  ;;  %v19764_v39 = vpack.c.bf16 %v11619_v28, %v11612_v47 }
 0xff8   : > { %v11631_v41 = vand.u32 4294901760, %v11630_v60 }
 0xffa   : > { %18362 = vmatmul.mubr.f32.vlgmr.msra.gmra.mrb[30].mxu0 %v22272_v56  ;;  %v11525_v56 = vand.u32 4294901760, %v15817_v62  ;;  %v11632_v63 = vsub.f32 %v11630_v60, %v11631_v41 }
 0xffc   : > { %v22858_v12 = vpack.c.bf16 %v11528_v8, %v11525_v56  ;;  %v11623_v51 = vsub.f32 %v15817_v62, %v11525_v56  ;;  %v11633_v16 = vand.u32 4294901760, %v11632_v63 }
 0xffe   : > { %19761 = vmatprep.subr.bf16.mxu1 %v22858_v12  ;;  %v11624_v15 = vand.u32 4294901760, %v11623_v51  ;;  %v19776_v45 = vpack.c.bf16 %v11630_v60, %v11623_v51 }
 0xfff   : > { %19763 = vmatpush3.bf16.msra.mxu1 %v22858_v12 }
0x1000   : > { %v11625_v42 = vsub.f32 %v11623_v51, %v11624_v15  ;;  %19765 = vmatprep.subr.bf16.mxu1 %v19764_v39  ;;  %v19792_v33 = vpack.c.bf16 %v11631_v41, %v11624_v15 }
0x1002   : > { %v11626_v11 = vand.u32 4294901760, %v11625_v42 }
0x1004   : > { %v19768_v20 = vpack.c.bf16 %v11633_v16, %v11626_v11 }
0x10cd   : > { %v18363_v30 = vpop.f32.mrb[30].mxu0 }
0x10ce   : > { %v11492_v4 = vadd.f32 %v18363_v30, %v11490_v10  ;;  %v11477_v23 = vpop.f32.mrb[31].mxu0  ;;  %v15825_v30 = vld [vmem:[%s23401_s8 + $0x1b0] sm:$0xff] }
0x10cf   : > { %v11491_v29 = vadd.f32 %v11490_v10, %v11477_v23  ;;  %v15822_v10 = vld [vmem:[%s23401_s8 + $0x198] sm:$0xff]  ;;  %v12079_v23 = vand.u32 4294901760, %v15821_v43 }
0x10d0   : > { %v15814_v38 = vmul.f32 -1.442695, %v11492_v4 }
0x10d1   : > { %v15813_v40 = vmul.f32 -1.442695, %v11491_v29 }
0x10d2   : > { %20787 = vpow2.f32 %v15814_v38  ;;  %v15826_v38 = vld [vmem:[%s23401_s8 + $0x1b8] sm:$0xff] }
0x10d3   : > { %20789 = vpow2.f32 %v15813_v40  ;;  %v12607_v40 = vand.u32 4294901760, %v15825_v30 }
0x10dc   : > { %v20788_v62 = vpop.eup %20787 }
0x10dd   : > { %v20790_v32 = vpop.eup %20789  ;;  %v11500_v56 = vadd.f32 1.0, %v20788_v62 }
0x10de   : > { %v11499_v8 = vadd.f32 1.0, %v20790_v32  ;;  %v12610_v32 = vand.u32 4294901760, %v15826_v38 }
0x10df   : > { %20791 = vrcp.f32 %v11500_v56 }
0x10e0   : > { %20793 = vrcp.f32 %v11499_v8 }
0x10e9   : > { %v20792_v18 = vpop.eup %20791 }
0x10ea   : > { %v20794_v5 = vpop.eup %20793  ;;  %v11506_v54 = vmul.f32 %v20792_v18, %v11492_v4 }
0x10eb   : > { %v11505_v57 = vmul.f32 %v20794_v5, %v11491_v29  ;;  %v12082_v29 = vand.u32 4294901760, %v15822_v10 }
0x10ec   : > { %v11516_v13 = vsel %vm1500_vm13, %v11506_v54, 0 }
0x10ed   : > { %v11597_v51 = vand.u32 4294901760, %v11516_v13  ;;  %v11513_v60 = vsel %vm1500_vm13, %v11505_v57, 0  ;;  %v22910_v18 = vpack.c.bf16 %v12082_v29, %v12079_v23  ;;  %v22914_v57 = vpack.c.bf16 %v12610_v32, %v12607_v40 }
0x10ee   : > { %v11587_v52 = vand.u32 4294901760, %v11513_v60 }
0x10ef   : > { %v11598_v47 = vsub.f32 %v11516_v13, %v11597_v51 }
0x10f0   : > { %v11588_v15 = vsub.f32 %v11513_v60, %v11587_v52 }
0x10f1   : > { %v11599_v41 = vand.u32 4294901760, %v11598_v47 }
0x10f2   : > { %v11589_v28 = vand.u32 4294901760, %v11588_v15 }
0x10f3   : > { %v11600_v42 = vsub.f32 %v11598_v47, %v11599_v41 }
0x10f4   : > { %v11590_v63 = vsub.f32 %v11588_v15, %v11589_v28 }
0x10f5   : > { %v11601_v16 = vand.u32 4294901760, %v11600_v42  ;;  %v12705_v42 = vsub.f32 %v15825_v30, %v12607_v40 }
0x10f6   : > { %v11591_v11 = vand.u32 4294901760, %v11590_v63  ;;  %v12712_v63 = vsub.f32 %v15826_v38, %v12610_v32 }
0x10f8   : > { %18372 = vmatprep.mubr.f32.mxu1 %v11591_v11  ;;  %v19872_v25 = vpack.c.bf16 %v12712_v63, %v12705_v42 }
0x10f9   : > { %18373 = vmatmul.mubr.f32.vlgmr.msra.gmra.mrb[34].mxu1 %v11601_v16 }
0x10fa   : > { %19767 = vmatpush3.bf16.msra.mxu1 %v19764_v39  ;;  %18383 = vmatprep.mubr.f32.mxu1 %v11587_v52  ;;  %v15819_v39 = vld [vmem:[%s23401_s8 + $0x180] sm:$0xff] }
0x10fb   : > { %19769 = vmatprep.subr.bf16.mxu1 %v19768_v20 }
0x10fe   : > { %19771 = vmatpush3.bf16.msra.mxu1 %v19768_v20  ;;  %v15820_v20 = vld [vmem:[%s23401_s8 + $0x188] sm:$0xff] }
0x10ff   : > { %19773 = vmatprep.subr.bf16.mxu1 %v19772_v24 }
0x1101   : > { %18384 = vmatmul.mubr.f32.vlgmr.msra.gmra.mrb[34].mxu1 %v11597_v51 }
0x1102   : > { %19775 = vmatpush3.bf16.msra.mxu1 %v19772_v24  ;;  %18394 = vmatprep.mubr.f32.mxu1 %v11588_v15  ;;  %v15823_v24 = vld [vmem:[%s23401_s8 + $0x1a0] sm:$0xff]  ;;  %v12184_v15 = vsub.f32 %v15822_v10, %v12082_v29 }
0x1103   : > { %19777 = vmatprep.subr.bf16.mxu1 %v19776_v45 }
0x1106   : > { %19779 = vmatpush3.bf16.msra.mxu1 %v19776_v45  ;;  %v12073_v45 = vand.u32 4294901760, %v15819_v39 }
0x1107   : > { %19781 = vmatprep.subr.bf16.mxu1 %v22855_v50 }
0x1108   : > { %v12163_v56 = vsub.f32 %v15819_v39, %v12073_v45 }
0x1109   : > { %18395 = vmatmul.mubr.f32.vlgmr.msra.gmra.mrb[34].mxu1 %v11598_v47  ;;  %v12177_v47 = vsub.f32 %v15821_v43, %v12079_v23 }
0x110a   : > { %19783 = vmatpush3.bf16.msra.mxu1 %v22855_v50  ;;  %18405 = vmatprep.mubr.f32.mxu1 %v11589_v28  ;;  %v12164_v13 = vand.u32 4294901760, %v12163_v56 }
0x110b   : > { %19785 = vmatprep.subr.bf16.mxu1 %v22858_v12  ;;  %v12178_v39 = vand.u32 4294901760, %v12177_v47  ;;  %v19824_v44 = vpack.c.bf16 %v12184_v15, %v12177_v47 }
0x110d   : > { %v12179_v43 = vsub.f32 %v12177_v47, %v12178_v39 }
0x110e   : > { %19787 = vmatpush3.bf16.msra.mxu1 %v22858_v12 }
0x110f   : > { %19789 = vmatprep.subr.bf16.mxu1 %v19788_v6  ;;  %v12180_v40 = vand.u32 4294901760, %v12179_v43 }
0x1111   : > { %18406 = vmatmul.mubr.f32.vlgmr.msra.gmra.mrb[34].mxu1 %v11599_v41  ;;  %v12165_v41 = vsub.f32 %v12163_v56, %v12164_v13 }
0x1112   : > { %19791 = vmatpush3.bf16.msra.mxu1 %v19788_v6  ;;  %18416 = vmatprep.mubr.f32.mxu1 %v11587_v52  ;;  %v15824_v6 = vld [vmem:[%s23401_s8 + $0x1a8] sm:$0xff] }
0x1113   : > { %19793 = vmatprep.subr.bf16.mxu1 %v19792_v33 }
0x1116   : > { %19795 = vmatpush3.bf16.msra.mxu1 %v19792_v33  ;;  %v12604_v33 = vand.u32 4294901760, %v15824_v6 }
0x1117   : > { %19797 = vmatprep.subr.bf16.mxu1 %v22855_v50 }
0x1118   : > { %v12698_v54 = vsub.f32 %v15824_v6, %v12604_v33  ;;  %v12713_v6 = vand.u32 4294901760, %v12712_v63 }
0x1119   : > { %18417 = vmatmul.mubr.f32.vlgmr.msra.gmra.mrb[34].mxu1 %v11597_v51 }
0x111a   : > { %19799 = vmatpush3.bf16.msra.mxu1 %v22855_v50  ;;  %18427 = vmatprep.mubr.f32.mxu1 %v11587_v52  ;;  %v12076_v50 = vand.u32 4294901760, %v15820_v20  ;;  %v12699_v52 = vand.u32 4294901760, %v12698_v54  ;;  %v12714_v30 = vsub.f32 %v12712_v63, %v12713_v6 }
0x111b   : > { %19801 = vmatprep.subr.bf16.mxu1 %v22858_v12 }
0x111c   : > { %v22902_v4 = vpack.c.bf16 %v12076_v50, %v12073_v45  ;;  %v12170_v8 = vsub.f32 %v15820_v20, %v12076_v50  ;;  %v12700_v16 = vsub.f32 %v12698_v54, %v12699_v52  ;;  %v12185_v20 = vand.u32 4294901760, %v12184_v15 }
0x111d   : > { %v12706_v50 = vand.u32 4294901760, %v12705_v42  ;;  %v12715_v26 = vand.u32 4294901760, %v12714_v30 }
0x111e   : > { %19803 = vmatpush3.bf16.msra.mxu1 %v22858_v12  ;;  %v12601_v12 = vand.u32 4294901760, %v15823_v24  ;;  %19805 = vmatprep.subr.bf16.mxu0 %v22902_v4  ;;  %v12186_v10 = vsub.f32 %v12184_v15, %v12185_v20  ;;  %v19820_v27 = vpack.c.bf16 %v12170_v8, %v12163_v56 }
0x111f   : > { %19807 = vmatpush3.bf16.msra.mxu0 %v22902_v4  ;;  %v12707_v29 = vsub.f32 %v12705_v42, %v12706_v50 }
0x1120   : > { %v22907_v62 = vpack.c.bf16 %v12604_v33, %v12601_v12  ;;  %v12691_v5 = vsub.f32 %v15823_v24, %v12601_v12  ;;  %19809 = vmatprep.subr.bf16.mxu0 %v22910_v18  ;;  %v12166_v24 = vand.u32 4294901760, %v12165_v41  ;;  %v12701_v33 = vand.u32 4294901760, %v12700_v16 }
0x1121   : > { %18428 = vmatmul.mubr.f32.vlgmr.msra.gmra.mrb[34].mxu1 %v11597_v51  ;;  %v12171_v51 = vand.u32 4294901760, %v12170_v8  ;;  %v12187_v32 = vand.u32 4294901760, %v12186_v10  ;;  %v12708_v35 = vand.u32 4294901760, %v12707_v29 }
0x1122   : > { %19853 = vmatprep.subr.bf16.mxu1 %v22907_v62  ;;  %v12692_v60 = vand.u32 4294901760, %v12691_v5  ;;  %v19868_v21 = vpack.c.bf16 %v12698_v54, %v12691_v5 }
0x1123   : > { %19855 = vmatpush3.bf16.msra.mxu1 %v22907_v62  ;;  %v12172_v28 = vsub.f32 %v12170_v8, %v12171_v51  ;;  %19811 = vmatpush3.bf16.msra.mxu0 %v22910_v18  ;;  %v19816_v41 = vpack.c.bf16 %v12187_v32, %v12180_v40 }
0x1124   : > { %19857 = vmatprep.subr.bf16.mxu1 %v22914_v57  ;;  %v12693_v11 = vsub.f32 %v12691_v5, %v12692_v60  ;;  %v22923_v16 = vpack.c.bf16 %v12699_v52, %v12692_v60 }
0x1125   : > { %v12173_v45 = vand.u32 4294901760, %v12172_v28  ;;  %v19864_v28 = vpack.c.bf16 %v12715_v26, %v12708_v35 }
0x1126   : > { %v12694_v12 = vand.u32 4294901760, %v12693_v11  ;;  %v22921_v11 = vpack.c.bf16 %v12171_v51, %v12164_v13 }
0x1127   : > { %19859 = vmatpush3.bf16.msra.mxu1 %v22914_v57  ;;  %v19812_v23 = vpack.c.bf16 %v12173_v45, %v12166_v24  ;;  %v22925_v24 = vpack.c.bf16 %v12185_v20, %v12178_v39  ;;  %v22927_v45 = vpack.c.bf16 %v12713_v6, %v12706_v50 }
0x1128   : > { %v19860_v38 = vpack.c.bf16 %v12701_v33, %v12694_v12  ;;  %v23679_v12 = vsub.s32 6, %v20975_v1 }
0x1129   : > { %19813 = vmatprep.subr.bf16.mxu0 %v19812_v23 }
0x112a   : > { %19861 = vmatprep.subr.bf16.mxu1 %v19860_v38  ;;  %v12051_v33 = vrot.slane %v22866_v22, %v23679_v12 }
0x11f4   : > { %v18429_v43 = vpop.f32.mrb[34].mxu1 }
0x11f5   : > { %v12047_v10 = vadd.f32 %v18429_v43, %v22265_v2  ;;  %v12036_v26 = vpop.f32.mrb[35].mxu1 }
0x11f6   : > { %v12046_v35 = vadd.f32 %v12036_v26, %v22268_v37 }
0x11f7   : > { %v12053_v56 = vadd.f32 %v12051_v33, %v12047_v10 }
0x11f8   : > { %v12052_v8 = vadd.f32 %v12051_v33, %v12046_v35 }
0x11f9   : > { %v22935_v5 = vmul.f32 %v12053_v56, %v22260_v0 }
0x11fa   : > { %v22938_v54 = vmul.f32 %v12052_v8, %v22262_v59  ;;  %v23680_v8 = vld [vmem:[#allocation42_spill] sm:$0xff] }
0x11fb   : > { %v12070_v13 = vsel %vm1500_vm13, %v22935_v5, 0 }
0x11fc   : > { %v22942_v1 = vand.u32 4294901760, %v12070_v13  ;;  %v12067_v22 = vsel %vm1500_vm13, %v22938_v54, 0 }
0x11fd   : > { %v22946_v2 = vand.u32 4294901760, %v12067_v22 }
0x11fe   : > { %v12152_v37 = vsub.f32 %v12070_v13, %v22942_v1  ;;  %v23681_v13 = vld [vmem:[#allocation43_spill] sm:$0xff] }
0x11ff   : > { %v12142_v51 = vsub.f32 %v12067_v22, %v22946_v2  ;;  %v23685_v22 = vld [vmem:[#allocation24_spill] sm:$0xff] }
0x1200   : > { %v12153_v60 = vand.u32 4294901760, %v12152_v37 }
0x1201   : > { %v12143_v52 = vand.u32 4294901760, %v12142_v51 }
0x1202   : > { %v12154_v47 = vsub.f32 %v12152_v37, %v12153_v60 }
0x1203   : > { %v12144_v15 = vsub.f32 %v12142_v51, %v12143_v52 }
0x1204   : > { %v12155_v63 = vand.u32 4294901760, %v12154_v47  ;;  %v23694_v47 = vld [vmem:[#allocation29_spill] sm:$0xff] }
0x1205   : > { %v12145_v42 = vand.u32 4294901760, %v12144_v15  ;;  %v23695_v15 = vld [vmem:[#allocation34_spill] sm:$0xff] }
0x1207   : > { %18438 = vmatprep.mubr.f32.mxu0 %v12145_v42  ;;  %18504 = vmatprep.mubr.f32.mxu1 %v12145_v42  ;;  %v23696_v42 = vld [vmem:[#allocation36_spill] sm:$0xff] }
0x1208   : > { %18439 = vmatmul.mubr.f32.vlgmr.msra.gmra.mrb[32].mxu0 %v12155_v63  ;;  %18505 = vmatmul.mubr.f32.vlgmr.msra.gmra.mrb[36].mxu1 %v12155_v63  ;;  %v23697_v63 = vld [vmem:[#allocation38_spill] sm:$0xff] }
0x1209   : > { %19815 = vmatpush3.bf16.msra.mxu0 %v19812_v23  ;;  %18449 = vmatprep.mubr.f32.mxu0 %v22946_v2 }
0x120a   : > { %19863 = vmatpush3.bf16.msra.mxu1 %v19860_v38  ;;  %18515 = vmatprep.mubr.f32.mxu1 %v22946_v2 }
0x120b   : > { %19817 = vmatprep.subr.bf16.mxu0 %v19816_v41  ;;  %19865 = vmatprep.subr.bf16.mxu1 %v19864_v28 }
0x120d   : > { %19819 = vmatpush3.bf16.msra.mxu0 %v19816_v41 }
0x120e   : > { %19867 = vmatpush3.bf16.msra.mxu1 %v19864_v28  ;;  %19821 = vmatprep.subr.bf16.mxu0 %v19820_v27 }
0x120f   : > { %19869 = vmatprep.subr.bf16.mxu1 %v19868_v21 }
0x1210   : > { %18450 = vmatmul.mubr.f32.vlgmr.msra.gmra.mrb[32].mxu0 %v22942_v1 }
0x1211   : > { %18516 = vmatmul.mubr.f32.vlgmr.msra.gmra.mrb[36].mxu1 %v22942_v1  ;;  %19823 = vmatpush3.bf16.msra.mxu0 %v19820_v27 }
0x1212   : > { %18460 = vmatprep.mubr.f32.mxu0 %v12142_v51  ;;  %19871 = vmatpush3.bf16.msra.mxu1 %v19868_v21 }
0x1213   : > { %18526 = vmatprep.mubr.f32.mxu1 %v12142_v51  ;;  %19825 = vmatprep.subr.bf16.mxu0 %v19824_v44  ;;  %v23691_v51 = vld [vmem:[#allocation23_spill] sm:$0xff] }
0x1214   : > { %19873 = vmatprep.subr.bf16.mxu1 %v19872_v25 }
0x1215   : > { %19827 = vmatpush3.bf16.msra.mxu0 %v19824_v44 }
0x1216   : > { %19875 = vmatpush3.bf16.msra.mxu1 %v19872_v25  ;;  %19829 = vmatprep.subr.bf16.mxu0 %v22902_v4 }
0x1217   : > { %19877 = vmatprep.subr.bf16.mxu1 %v22907_v62 }
0x1218   : > { %18461 = vmatmul.mubr.f32.vlgmr.msra.gmra.mrb[32].mxu0 %v12152_v37 }
0x1219   : > { %18527 = vmatmul.mubr.f32.vlgmr.msra.gmra.mrb[36].mxu1 %v12152_v37  ;;  %19831 = vmatpush3.bf16.msra.mxu0 %v22902_v4  ;;  %v23690_v37 = vld [vmem:[#allocation5_spill] sm:$0xff] }
0x121a   : > { %18471 = vmatprep.mubr.f32.mxu0 %v12143_v52  ;;  %19879 = vmatpush3.bf16.msra.mxu1 %v22907_v62 }
0x121b   : > { %18537 = vmatprep.mubr.f32.mxu1 %v12143_v52  ;;  %19833 = vmatprep.subr.bf16.mxu0 %v22910_v18  ;;  %v23693_v52 = vld [vmem:[#allocation28_spill] sm:$0xff] }
0x121c   : > { %19881 = vmatprep.subr.bf16.mxu1 %v22914_v57 }
0x121d   : > { %19835 = vmatpush3.bf16.msra.mxu0 %v22910_v18 }
0x121e   : > { %19883 = vmatpush3.bf16.msra.mxu1 %v22914_v57  ;;  %19837 = vmatprep.subr.bf16.mxu0 %v22921_v11 }
0x121f   : > { %19885 = vmatprep.subr.bf16.mxu1 %v22923_v16 }
0x1220   : > { %18472 = vmatmul.mubr.f32.vlgmr.msra.gmra.mrb[32].mxu0 %v12153_v60 }
0x1221   : > { %18538 = vmatmul.mubr.f32.vlgmr.msra.gmra.mrb[36].mxu1 %v12153_v60  ;;  %19839 = vmatpush3.bf16.msra.mxu0 %v22921_v11  ;;  %v23692_v60 = vld [vmem:[#allocation26_spill] sm:$0xff] }
0x1222   : > { %18482 = vmatprep.mubr.f32.mxu0 %v22946_v2  ;;  %19887 = vmatpush3.bf16.msra.mxu1 %v22923_v16 }
0x1223   : > { %18548 = vmatprep.mubr.f32.mxu1 %v22946_v2  ;;  %19841 = vmatprep.subr.bf16.mxu0 %v22925_v24 }
0x1224   : > { %19889 = vmatprep.subr.bf16.mxu1 %v22927_v45 }
0x1225   : > { %19843 = vmatpush3.bf16.msra.mxu0 %v22925_v24 }
0x1226   : > { %19891 = vmatpush3.bf16.msra.mxu1 %v22927_v45  ;;  %19845 = vmatprep.subr.bf16.mxu0 %v22902_v4 }
0x1227   : > { %19893 = vmatprep.subr.bf16.mxu1 %v22907_v62 }
0x1228   : > { %18483 = vmatmul.mubr.f32.vlgmr.msra.gmra.mrb[32].mxu0 %v22942_v1 }
0x1229   : > { %18549 = vmatmul.mubr.f32.vlgmr.msra.gmra.mrb[36].mxu1 %v22942_v1  ;;  %19847 = vmatpush3.bf16.msra.mxu0 %v22902_v4 }
0x122a   : > { %18493 = vmatprep.mubr.f32.mxu0 %v22946_v2  ;;  %19895 = vmatpush3.bf16.msra.mxu1 %v22907_v62 }
0x122b   : > { %18559 = vmatprep.mubr.f32.mxu1 %v22946_v2  ;;  %19849 = vmatprep.subr.bf16.mxu0 %v22910_v18  ;;  %v23689_v2 = vld [vmem:[#allocation35_spill] sm:$0xff] }
0x122c   : > { %19897 = vmatprep.subr.bf16.mxu1 %v22914_v57 }
0x122d   : > { %19851 = vmatpush3.bf16.msra.mxu0 %v22910_v18 }
0x122e   : > { %19899 = vmatpush3.bf16.msra.mxu1 %v22914_v57 }
0x1230   : > { %18494 = vmatmul.mubr.f32.vlgmr.msra.gmra.mrb[32].mxu0 %v22942_v1 }
0x1231   : > { %18560 = vmatmul.mubr.f32.vlgmr.msra.gmra.mrb[36].mxu1 %v22942_v1  ;;  %18570 = vmatprep.mubr.f32.mxu0 %v21296_v9  ;;  %v23682_v1 = vld [vmem:[#allocation4_spill] sm:$0xff] }
0x1303   : > { %v18495_v44 = vpop.f32.mrb[32].mxu0 }
0x1304   : > { %v13144_v25 = vand.u32 4294901760, %v18495_v44  ;;  %v18561_v21 = vpop.f32.mrb[36].mxu1  ;;  %v12590_v27 = vpop.f32.mrb[33].mxu0 }
0x1305   : > { %v13150_v4 = vand.u32 4294901760, %v18561_v21  ;;  %v13141_v62 = vand.u32 4294901760, %v12590_v27  ;;  %v13118_v39 = vpop.f32.mrb[37].mxu1 }
0x1306   : > { %v13298_v20 = vsub.f32 %v18495_v44, %v13144_v25  ;;  %v13147_v50 = vand.u32 4294901760, %v13118_v39  ;;  %v23698_v44 = vld [vmem:[#allocation6_spill] sm:$0xff] }
0x1307   : > { %v13312_v6 = vsub.f32 %v18561_v21, %v13150_v4  ;;  %v22987_v23 = vpack.c.bf16 %v13144_v25, %v13141_v62  ;;  %v13291_v18 = vsub.f32 %v12590_v27, %v13141_v62  ;;  %v23699_v25 = vld [vmem:[#allocation27_spill] sm:$0xff]  ;;  %v23700_v21 = vld [vmem:[#allocation32_spill] sm:$0xff]  ;;  %v23701_v27 = vld [vmem:[#allocation33_spill] sm:$0xff] }
0x1308   : > { %v13299_v57 = vand.u32 4294901760, %v13298_v20  ;;  %v22989_v29 = vpack.c.bf16 %v13150_v4, %v13147_v50  ;;  %v13305_v30 = vsub.f32 %v13118_v39, %v13147_v50  ;;  %v23702_v4 = vld [vmem:[#allocation37_spill] sm:$0xff]  ;;  %v23703_v62 = vld [vmem:[#allocation39_spill] sm:$0xff]  ;;  %v23704_v39 = vld [vmem:[#allocation40_spill] sm:$0xff] }
0x1309   : > { %v13313_v38 = vand.u32 4294901760, %v13312_v6  ;;  %v13292_v40 = vand.u32 4294901760, %v13291_v18  ;;  %19901 = vmatprep.subr.bf16.mxu0 %v22987_v23  ;;  %v19916_v9 = vpack.c.bf16 %v13298_v20, %v13291_v18  ;;  %v15835_v50 = vld [vmem:[%s23401_s8 + $0x1c0] sm:$0xff] }
0x130a   : > { %v13300_v32 = vsub.f32 %v13298_v20, %v13299_v57  ;;  %v13306_v41 = vand.u32 4294901760, %v13305_v30  ;;  %19903 = vmatpush3.bf16.msra.mxu0 %v22987_v23  ;;  %v19920_v28 = vpack.c.bf16 %v13312_v6, %v13305_v30  ;;  %v23705_v20 = vld [vmem:[#allocation41_spill] sm:$0xff] }
0x130b   : > { %v13314_v11 = vsub.f32 %v13312_v6, %v13313_v38  ;;  %v13293_v16 = vsub.f32 %v13291_v18, %v13292_v40  ;;  %19905 = vmatprep.subr.bf16.mxu0 %v22989_v29  ;;  %v19932_v24 = vpack.c.bf16 %v13299_v57, %v13292_v40  ;;  %v15836_v6 = vld [vmem:[%s23401_s8 + $0x1c8] sm:$0xff] }
0x130c   : > { %v13307_v45 = vsub.f32 %v13305_v30, %v13306_v41  ;;  %v13301_v12 = vand.u32 4294901760, %v13300_v32  ;;  %v19936_v33 = vpack.c.bf16 %v13313_v38, %v13306_v41  ;;  %v14051_v18 = vand.u32 4294901760, %v15836_v6  ;;  %v15838_v30 = vld [vmem:[%s23401_s8 + $0x1d8] sm:$0xff] }
0x130d   : > { %v13294_v43 = vand.u32 4294901760, %v13293_v16  ;;  %v13315_v10 = vand.u32 4294901760, %v13314_v11  ;;  %v14057_v40 = vand.u32 4294901760, %v15838_v30 }
0x130e   : > { %19907 = vmatpush3.bf16.msra.mxu0 %v22989_v29  ;;  %v13308_v26 = vand.u32 4294901760, %v13307_v45  ;;  %v14205_v41 = vsub.f32 %v15836_v6, %v14051_v18  ;;  %v23713_v6 = vld [vmem:[#allocation54_spill] sm:$0xff] }
0x130f   : > { %v19908_v35 = vpack.c.bf16 %v13301_v12, %v13294_v43  ;;  %v14219_v12 = vsub.f32 %v15838_v30, %v14057_v40  ;;  %v23714_v30 = vld [vmem:[#allocation58_spill] sm:$0xff] }
0x1310   : > { %v19912_v56 = vpack.c.bf16 %v13315_v10, %v13308_v26  ;;  %v14206_v11 = vand.u32 4294901760, %v14205_v41 }
0x1311   : > { %18571 = vmatmul.mubr.f32.vlgmr.msra.gmra.mrb[34].mxu0 %v21471_v17  ;;  %19909 = vmatprep.subr.bf16.mxu0 %v19908_v35  ;;  %v23683_v17 = vld [vmem:[#allocation21_spill] sm:$0xff]  ;;  %v14220_v26 = vand.u32 4294901760, %v14219_v12 }
0x1312   : > { %18573 = vmatprep.mubr.f32.mxu0 %v21481_v36  ;;  %19911 = vmatpush3.bf16.msra.mxu0 %v19908_v35  ;;  %v23684_v36 = vld [vmem:[#allocation22_spill] sm:$0xff] }
0x1313   : > { %19913 = vmatprep.subr.bf16.mxu0 %v19912_v56 }
0x1315   : > { %18574 = vmatmul.mubr.f32.gmra.mrb[36].mxu0 %v21490_v49  ;;  %v23686_v49 = vld [vmem:[#allocation25_spill] sm:$0xff] }
0x1316   : > { %18576 = vmatprep.mubr.f32.mxu0 %v21497_v55  ;;  %19915 = vmatpush3.bf16.msra.mxu0 %v19912_v56  ;;  %v23687_v55 = vld [vmem:[#allocation30_spill] sm:$0xff] }
0x1317   : > { %19917 = vmatprep.subr.bf16.mxu0 %v19916_v9 }
0x1319   : > { %18577 = vmatmul.mubr.f32.gmra.mrb[38].mxu0 %v21505_v19  ;;  %v23688_v19 = vld [vmem:[#allocation31_spill] sm:$0xff] }
0x131a   : > { %18579 = vmatprep.mubr.f32.mxu0 %v23680_v8  ;;  %v14221_v8 = vsub.f32 %v14219_v12, %v14220_v26 }
0x131d   : > { %18580 = vmatmul.mubr.f32.gmra.mrb[40].mxu0 %v23681_v13 }
0x131e   : > { %18590 = vmatprep.mubr.f32.mxu0 %v23682_v1 }
0x1321   : > { %18591 = vmatmul.mubr.f32.vlgmr.msra.gmra.mrb[34].mxu0 %v23683_v17 }
0x1322   : > { %19919 = vmatpush3.bf16.msra.mxu0 %v19916_v9  ;;  %18593 = vmatprep.mubr.f32.mxu0 %v23684_v36 }
0x1323   : > { %19921 = vmatprep.subr.bf16.mxu0 %v19920_v28 }
0x1325   : > { %18594 = vmatmul.mubr.f32.gmra.mrb[36].mxu0 %v23685_v22 }
0x1326   : > { %19923 = vmatpush3.bf16.msra.mxu0 %v19920_v28  ;;  %18596 = vmatprep.mubr.f32.mxu0 %v23686_v49 }
0x1327   : > { %19925 = vmatprep.subr.bf16.mxu0 %v22987_v23 }
0x1329   : > { %18597 = vmatmul.mubr.f32.gmra.mrb[38].mxu0 %v23687_v55 }
0x132a   : > { %18599 = vmatprep.mubr.f32.mxu0 %v23688_v19 }
0x132d   : > { %18600 = vmatmul.mubr.f32.gmra.mrb[40].mxu0 %v23689_v2 }
0x132e   : > { %18610 = vmatprep.mubr.f32.mxu0 %v23690_v37 }
0x1331   : > { %18611 = vmatmul.mubr.f32.vlgmr.msra.gmra.mrb[34].mxu0 %v23691_v51  ;;  %v23089_v51 = vld [vmem:[%s23402_s9 + $0x10] sm:$0xff] }
0x1332   : > { %19927 = vmatpush3.bf16.msra.mxu0 %v22987_v23  ;;  %18613 = vmatprep.mubr.f32.mxu0 %v23692_v60  ;;  %v23707_v60 = vld [vmem:[#allocation74_spill] sm:$0xff] }
0x1333   : > { %19929 = vmatprep.subr.bf16.mxu0 %v22989_v29 }
0x1335   : > { %18614 = vmatmul.mubr.f32.gmra.mrb[36].mxu0 %v23693_v52  ;;  %v13949_v52 = vrot.slane %v23089_v51, %v23707_v60 }
0x1336   : > { %19931 = vmatpush3.bf16.msra.mxu0 %v22989_v29  ;;  %18616 = vmatprep.mubr.f32.mxu0 %v23694_v47 }
0x1337   : > { %19933 = vmatprep.subr.bf16.mxu0 %v19932_v24 }
0x1339   : > { %18617 = vmatmul.mubr.f32.gmra.mrb[38].mxu0 %v23695_v15  ;;  %v23708_v15 = vld [vmem:[#allocation45_spill] sm:$0xff] }
0x133a   : > { %18619 = vmatprep.mubr.f32.mxu0 %v23696_v42  ;;  %v23709_v42 = vld [vmem:[#allocation12_spill] sm:$0xff] }
0x133d   : > { %18620 = vmatmul.mubr.f32.gmra.mrb[40].mxu0 %v23697_v63  ;;  %v13930_v63 = vmul.f32 %v23709_v42, %v23708_v15 }
0x133e   : > { %18630 = vmatprep.mubr.f32.mxu0 %v23698_v44  ;;  %v23710_v44 = vld [vmem:[#allocation51_spill] sm:$0xff] }
0x1341   : > { %18631 = vmatmul.mubr.f32.vlgmr.msra.gmra.mrb[34].mxu0 %v23699_v25 }
0x1342   : > { %19935 = vmatpush3.bf16.msra.mxu0 %v19932_v24  ;;  %18633 = vmatprep.mubr.f32.mxu0 %v23700_v21  ;;  %v14207_v24 = vsub.f32 %v14205_v41, %v14206_v11  ;;  %v23711_v21 = vld [vmem:[#allocation16_spill] sm:$0xff] }
0x1343   : > { %19937 = vmatprep.subr.bf16.mxu0 %v19936_v33 }
0x1344   : > { %v14208_v43 = vand.u32 4294901760, %v14207_v24 }
0x1345   : > { %18634 = vmatmul.mubr.f32.gmra.mrb[36].mxu0 %v23701_v27 }
0x1346   : > { %19939 = vmatpush3.bf16.msra.mxu0 %v19936_v33  ;;  %18636 = vmatprep.mubr.f32.mxu0 %v23702_v4 }
0x1347   : > { %19941 = vmatprep.subr.bf16.mxu0 %v22987_v23 }
0x1349   : > { %18637 = vmatmul.mubr.f32.gmra.mrb[38].mxu0 %v23703_v62 }
0x134a   : > { %18639 = vmatprep.mubr.f32.mxu0 %v23704_v39  ;;  %v23712_v39 = vld [vmem:[#allocation44_spill] sm:$0xff] }
0x134d   : > { %18640 = vmatmul.mubr.f32.gmra.mrb[40].mxu0 %v23705_v20  ;;  %v13933_v20 = vmul.f32 %v23709_v42, %v23712_v39 }
0x134e   : > { %18650 = vmatprep.mubr.f32.mxu0 %v23682_v1 }
0x1351   : > { %18651 = vmatmul.mubr.f32.vlgmr.msra.gmra.mrb[34].mxu0 %v23683_v17 }
0x1352   : > { %19943 = vmatpush3.bf16.msra.mxu0 %v22987_v23  ;;  %18653 = vmatprep.mubr.f32.mxu0 %v23684_v36  ;;  %v14048_v23 = vand.u32 4294901760, %v15835_v50 }
0x1353   : > { %19945 = vmatprep.subr.bf16.mxu0 %v22989_v29 }
0x1354   : > { %v23058_v57 = vpack.c.bf16 %v14051_v18, %v14048_v23  ;;  %v14198_v32 = vsub.f32 %v15835_v50, %v14048_v23 }
0x1355   : > { %18654 = vmatmul.mubr.f32.gmra.mrb[36].mxu0 %v23685_v22 }
0x1356   : > { %19947 = vmatpush3.bf16.msra.mxu0 %v22989_v29  ;;  %18656 = vmatprep.mubr.f32.mxu0 %v23686_v49  ;;  %v15837_v29 = vld [vmem:[%s23401_s8 + $0x1d0] sm:$0xff]  ;;  %v14199_v28 = vand.u32 4294901760, %v14198_v32 }
0x1357   : > { %19949 = vmatprep.subr.bf16.mxu1 %v23058_v57  ;;  %v14054_v38 = vand.u32 4294901760, %v15837_v29 }
0x1358   : > { %19951 = vmatpush3.bf16.msra.mxu1 %v23058_v57  ;;  %v14200_v16 = vsub.f32 %v14198_v32, %v14199_v28 }
0x1359   : > { %18657 = vmatmul.mubr.f32.gmra.mrb[38].mxu0 %v23687_v55  ;;  %v23068_v9 = vpack.c.bf16 %v14057_v40, %v14054_v38  ;;  %v14212_v45 = vsub.f32 %v15837_v29, %v14054_v38 }
0x135a   : > { %18659 = vmatprep.mubr.f32.mxu0 %v23688_v19  ;;  %v14201_v33 = vand.u32 4294901760, %v14200_v16 }
0x135b   : > { %19953 = vmatprep.subr.bf16.mxu1 %v23068_v9  ;;  %v14213_v10 = vand.u32 4294901760, %v14212_v45 }
0x135c   : > { %19955 = vmatpush3.bf16.msra.mxu1 %v23068_v9  ;;  %v23072_v35 = vpack.c.bf16 %v14208_v43, %v14201_v33  ;;  %v23717_v43 = vld [vmem:[#allocation75_spill] sm:$0xff] }
0x135d   : > { %18660 = vmatmul.mubr.f32.gmra.mrb[40].mxu0 %v23689_v2  ;;  %v14214_v56 = vsub.f32 %v14212_v45, %v14213_v10 }
0x135e   : > { %18670 = vmatprep.mubr.f32.mxu0 %v23682_v1  ;;  %19957 = vmatprep.subr.bf16.mxu1 %v23072_v35  ;;  %v14222_v1 = vand.u32 4294901760, %v14221_v8 }
0x135f   : > { %v14215_v13 = vand.u32 4294901760, %v14214_v56  ;;  %v23718_v56 = vld [vmem:[#allocation60_spill] sm:$0xff] }
0x1361   : > { %18671 = vmatmul.mubr.f32.vlgmr.msra.gmra.mrb[34].mxu0 %v23683_v17  ;;  %v23075_v17 = vpack.c.bf16 %v14222_v1, %v14215_v13  ;;  %v23719_v1 = vld [vmem:[#allocation68_spill] sm:$0xff] }
0x1362   : > { %18673 = vmatprep.mubr.f32.mxu0 %v23684_v36  ;;  %v23077_v36 = vpack.c.bf16 %v14205_v41, %v14198_v32 }
0x1365   : > { %18674 = vmatmul.mubr.f32.gmra.mrb[36].mxu0 %v23685_v22  ;;  %v23079_v22 = vpack.c.bf16 %v14219_v12, %v14212_v45  ;;  %v23716_v45 = vld [vmem:[#allocation64_spill] sm:$0xff] }
0x1366   : > { %18676 = vmatprep.mubr.f32.mxu0 %v23686_v49  ;;  %v23081_v49 = vpack.c.bf16 %v14206_v11, %v14199_v28  ;;  %v23715_v28 = vld [vmem:[#allocation18_spill] sm:$0xff] }
0x1369   : > { %18677 = vmatmul.mubr.f32.gmra.mrb[38].mxu0 %v23687_v55  ;;  %v23083_v55 = vpack.c.bf16 %v14220_v26, %v14213_v10  ;;  %v13934_v10 = vmul.f32 %v23709_v42, %v23717_v43 }
0x136a   : > { %18679 = vmatprep.mubr.f32.mxu0 %v23688_v19 }
0x136d   : > { %18680 = vmatmul.mubr.f32.gmra.mrb[40].mxu0 %v23689_v2  ;;  %v23706_v2 = vld [vmem:[#allocation49_spill] sm:$0xff] }
0x136e   : > { %18837 = vmatprep.mubr.msk.f32.mxu0 %vm4612_vm15, %v23671_v48 }
0x1434   : > { %v18672_v19 = vpop.f32.mrb[34].mxu0 }
0x1435   : > { %v20132_v37 = vadd.f32 %v18672_v19, %v23706_v2  ;;  %v13880_v47 = vpop.f32.mrb[35].mxu0 }
0x1436   : > { %v20133_v25 = vadd.f32 %v13880_v47, %v23710_v44  ;;  %v23720_v47 = vld [vmem:[#allocation76_spill] sm:$0xff]  ;;  %v23721_v44 = vld [vmem:[#allocation66_spill] sm:$0xff] }
0x1437   : > { %v13939_v27 = vadd.f32 %v20132_v37, %v23711_v21  ;;  %v13937_v15 = vmul.f32 %v23709_v42, %v23720_v47 }
0x1438   : > { %v13938_v4 = vadd.f32 %v20133_v25, %v13930_v63  ;;  %v18675_v62 = vpop.f32.mrb[36].mxu0 }
0x1439   : > { %v23099_v50 = vadd.f32 %v13949_v52, %v13939_v27  ;;  %v20134_v23 = vadd.f32 %v18675_v62, %v23713_v6  ;;  %v13892_v18 = vpop.f32.mrb[37].mxu0 }
0x143a   : > { %v23102_v29 = vadd.f32 %v13949_v52, %v13938_v4  ;;  %v20135_v38 = vadd.f32 %v13892_v18, %v23714_v30  ;;  %v23722_v4 = vld [vmem:[#allocation73_spill] sm:$0xff] }
0x143b   : > { %v15828_v40 = vmul.f32 -1.442695, %v23099_v50  ;;  %v13941_v32 = vadd.f32 %v20134_v23, %v13933_v20  ;;  %v23723_v23 = vld [vmem:[#allocation70_spill] sm:$0xff] }
0x143c   : > { %v15827_v41 = vmul.f32 -1.442695, %v23102_v29  ;;  %v13940_v11 = vadd.f32 %v20135_v38, %v23715_v28  ;;  %v18678_v16 = vpop.f32.mrb[38].mxu0 }
0x143d   : > { %20795 = vpow2.f32 %v15828_v40  ;;  %v23108_v24 = vadd.f32 %v13949_v52, %v13941_v32  ;;  %v20136_v12 = vadd.f32 %v18678_v16, %v23716_v45  ;;  %v13904_v33 = vpop.f32.mrb[39].mxu0 }
0x143e   : > { %20797 = vpow2.f32 %v15827_v41  ;;  %v23113_v26 = vadd.f32 %v13949_v52, %v13940_v11  ;;  %v20137_v8 = vadd.f32 %v13904_v33, %v23718_v56 }
0x143f   : > { %v15830_v13 = vmul.f32 -1.442695, %v23108_v24  ;;  %v13943_v19 = vadd.f32 %v20136_v12, %v23719_v1 }
0x1440   : > { %v15829_v2 = vmul.f32 -1.442695, %v23113_v26  ;;  %v13942_v37 = vadd.f32 %v20137_v8, %v13934_v10  ;;  %v18681_v60 = vpop.f32.mrb[40].mxu0 }
0x1441   : > { %20799 = vpow2.f32 %v15830_v13  ;;  %v23121_v63 = vadd.f32 %v13949_v52, %v13943_v19  ;;  %v20138_v25 = vadd.f32 %v18681_v60, %v23721_v44  ;;  %v13916_v21 = vpop.f32.mrb[41].mxu0 }
0x1442   : > { %20801 = vpow2.f32 %v15829_v2  ;;  %v13954_v27 = vadd.f32 %v13949_v52, %v13942_v37  ;;  %v20139_v62 = vadd.f32 %v13916_v21, %v23722_v4 }
0x1443   : > { %v15832_v39 = vmul.f32 -1.442695, %v23121_v63  ;;  %v13945_v20 = vadd.f32 %v20138_v25, %v13937_v15 }
0x1444   : > { %v15831_v6 = vmul.f32 -1.442695, %v13954_v27  ;;  %v13944_v18 = vadd.f32 %v20139_v62, %v23723_v23 }
0x1445   : > { %20803 = vpow2.f32 %v15832_v39  ;;  %v23127_v30 = vadd.f32 %v13949_v52, %v13945_v20 }
0x1446   : > { %20805 = vpow2.f32 %v15831_v6  ;;  %v23129_v42 = vadd.f32 %v13949_v52, %v13944_v18 }
0x1447   : > { %v20796_v38 = vpop.eup %20795  ;;  %v15834_v40 = vmul.f32 -1.442695, %v23127_v30 }
0x1448   : > { %v20798_v32 = vpop.eup %20797  ;;  %v13983_v41 = vadd.f32 1.0, %v20796_v38  ;;  %v15833_v28 = vmul.f32 -1.442695, %v23129_v42 }
0x1449   : > { %v13982_v11 = vadd.f32 1.0, %v20798_v32  ;;  %20807 = vpow2.f32 %v15834_v40 }
0x144a   : > { %20809 = vrcp.f32 %v13983_v41 }
0x144b   : > { %v20800_v16 = vpop.eup %20799  ;;  %20811 = vrcp.f32 %v13982_v11 }
0x144c   : > { %v20802_v45 = vpop.eup %20801  ;;  %v13985_v12 = vadd.f32 1.0, %v20800_v16  ;;  %20813 = vpow2.f32 %v15833_v28 }
0x144d   : > { %v13984_v33 = vadd.f32 1.0, %v20802_v45 }
0x144e   : > { %20815 = vrcp.f32 %v13985_v12 }
0x144f   : > { %v20804_v43 = vpop.eup %20803  ;;  %20817 = vrcp.f32 %v13984_v33 }
0x1450   : > { %v20806_v52 = vpop.eup %20805  ;;  %v13987_v10 = vadd.f32 1.0, %v20804_v43 }
0x1451   : > { %v13986_v56 = vadd.f32 1.0, %v20806_v52 }
0x1452   : > { %20819 = vrcp.f32 %v13987_v10 }
0x1453   : > { %v20808_v8 = vpop.eup %20807  ;;  %20821 = vrcp.f32 %v13986_v56 }
0x1454   : > { %v20810_v13 = vpop.eup %20809  ;;  %v13989_v1 = vadd.f32 1.0, %v20808_v8 }
0x1455   : > { %v20812_v19 = vpop.eup %20811  ;;  %v14007_v2 = vmul.f32 %v20810_v13, %v23099_v50 }
0x1456   : > { %v20814_v37 = vpop.eup %20813  ;;  %v14006_v60 = vmul.f32 %v20812_v19, %v23102_v29  ;;  %20823 = vrcp.f32 %v13989_v1 }
0x1457   : > { %v14027_v47 = vsel %vm1500_vm13, %v14007_v2, 0  ;;  %v13988_v15 = vadd.f32 1.0, %v20814_v37 }
0x1458   : > { %v20816_v44 = vpop.eup %20815  ;;  %v23136_v25 = vand.u32 4294901760, %v14027_v47  ;;  %v14024_v21 = vsel %vm1500_vm13, %v14006_v60, 0 }
0x1459   : > { %v20818_v4 = vpop.eup %20817  ;;  %v23139_v62 = vand.u32 4294901760, %v14024_v21  ;;  %v14009_v39 = vmul.f32 %v20816_v44, %v23108_v24  ;;  %20825 = vrcp.f32 %v13988_v15 }
0x145a   : > { %v23143_v50 = vsub.f32 %v14027_v47, %v23136_v25  ;;  %v14008_v29 = vmul.f32 %v20818_v4, %v23113_v26 }
0x145b   : > { %v14033_v20 = vsel %vm1500_vm13, %v14009_v39, 0  ;;  %v23148_v6 = vsub.f32 %v14024_v21, %v23139_v62 }
0x145c   : > { %v20820_v23 = vpop.eup %20819  ;;  %v23150_v18 = vand.u32 4294901760, %v14033_v20  ;;  %v14030_v38 = vsel %vm1500_vm13, %v14008_v29, 0  ;;  %v14128_v40 = vand.u32 4294901760, %v23143_v50 }
0x145d   : > { %v20822_v32 = vpop.eup %20821  ;;  %v23154_v24 = vand.u32 4294901760, %v14030_v38  ;;  %v14011_v41 = vmul.f32 %v20820_v23, %v23121_v63  ;;  %v14118_v28 = vand.u32 4294901760, %v23148_v6 }
0x145e   : > { %v14010_v26 = vmul.f32 %v20822_v32, %v13954_v27  ;;  %v14129_v11 = vsub.f32 %v23143_v50, %v14128_v40  ;;  %v23162_v16 = vsub.f32 %v14033_v20, %v23150_v18 }
0x145f   : > { %v14039_v45 = vsel %vm1500_vm13, %v14011_v41, 0  ;;  %v14119_v12 = vsub.f32 %v23148_v6, %v14118_v28  ;;  %v23169_v33 = vsub.f32 %v14030_v38, %v23154_v24 }
0x1460   : > { %v20824_v63 = vpop.eup %20823  ;;  %v23171_v43 = vand.u32 4294901760, %v14039_v45  ;;  %v14036_v27 = vsel %vm1500_vm13, %v14010_v26, 0  ;;  %v14148_v52 = vand.u32 4294901760, %v23162_v16  ;;  %v14130_v1 = vand.u32 4294901760, %v14129_v11 }
0x1461   : > { %v23175_v10 = vand.u32 4294901760, %v14036_v27  ;;  %v14013_v56 = vmul.f32 %v20824_v63, %v23127_v30  ;;  %v14120_v8 = vand.u32 4294901760, %v14119_v12  ;;  %v14138_v13 = vand.u32 4294901760, %v23169_v33 }
0x1462   : > { %v14149_v19 = vsub.f32 %v23162_v16, %v14148_v52  ;;  %v23183_v2 = vsub.f32 %v14039_v45, %v23171_v43 }
0x1463   : > { %v20826_v37 = vpop.eup %20825  ;;  %v14045_v60 = vsel %vm1500_vm13, %v14013_v56, 0  ;;  %18690 = vmatprep.mubr.f32.mxu1 %v14120_v8  ;;  %v14139_v47 = vsub.f32 %v23169_v33, %v14138_v13  ;;  %v14157_v30 = vsub.f32 %v14036_v27, %v23175_v10 }
0x1464   : > { %v23190_v15 = vand.u32 4294901760, %v14045_v60  ;;  %v14012_v44 = vmul.f32 %v20826_v37, %v23129_v42  ;;  %18691 = vmatmul.mubr.f32.vlgmr.msra.gmra.mrb[38].mxu1 %v14130_v1  ;;  %v14168_v21 = vand.u32 4294901760, %v23183_v2  ;;  %v14150_v20 = vand.u32 4294901760, %v14149_v19 }
0x1465   : > { %v14140_v4 = vand.u32 4294901760, %v14139_v47  ;;  %19959 = vmatpush3.bf16.msra.mxu1 %v23072_v35  ;;  %v14158_v39 = vand.u32 4294901760, %v14157_v30 }
0x1466   : > { %v14042_v29 = vsel %vm1500_vm13, %v14012_v44, 0  ;;  %v14169_v23 = vsub.f32 %v23183_v2, %v14168_v21  ;;  %v14187_v38 = vsub.f32 %v14045_v60, %v23190_v15  ;;  %19961 = vmatprep.subr.bf16.mxu1 %v23075_v17 }
0x1467   : > { %v23199_v32 = vand.u32 4294901760, %v14042_v29  ;;  %18693 = vmatprep.mubr.f32.mxu1 %v14140_v4  ;;  %v14159_v42 = vsub.f32 %v14157_v30, %v14158_v39 }
0x1468   : > { %18694 = vmatmul.mubr.f32.gmra.mrb[40].mxu1 %v14150_v20  ;;  %v14188_v41 = vand.u32 4294901760, %v14187_v38  ;;  %v14170_v35 = vand.u32 4294901760, %v14169_v23 }
0x1469   : > { %v14160_v26 = vand.u32 4294901760, %v14159_v42  ;;  %v14177_v11 = vsub.f32 %v14042_v29, %v23199_v32  ;;  %19963 = vmatpush3.bf16.msra.mxu1 %v23075_v17 }
0x146a   : > { %19965 = vmatprep.subr.bf16.mxu1 %v23077_v36  ;;  %v14189_v12 = vsub.f32 %v14187_v38, %v14188_v41 }
0x146b   : > { %18696 = vmatprep.mubr.f32.mxu1 %v14160_v26  ;;  %v14178_v45 = vand.u32 4294901760, %v14177_v11 }
0x146c   : > { %18697 = vmatmul.mubr.f32.gmra.mrb[42].mxu1 %v14170_v35  ;;  %v14190_v56 = vand.u32 4294901760, %v14189_v12 }
0x146d   : > { %v14179_v63 = vsub.f32 %v14177_v11, %v14178_v45 }
0x146f   : > { %v14180_v27 = vand.u32 4294901760, %v14179_v63 }
0x1471   : > { %18699 = vmatprep.mubr.f32.mxu1 %v14180_v27 }
0x1472   : > { %18700 = vmatmul.mubr.f32.gmra.mrb[44].mxu1 %v14190_v56 }
0x1473   : > { %18710 = vmatprep.mubr.f32.mxu1 %v23139_v62 }
0x1476   : > { %18711 = vmatmul.mubr.f32.vlgmr.msra.gmra.mrb[38].mxu1 %v23136_v25 }
0x1477   : > { %18713 = vmatprep.mubr.f32.mxu1 %v23154_v24  ;;  %19967 = vmatpush3.bf16.msra.mxu1 %v23077_v36 }
0x1478   : > { %19969 = vmatprep.subr.bf16.mxu1 %v23079_v22 }
0x147a   : > { %18714 = vmatmul.mubr.f32.gmra.mrb[40].mxu1 %v23150_v18 }
0x147b   : > { %18716 = vmatprep.mubr.f32.mxu1 %v23175_v10  ;;  %19971 = vmatpush3.bf16.msra.mxu1 %v23079_v22 }
0x147c   : > { %19973 = vmatprep.subr.bf16.mxu1 %v23058_v57 }
0x147e   : > { %18717 = vmatmul.mubr.f32.gmra.mrb[42].mxu1 %v23171_v43 }
0x147f   : > { %18719 = vmatprep.mubr.f32.mxu1 %v23199_v32 }
0x1482   : > { %18720 = vmatmul.mubr.f32.gmra.mrb[44].mxu1 %v23190_v15 }
0x1483   : > { %18730 = vmatprep.mubr.f32.mxu1 %v23148_v6 }
0x1486   : > { %18731 = vmatmul.mubr.f32.vlgmr.msra.gmra.mrb[38].mxu1 %v23143_v50 }
0x1487   : > { %18733 = vmatprep.mubr.f32.mxu1 %v23169_v33  ;;  %19975 = vmatpush3.bf16.msra.mxu1 %v23058_v57 }
0x1488   : > { %19977 = vmatprep.subr.bf16.mxu1 %v23068_v9 }
0x148a   : > { %18734 = vmatmul.mubr.f32.gmra.mrb[40].mxu1 %v23162_v16 }
0x148b   : > { %18736 = vmatprep.mubr.f32.mxu1 %v14157_v30  ;;  %19979 = vmatpush3.bf16.msra.mxu1 %v23068_v9 }
0x148c   : > { %19981 = vmatprep.subr.bf16.mxu1 %v23081_v49 }
0x148e   : > { %18737 = vmatmul.mubr.f32.gmra.mrb[42].mxu1 %v23183_v2 }
0x148f   : > { %18739 = vmatprep.mubr.f32.mxu1 %v14177_v11 }
0x1492   : > { %18740 = vmatmul.mubr.f32.gmra.mrb[44].mxu1 %v14187_v38 }
0x1493   : > { %18750 = vmatprep.mubr.f32.mxu1 %v14118_v28 }
0x1496   : > { %18751 = vmatmul.mubr.f32.vlgmr.msra.gmra.mrb[38].mxu1 %v14128_v40 }
0x1497   : > { %18753 = vmatprep.mubr.f32.mxu1 %v14138_v13  ;;  %19983 = vmatpush3.bf16.msra.mxu1 %v23081_v49 }
0x1498   : > { %19985 = vmatprep.subr.bf16.mxu1 %v23083_v55 }
0x149a   : > { %18754 = vmatmul.mubr.f32.gmra.mrb[40].mxu1 %v14148_v52 }
0x149b   : > { %18756 = vmatprep.mubr.f32.mxu1 %v14158_v39  ;;  %19987 = vmatpush3.bf16.msra.mxu1 %v23083_v55 }
0x149c   : > { %19989 = vmatprep.subr.bf16.mxu1 %v23058_v57 }
0x149e   : > { %18757 = vmatmul.mubr.f32.gmra.mrb[42].mxu1 %v14168_v21 }
0x149f   : > { %18759 = vmatprep.mubr.f32.mxu1 %v14178_v45 }
0x14a2   : > { %18760 = vmatmul.mubr.f32.gmra.mrb[44].mxu1 %v14188_v41 }
0x14a3   : > { %18770 = vmatprep.mubr.f32.mxu1 %v23139_v62 }
0x14a6   : > { %18771 = vmatmul.mubr.f32.vlgmr.msra.gmra.mrb[38].mxu1 %v23136_v25 }
0x14a7   : > { %18773 = vmatprep.mubr.f32.mxu1 %v23154_v24  ;;  %19991 = vmatpush3.bf16.msra.mxu1 %v23058_v57  ;;  %v23724_v57 = vld [vmem:[#allocation79_spill] sm:$0xff] }
0x14a8   : > { %19993 = vmatprep.subr.bf16.mxu1 %v23068_v9 }
0x14aa   : > { %18774 = vmatmul.mubr.f32.gmra.mrb[40].mxu1 %v23150_v18 }
0x14ab   : > { %18776 = vmatprep.mubr.f32.mxu1 %v23175_v10  ;;  %19995 = vmatpush3.bf16.msra.mxu1 %v23068_v9  ;;  %v14022_v9 = vrot.slane %v23089_v51, %v21871_v61 }
0x14ae   : > { %18777 = vmatmul.mubr.f32.gmra.mrb[42].mxu1 %v23171_v43 }
0x14af   : > { %18779 = vmatprep.mubr.f32.mxu1 %v23199_v32 }
0x14b2   : > { %18780 = vmatmul.mubr.f32.gmra.mrb[44].mxu1 %v23190_v15 }
0x14b3   : > { %18790 = vmatprep.mubr.f32.mxu1 %v23139_v62 }
0x14b6   : > { %18791 = vmatmul.mubr.f32.vlgmr.msra.gmra.mrb[38].mxu1 %v23136_v25 }
0x14b7   : > { %18793 = vmatprep.mubr.f32.mxu1 %v23154_v24 }
0x14ba   : > { %18794 = vmatmul.mubr.f32.gmra.mrb[40].mxu1 %v23150_v18 }
0x14bb   : > { %18796 = vmatprep.mubr.f32.mxu1 %v23175_v10 }
0x14be   : > { %18797 = vmatmul.mubr.f32.gmra.mrb[42].mxu1 %v23171_v43 }
0x14bf   : > { %18799 = vmatprep.mubr.f32.mxu1 %v23199_v32  ;;  %v14892_v32 = vrot.slane %v23089_v51, %v21879_v46 }
0x14c2   : > { %18800 = vmatmul.mubr.f32.gmra.mrb[44].mxu1 %v23190_v15 }
0x14c3   : > { %18818 = vmatprep.mubr.f32.mxu1 %v23724_v57 }
0x1589   : > { %v18792_v17 = vpop.f32.mrb[38].mxu1 }
0x158a   : > { %v20140_v36 = vadd.f32 %v18792_v17, %v14022_v9  ;;  %v14787_v22 = vpop.f32.mrb[39].mxu1 }
0x158b   : > { %v20141_v49 = vadd.f32 %v14787_v22, %v14022_v9 }
0x158c   : > { %v15840_v55 = vmul.f32 -1.442695, %v20140_v36 }
0x158d   : > { %v15839_v25 = vmul.f32 -1.442695, %v20141_v49  ;;  %v18795_v62 = vpop.f32.mrb[40].mxu1 }
0x158e   : > { %20827 = vpow2.f32 %v15840_v55  ;;  %v20142_v50 = vadd.f32 %v18795_v62, %v14022_v9  ;;  %v14799_v6 = vpop.f32.mrb[41].mxu1 }
0x158f   : > { %20829 = vpow2.f32 %v15839_v25  ;;  %v20143_v18 = vadd.f32 %v14799_v6, %v14022_v9 }
0x1590   : > { %v15842_v40 = vmul.f32 -1.442695, %v20142_v50 }
0x1591   : > { %v15841_v24 = vmul.f32 -1.442695, %v20143_v18  ;;  %v18798_v28 = vpop.f32.mrb[42].mxu1 }
0x1592   : > { %20831 = vpow2.f32 %v15842_v40  ;;  %v20144_v16 = vadd.f32 %v18798_v28, %v14022_v9  ;;  %v14811_v33 = vpop.f32.mrb[43].mxu1 }
0x1593   : > { %20833 = vpow2.f32 %v15841_v24  ;;  %v20145_v61 = vadd.f32 %v14811_v33, %v14022_v9 }
0x1594   : > { %v15844_v43 = vmul.f32 -1.442695, %v20144_v16 }
0x1595   : > { %v15843_v52 = vmul.f32 -1.442695, %v20145_v61  ;;  %v18801_v10 = vpop.f32.mrb[44].mxu1 }
0x1596   : > { %20835 = vpow2.f32 %v15844_v43  ;;  %v20146_v8 = vadd.f32 %v18801_v10, %v14022_v9  ;;  %v14823_v13 = vpop.f32.mrb[45].mxu1 }
0x1597   : > { %20837 = vpow2.f32 %v15843_v52  ;;  %v20147_v1 = vadd.f32 %v14823_v13, %v14022_v9 }
0x1598   : > { %v20828_v19 = vpop.eup %20827  ;;  %v15846_v2 = vmul.f32 -1.442695, %v20146_v8 }
0x1599   : > { %v20830_v37 = vpop.eup %20829  ;;  %v14858_v60 = vadd.f32 1.0, %v20828_v19  ;;  %v15845_v47 = vmul.f32 -1.442695, %v20147_v1  ;;  %v510_v19 = vld [vmem:[%s482_s28] sm:$0xff] }
0x159a   : > { %v14857_v30 = vadd.f32 1.0, %v20830_v37  ;;  %20839 = vpow2.f32 %v15846_v2  ;;  %v511_v2 = vld [vmem:[%s482_s28 + $0x8] sm:$0xff] }
0x159b   : > { %20841 = vrcp.f32 %v14858_v60  ;;  %v23726_v60 = vld [vmem:[#allocation47_spill] sm:$0xff] }
0x159c   : > { %v20832_v15 = vpop.eup %20831  ;;  %20843 = vrcp.f32 %v14857_v30  ;;  %v23727_v30 = vld [vmem:[#allocation52_spill] sm:$0xff] }
0x159d   : > { %v20834_v44 = vpop.eup %20833  ;;  %v14860_v21 = vadd.f32 1.0, %v20832_v15  ;;  %20845 = vpow2.f32 %v15845_v47  ;;  %v1403_v47 = vadd.f32 1e-08, %v23726_v60  ;;  %v1406_v15 = vadd.f32 1e-08, %v23727_v30 }
0x159e   : > { %v14859_v4 = vadd.f32 1.0, %v20834_v44  ;;  %v23728_v44 = vld [vmem:[#allocation55_spill] sm:$0xff] }
0x159f   : > { %20847 = vrcp.f32 %v14860_v21  ;;  %v1405_v21 = vadd.f32 1e-08, %v23728_v44  ;;  %vm1413_vm1 = vcmp.eq.f32.partialorder %v1403_v47, inf  ;;  %vm1415_vm3 = vcmp.eq.f32.partialorder %v1403_v47, 0.0 }
0x15a0   : > { %v20836_v39 = vpop.eup %20835  ;;  %20849 = vrcp.f32 %v14859_v4  ;;  %v23729_v4 = vld [vmem:[#allocation56_spill] sm:$0xff]  ;;  %vm1434_vm4 = vcmp.eq.f32.partialorder %v1406_v15, inf  ;;  %vm1436_vm5 = vcmp.eq.f32.partialorder %v1406_v15, 0.0 }
0x15a1   : > { %v20838_v29 = vpop.eup %20837  ;;  %v14862_v20 = vadd.f32 1.0, %v20836_v39  ;;  %v1407_v39 = vadd.f32 1e-08, %v23729_v4  ;;  %vm1427_vm6 = vcmp.eq.f32.partialorder %v1405_v21, inf  ;;  %vm1429_vm8 = vcmp.eq.f32.partialorder %v1405_v21, 0.0 }
0x15a2   : > { %v14861_v23 = vadd.f32 1.0, %v20838_v29  ;;  %v23730_v29 = vld [vmem:[#allocation61_spill] sm:$0xff] }
0x15a3   : > { %20851 = vrcp.f32 %v14862_v20  ;;  %v23279_v20 = vadd.f32 1e-08, %v23730_v29  ;;  %vm1441_vm7 = vcmp.eq.f32.partialorder %v1407_v39, inf  ;;  %vm1443_vm9 = vcmp.eq.f32.partialorder %v1407_v39, 0.0 }
0x15a4   : > { %v20840_v38 = vpop.eup %20839  ;;  %20853 = vrcp.f32 %v14861_v23 }
0x15a5   : > { %v20842_v42 = vpop.eup %20841  ;;  %v14864_v41 = vadd.f32 1.0, %v20840_v38  ;;  %vm1448_vm10 = vcmp.eq.f32.partialorder %v23279_v20, inf  ;;  %vm1450_vm11 = vcmp.eq.f32.partialorder %v23279_v20, 0.0 }
0x15a6   : > { %v20844_v26 = vpop.eup %20843  ;;  %v14882_v11 = vmul.f32 %v20842_v42, %v20140_v36 }
0x15a7   : > { %v20846_v35 = vpop.eup %20845  ;;  %v14881_v45 = vmul.f32 %v20844_v26, %v20141_v49  ;;  %20855 = vrcp.f32 %v14864_v41  ;;  %v23732_v41 = vld [vmem:[#allocation62_spill] sm:$0xff] }
0x15a8   : > { %v14863_v12 = vadd.f32 1.0, %v20846_v35  ;;  %v14894_v63 = vmul.f32 %v14892_v32, %v14882_v11  ;;  %v23286_v26 = vadd.f32 1e-08, %v23732_v41 }
0x15a9   : > { %v20848_v27 = vpop.eup %20847  ;;  %v14893_v56 = vmul.f32 %v14892_v32, %v14881_v45 }
0x15aa   : > { %v20850_v57 = vpop.eup %20849  ;;  %v14884_v9 = vmul.f32 %v20848_v27, %v20142_v50  ;;  %20857 = vrcp.f32 %v14863_v12  ;;  %v14904_v17 = vsel %vm1500_vm13, %v14894_v63, 0.0  ;;  %vm1462_vm14 = vcmp.eq.f32.partialorder %v23286_v26, inf }
0x15ab   : > { %v14883_v22 = vmul.f32 %v20850_v57, %v20143_v18  ;;  %14905 = vadd.xlane.f32.xlu0 %v14904_v17  ;;  %v14901_v46 = vsel %vm1500_vm13, %v14893_v56, 0.0  ;;  %v1416_v17 = vand.u32 2147483648, %v1403_v47  ;;  %v1465_v44 = vand.u32 2147483648, %v23286_v26 }
0x15ac   : > { %14902 = vadd.xlane.f32.xlu1 %v14901_v46  ;;  %v14896_v51 = vmul.f32 %v14892_v32, %v14884_v9 }
0x15ad   : > { %v20852_v55 = vpop.eup %20851  ;;  %v14895_v62 = vmul.f32 %v14892_v32, %v14883_v22 }
0x15ae   : > { %v20854_v36 = vpop.eup %20853  ;;  %v14886_v25 = vmul.f32 %v20852_v55, %v20144_v16  ;;  %v14910_v49 = vsel %vm1500_vm13, %v14896_v51, 0.0 }
0x15af   : > { %v14885_v6 = vmul.f32 %v20854_v36, %v20145_v61  ;;  %14911 = vadd.xlane.f32.xlu0 %v14910_v49  ;;  %v14907_v28 = vsel %vm1500_vm13, %v14895_v62, 0.0 }
0x15b0   : > { %v14898_v18 = vmul.f32 %v14892_v32, %v14886_v25  ;;  %v1437_v25 = vand.u32 2147483648, %v1406_v15 }
0x15b1   : > { %v20856_v40 = vpop.eup %20855  ;;  %v14897_v24 = vmul.f32 %v14892_v32, %v14885_v6 }
0x15b2   : > { %v14888_v50 = vmul.f32 %v20856_v40, %v20146_v8  ;;  %v14916_v16 = vsel %vm1500_vm13, %v14898_v18, 0.0 }
0x15b3   : > { %14908 = vadd.xlane.f32.xlu0 %v14907_v28  ;;  %v14913_v33 = vsel %vm1500_vm13, %v14897_v24, 0.0 }
0x15b4   : > { %v20858_v43 = vpop.eup %20857  ;;  %14914 = vadd.xlane.f32.xlu1 %v14913_v33  ;;  %v14900_v10 = vmul.f32 %v14892_v32, %v14888_v50  ;;  %v1430_v33 = vand.u32 2147483648, %v1405_v21 }
0x15b5   : > { %v14887_v52 = vmul.f32 %v20858_v43, %v20147_v1  ;;  %v23725_v1 = vld [vmem:[#allocation46_spill] sm:$0xff] }
0x15b6   : > { %v14922_v8 = vsel %vm1500_vm13, %v14900_v10, 0.0  ;;  %v1404_v37 = vadd.f32 1e-08, %v23725_v1 }
0x15b7   : > { %14917 = vadd.xlane.f32.xlu0 %v14916_v16  ;;  %v14899_v13 = vmul.f32 %v14892_v32, %v14887_v52  ;;  %v23731_v32 = vld [vmem:[#allocation71_spill] sm:$0xff]  ;;  %v1444_v16 = vand.u32 2147483648, %v1407_v39 }
0x15b8   : > { %20859 = vrsqrt.f32 %v1404_v37  ;;  %v23282_v42 = vadd.f32 1e-08, %v23731_v32  ;;  %vm1420_vm0 = vcmp.eq.f32.partialorder %v1404_v37, inf  ;;  %v1423_v56 = vand.u32 2147483648, %v1404_v37  ;;  %v23733_v32 = vld [vmem:[#allocation7_spill] sm:$0xff] }
0x15b9   : > { %v14919_v61 = vsel %vm1500_vm13, %v14899_v13, 0.0  ;;  %20861 = vrsqrt.f32 %v1403_v47  ;;  %vm1422_vm2 = vcmp.eq.f32.partialorder %v1404_v37, 0.0 }
0x15ba   : > { %14920 = vadd.xlane.f32.xlu1 %v14919_v61  ;;  %20863 = vrsqrt.f32 %v1406_v15  ;;  %vm1455_vm12 = vcmp.eq.f32.partialorder %v23282_v42, inf  ;;  %v1458_v30 = vand.u32 2147483648, %v23282_v42 }
0x15bb   : > { %14923 = vadd.xlane.f32.xlu0 %v14922_v8  ;;  %20865 = vrsqrt.f32 %v1405_v21 }
0x15bc   : > { %20867 = vrsqrt.f32 %v1407_v39 }
0x15bd   : > { %20869 = vrsqrt.f32 %v23279_v20 }
0x15be   : > { %20871 = vrsqrt.f32 %v23282_v42 }
0x15bf   : > { %20873 = vrsqrt.f32 %v23286_v26 }
0x15c2   : > { %v20860_v23 = vpop.eup %20859 }
0x15c3   : > { %v20862_v38 = vpop.eup %20861  ;;  %v1419_v11 = vmul.f32 %v20860_v23, %v1404_v37 }
0x15c4   : > { %v20864_v35 = vpop.eup %20863  ;;  %v1412_v45 = vmul.f32 %v20862_v38, %v1403_v47 }
0x15c5   : > { %v1421_v12 = vsel %vm1420_vm0, %v1404_v37, %v1419_v11  ;;  %v1433_v63 = vmul.f32 %v20864_v35, %v1406_v15  ;;  %v20866_v27 = vpop.eup %20865  ;;  %vm1457_vm0 = vcmp.eq.f32.partialorder %v23282_v42, 0.0 }
0x15c6   : > { %v1414_v57 = vsel %vm1413_vm1, %v1403_v47, %v1412_v45  ;;  %v20868_v9 = vpop.eup %20867  ;;  %v1424_v22 = vsel %vm1422_vm2, %v1423_v56, %v1421_v12  ;;  %v1426_v55 = vmul.f32 %v20866_v27, %v1405_v21  ;;  %vm1464_vm1 = vcmp.eq.f32.partialorder %v23286_v26, 0.0  ;;  %v23734_v45 = vld [vmem:[#allocation8_spill] sm:$0xff]  ;;  %v23735_v56 = vld [vmem:[#allocation9_spill] sm:$0xff] }
0x15c7   : > { %v1417_v46 = vsel %vm1415_vm3, %v1416_v17, %v1414_v57  ;;  %v1435_v51 = vsel %vm1434_vm4, %v1406_v15, %v1433_v63  ;;  %v20870_v36 = vpop.eup %20869  ;;  %v1440_v49 = vmul.f32 %v20868_v9, %v1407_v39  ;;  %v1468_v62 = vadd.f32 1.0, %v1424_v22 }
0x15c8   : > { %v1467_v6 = vadd.f32 1.0, %v1417_v46  ;;  %v1438_v40 = vsel %vm1436_vm5, %v1437_v25, %v1435_v51  ;;  %v20872_v24 = vpop.eup %20871  ;;  %v1428_v50 = vsel %vm1427_vm6, %v1405_v21, %v1426_v55  ;;  %v1447_v28 = vmul.f32 %v20870_v36, %v23279_v20 }
0x15c9   : > { %v20874_v18 = vpop.eup %20873  ;;  %v1442_v43 = vsel %vm1441_vm7, %v1407_v39, %v1440_v49  ;;  %20875 = vrcp.f32 %v1468_v62  ;;  %v1470_v52 = vadd.f32 1.0, %v1438_v40  ;;  %v1431_v10 = vsel %vm1429_vm8, %v1430_v33, %v1428_v50  ;;  %v23736_v62 = vld [vmem:[#allocation10_spill] sm:$0xff] }
0x15ca   : > { %20877 = vrcp.f32 %v1467_v6  ;;  %v1454_v13 = vmul.f32 %v20872_v24, %v23282_v42  ;;  %v1445_v61 = vsel %vm1443_vm9, %v1444_v16, %v1442_v43  ;;  %v1449_v8 = vsel %vm1448_vm10, %v23279_v20, %v1447_v28  ;;  %v23737_v28 = vld [vmem:[#allocation15_spill] sm:$0xff] }
0x15cb   : > { %15523 = vperm.xlu1 %20586, %v510_v19   ;;  %v1461_v19 = vmul.f32 %v20874_v18, %v23286_v26  ;;  %20879 = vrcp.f32 %v1470_v52  ;;  %v1469_v1 = vadd.f32 1.0, %v1431_v10  ;;  %v1471_v37 = vadd.f32 1.0, %v1445_v61 }
0x15cc   : > { %v1456_v47 = vsel %vm1455_vm12, %v23282_v42, %v1454_v13 }
0x15cd   : > { %v1463_v15 = vsel %vm1462_vm14, %v23286_v26, %v1461_v19  ;;  %20881 = vrcp.f32 %v1469_v1  ;;  %v1459_v4 = vsel %vm1457_vm0, %v1458_v30, %v1456_v47  ;;  %v23738_v19 = vld [vmem:[#allocation13_spill] sm:$0xff] }
0x15ce   : > { %20883 = vrcp.f32 %v1471_v37  ;;  %v1466_v39 = vsel %vm1464_vm1, %v1465_v44, %v1463_v15  ;;  %v1473_v23 = vadd.f32 1.0, %v1459_v4 }
0x15cf   : > { %v1474_v38 = vadd.f32 1.0, %v1466_v39 }
0x15d1   : > { %15528 = vperm.xlu0 %20585, %v511_v2   ;;  %v1451_v2 = vand.u32 2147483648, %v23279_v20 }
0x15d3   : > { %v1452_v60 = vsel %vm1450_vm11, %v1451_v2, %v1449_v8  ;;  %v20876_v29 = vpop.eup %20875 }
0x15d4   : > { %v1472_v21 = vadd.f32 1.0, %v1452_v60  ;;  %v20878_v20 = vpop.eup %20877  ;;  %v1478_v41 = vmul.f32 %v20876_v29, %v23733_v32 }
0x15d5   : > { %v20880_v11 = vpop.eup %20879  ;;  %v1476_v42 = vmul.f32 %v20878_v20, %v23734_v45  ;;  %v23739_v20 = vld [vmem:[#allocation20_spill] sm:$0xff] }
0x15d6   : > { %20885 = vrcp.f32 %v1472_v21  ;;  %v1482_v57 = vmul.f32 %v20880_v11, %v23735_v56 }
0x15d7   : > { %20887 = vrcp.f32 %v1473_v23  ;;  %v20882_v9 = vpop.eup %20881 }
0x15d8   : > { %20889 = vrcp.f32 %v1474_v38  ;;  %v20884_v46 = vpop.eup %20883  ;;  %v1480_v6 = vmul.f32 %v20882_v9, %v23736_v62 }
0x15d9   : > { %v1484_v18 = vmul.f32 %v20884_v46, %v23737_v28 }
0x15e0   : > { %v20886_v40 = vpop.eup %20885 }
0x15e1   : > { %v1486_v2 = vmul.f32 %v20886_v40, %v23738_v19 }
0x1638   : > { %v14906_v35 = vpop.xlane.xlu0 %14905 }
0x1639   : > { %v14926_v12 = vmul.f32 %v14906_v35, %v1478_v41  ;;  %v14903_v63 = vpop.xlane.xlu1 %14902  ;;  %v23740_v35 = vld [vmem:[#allocation19_spill] sm:$0xff] }
0x163a   : > { %v14925_v27 = vmul.f32 %v14903_v63, %v1476_v42 }
0x163b   : > { %v14934_v26 = vmul.f32 %v14926_v12, %v21953_v53 }
0x163c   : > { %v14933_v17 = vmul.f32 %v14925_v27, %v21951_v14  ;;  %v14912_v22 = vpop.xlane.xlu0 %14911 }
0x163d   : > { %v14945_v51 = vand.u32 4294901760, %v14934_v26  ;;  %v14928_v55 = vmul.f32 %v14912_v22, %v1482_v57 }
0x163e   : > { %v14942_v36 = vand.u32 4294901760, %v14933_v17 }
0x163f   : > { %v15043_v25 = vsub.f32 %v14934_v26, %v14945_v51  ;;  %v14936_v49 = vmul.f32 %v14928_v55, %v21955_v34  ;;  %v20888_v34 = vpop.eup %20887 }
0x1640   : > { %v23312_v24 = vpack.c.bf16 %v14945_v51, %v14942_v36  ;;  %v15036_v50 = vsub.f32 %v14933_v17, %v14942_v36  ;;  %v14909_v53 = vpop.xlane.xlu0 %14908  ;;  %v20890_v37 = vpop.eup %20889  ;;  %v1488_v23 = vmul.f32 %v20888_v34, %v23739_v20  ;;  %v23741_v51 = vld [vmem:[#allocation84_spill] sm:$0xff] }
0x1641   : > { %v14951_v33 = vand.u32 4294901760, %v14936_v49  ;;  %v14927_v43 = vmul.f32 %v14909_v53, %v1480_v6  ;;  %v14915_v14 = vpop.xlane.xlu1 %14914  ;;  %v15044_v52 = vand.u32 4294901760, %v15043_v25 }
0x1642   : > { %v14929_v16 = vmul.f32 %v14915_v14, %v1484_v18  ;;  %19997 = vmatprep.subr.bf16.mxu1 %v23312_v24  ;;  %v15037_v10 = vand.u32 4294901760, %v15036_v50  ;;  %v23316_v13 = vpack.c.bf16 %v15043_v25, %v15036_v50 }
0x1643   : > { %v15057_v61 = vsub.f32 %v14936_v49, %v14951_v33  ;;  %v14935_v8 = vmul.f32 %v14927_v43, %v23666_v31  ;;  %19999 = vmatpush3.bf16.msra.mxu1 %v23312_v24  ;;  %v15045_v1 = vsub.f32 %v15043_v25, %v15044_v52 }
0x1644   : > { %v14937_v60 = vmul.f32 %v14929_v16, %v23668_v58  ;;  %v14918_v47 = vpop.xlane.xlu0 %14917  ;;  %v15038_v30 = vsub.f32 %v15036_v50, %v15037_v10  ;;  %v23322_v15 = vpack.c.bf16 %v15044_v52, %v15037_v10  ;;  %v1490_v58 = vmul.f32 %v20890_v37, %v23740_v35  ;;  %v20897_v35 = vld [vmem:[%s21007_s24] sm:$0xff] }
0x1645   : > { %v14948_v44 = vand.u32 4294901760, %v14935_v8  ;;  %v14930_v21 = vmul.f32 %v14918_v47, %v1486_v2  ;;  %v15046_v4 = vand.u32 4294901760, %v15045_v1  ;;  %v15058_v39 = vand.u32 4294901760, %v15057_v61 }
0x1646   : > { %v14954_v29 = vand.u32 4294901760, %v14937_v60  ;;  %v15039_v31 = vand.u32 4294901760, %v15038_v30  ;;  %v23742_v30 = vld [vmem:[#allocation87_spill] sm:$0xff] }
0x1647   : > { %v23325_v38 = vpack.c.bf16 %v14951_v33, %v14948_v44  ;;  %v15050_v32 = vsub.f32 %v14935_v8, %v14948_v44  ;;  %v14938_v41 = vmul.f32 %v14930_v21, %v23667_v7  ;;  %v14921_v11 = vpop.xlane.xlu1 %14920  ;;  %v15059_v27 = vsub.f32 %v15057_v61, %v15058_v39  ;;  %v23743_v21 = vld [vmem:[#allocation3_spill] sm:$0xff] }
0x1648   : > { %v15064_v45 = vsub.f32 %v14937_v60, %v14954_v29  ;;  %v14931_v42 = vmul.f32 %v14921_v11, %v1488_v23  ;;  %v14924_v12 = vpop.xlane.xlu0 %14923  ;;  %v20012_v63 = vpack.c.bf16 %v15046_v4, %v15039_v31  ;;  %v23744_v4 = vld [vmem:[#allocation77_spill] sm:$0xff] }
0x1649   : > { %v14957_v26 = vand.u32 4294901760, %v14938_v41  ;;  %v14932_v56 = vmul.f32 %v14924_v12, %v1490_v58  ;;  %20001 = vmatprep.subr.bf16.mxu1 %v23325_v38  ;;  %v15051_v57 = vand.u32 4294901760, %v15050_v32  ;;  %v20032_v7 = vpack.c.bf16 %v15057_v61, %v15050_v32 }
0x164a   : > { %v14939_v9 = vmul.f32 %v14931_v42, %v23670_v3  ;;  %20003 = vmatpush3.bf16.msra.mxu1 %v23325_v38  ;;  %20013 = vmatprep.subr.bf16.mxu0 %v20012_v63  ;;  %v15065_v17 = vand.u32 4294901760, %v15064_v45  ;;  %v15060_v49 = vand.u32 4294901760, %v15059_v27  ;;  %v15537_v27 = vmul.f32 %v22938_v54, %v22262_v59 }
0x164b   : > { %v23332_v22 = vpack.c.bf16 %v14957_v26, %v14954_v29  ;;  %v15071_v46 = vsub.f32 %v14938_v41, %v14957_v26  ;;  %v14940_v55 = vmul.f32 %v14932_v56, %v23741_v51  ;;  %20015 = vmatpush3.bf16.msra.mxu0 %v20012_v63  ;;  %v15052_v36 = vsub.f32 %v15050_v32, %v15051_v57  ;;  %v23746_v29 = vld [vmem:[#allocation78_spill] sm:$0xff] }
0x164c   : > { %v14960_v25 = vand.u32 4294901760, %v14939_v9  ;;  %v15066_v62 = vsub.f32 %v15064_v45, %v15065_v17  ;;  %v20064_v6 = vpack.c.bf16 %v15058_v39, %v15051_v57  ;;  %v23745_v39 = vld [vmem:[#allocation83_spill] sm:$0xff] }
0x164d   : > { %v14963_v40 = vand.u32 4294901760, %v14940_v55  ;;  %20005 = vmatprep.subr.bf16.mxu1 %v23332_v22  ;;  %v15053_v3 = vand.u32 4294901760, %v15052_v36  ;;  %v15072_v50 = vand.u32 4294901760, %v15071_v46  ;;  %v20036_v53 = vpack.c.bf16 %v15071_v46, %v15064_v45  ;;  %v20898_v45 = vld [vmem:[%s21007_s24 + $0x8] sm:$0xff] }
0x164e   : > { %v15078_v28 = vsub.f32 %v14939_v9, %v14960_v25  ;;  %20007 = vmatpush3.bf16.msra.mxu1 %v23332_v22  ;;  %v15067_v10 = vand.u32 4294901760, %v15066_v62  ;;  %v15538_v9 = vmul.f32 %v22935_v5, %v22260_v0 }
0x164f   : > { %v23337_v18 = vpack.c.bf16 %v14963_v40, %v14960_v25  ;;  %v15085_v33 = vsub.f32 %v14940_v55, %v14963_v40  ;;  %v20016_v43 = vpack.c.bf16 %v15060_v49, %v15053_v3  ;;  %v15073_v14 = vsub.f32 %v15071_v46, %v15072_v50 }
0x1650   : > { %v15079_v52 = vand.u32 4294901760, %v15078_v28  ;;  %v20068_v16 = vpack.c.bf16 %v15072_v50, %v15065_v17  ;;  %v15529_v32 = vpop.permute.xlu0 %15528 }
0x1651   : > { %20009 = vmatprep.subr.bf16.mxu1 %v23337_v18  ;;  %20017 = vmatprep.subr.bf16.mxu0 %v20016_v43  ;;  %v15074_v34 = vand.u32 4294901760, %v15073_v14  ;;  %v15086_v61 = vand.u32 4294901760, %v15085_v33  ;;  %v20040_v8 = vpack.c.bf16 %v15085_v33, %v15078_v28 }
0x1652   : > { %20011 = vmatpush3.bf16.msra.mxu1 %v23337_v18  ;;  %20019 = vmatpush3.bf16.msra.mxu0 %v20016_v43  ;;  %v15080_v19 = vsub.f32 %v15078_v28, %v15079_v52 }
0x1653   : > { %v20020_v2 = vpack.c.bf16 %v15074_v34, %v15067_v10  ;;  %v15087_v1 = vsub.f32 %v15085_v33, %v15086_v61  ;;  %v20072_v37 = vpack.c.bf16 %v15086_v61, %v15079_v52 }
0x1654   : > { %v15081_v60 = vand.u32 4294901760, %v15080_v19 }
0x1655   : > { %20021 = vmatprep.subr.bf16.mxu0 %v20020_v2  ;;  %v15088_v47 = vand.u32 4294901760, %v15087_v1  ;;  %18819 = vmatmul.mubr.f32.vlgmr.msra.gmra.mrb[46].mxu1 %v23742_v30 }
0x1656   : > { %20023 = vmatpush3.bf16.msra.mxu0 %v20020_v2 }
0x1657   : > { %v20024_v44 = vpack.c.bf16 %v15088_v47, %v15081_v60 }
0x1659   : > { %20025 = vmatprep.subr.bf16.mxu0 %v20024_v44 }
0x165a   : > { %20027 = vmatpush3.bf16.msra.mxu0 %v20024_v44 }
0x165b   : > { %20029 = vmatprep.subr.bf16.mxu0 %v23316_v13 }
0x165d   : > { %18838 = vmatmul.mubr.msk.f32.vlgmr.msra.gmra.mrb[42].mxu0 %vm4612_vm15, %v23743_v21 }
0x165e   : > { %20031 = vmatpush3.bf16.msra.mxu0 %v23316_v13  ;;  %18856 = vmatprep.mubr.f32.mxu0 %v23744_v4  ;;  %v23747_v13 = vld [vmem:[#allocation85_spill] sm:$0xff] }
0x165f   : > { %20033 = vmatprep.subr.bf16.mxu0 %v20032_v7 }
0x1662   : > { %20035 = vmatpush3.bf16.msra.mxu0 %v20032_v7 }
0x1663   : > { %20037 = vmatprep.subr.bf16.mxu0 %v20036_v53 }
0x1666   : > { %20039 = vmatpush3.bf16.msra.mxu0 %v20036_v53 }
0x1667   : > { %20041 = vmatprep.subr.bf16.mxu0 %v20040_v8 }
0x166a   : > { %20043 = vmatpush3.bf16.msra.mxu0 %v20040_v8 }
0x166b   : > { %20045 = vmatprep.subr.bf16.mxu0 %v23312_v24 }
0x166d   : > { %18857 = vmatmul.mubr.f32.vlgmr.msra.gmra.mrb[42].mxu0 %v23745_v39 }
0x166e   : > { %20047 = vmatpush3.bf16.msra.mxu0 %v23312_v24  ;;  %18875 = vmatprep.mubr.f32.mxu0 %v23746_v29 }
0x166f   : > { %20049 = vmatprep.subr.bf16.mxu0 %v23325_v38 }
0x1672   : > { %20051 = vmatpush3.bf16.msra.mxu0 %v23325_v38 }
0x1673   : > { %20053 = vmatprep.subr.bf16.mxu0 %v23332_v22 }
0x1676   : > { %20055 = vmatpush3.bf16.msra.mxu0 %v23332_v22 }
0x1677   : > { %20057 = vmatprep.subr.bf16.mxu0 %v23337_v18 }
0x167a   : > { %20059 = vmatpush3.bf16.msra.mxu0 %v23337_v18 }
0x167b   : > { %20061 = vmatprep.subr.bf16.mxu0 %v23322_v15 }
0x167d   : > { %18876 = vmatmul.mubr.f32.vlgmr.msra.gmra.mrb[42].mxu0 %v23747_v13 }
0x167e   : > { %20063 = vmatpush3.bf16.msra.mxu0 %v23322_v15  ;;  %18894 = vmatprep.mubr.msk.f32.mxu0 %vm4612_vm15, %v23671_v48 }
0x167f   : > { %20065 = vmatprep.subr.bf16.mxu0 %v20064_v6 }
0x1682   : > { %20067 = vmatpush3.bf16.msra.mxu0 %v20064_v6 }
0x1683   : > { %20069 = vmatprep.subr.bf16.mxu0 %v20068_v16 }
0x1686   : > { %20071 = vmatpush3.bf16.msra.mxu0 %v20068_v16 }
0x1687   : > { %20073 = vmatprep.subr.bf16.mxu0 %v20072_v37 }
0x168a   : > { %20075 = vmatpush3.bf16.msra.mxu0 %v20072_v37 }
0x168b   : > { %20077 = vmatprep.subr.bf16.mxu0 %v23312_v24 }
0x168d   : > { %18895 = vmatmul.mubr.msk.f32.vlgmr.msra.gmra.mrb[42].mxu0 %vm4612_vm15, %v23743_v21 }
0x168e   : > { %20079 = vmatpush3.bf16.msra.mxu0 %v23312_v24  ;;  %18913 = vmatprep.mubr.msk.f32.mxu0 %vm4612_vm15, %v23671_v48 }
0x168f   : > { %20081 = vmatprep.subr.bf16.mxu0 %v23325_v38 }
0x1692   : > { %20083 = vmatpush3.bf16.msra.mxu0 %v23325_v38  ;;  %v15524_v38 = vpop.permute.xlu1 %15523 }
0x1693   : > { %20085 = vmatprep.subr.bf16.mxu0 %v23332_v22 }
0x1696   : > { %20087 = vmatpush3.bf16.msra.mxu0 %v23332_v22 }
0x1697   : > { %20089 = vmatprep.subr.bf16.mxu0 %v23337_v18 }
0x169a   : > { %20091 = vmatpush3.bf16.msra.mxu0 %v23337_v18 }
0x169d   : > { %18914 = vmatmul.mubr.msk.f32.vlgmr.msra.gmra.mrb[42].mxu0 %vm4612_vm15, %v23743_v21  ;;  %vm15549_vm15 = vcmask 285696  }
0x1728   : > { %v18820_v24 = vpop.f32.mrb[46].mxu1 }
0x1729   : > { %v15020_v15 = vpop.f32.mrb[47].mxu1 }
0x1770   : > { %v18915_v48 = vpop.f32.mrb[42].mxu0 }
0x1771   : > { %v20148_v20 = vadd.f32 %v18915_v48, %v18820_v24  ;;  %v15511_v23 = vpop.f32.mrb[43].mxu0 }
0x1772   : > { %v20149_v31 = vadd.f32 %v15511_v23, %v15020_v15 }
0x1773   : > { %v15532_v41 = vmul.f32 %v20148_v20, %v15529_v32 }
0x1774   : > { %v15531_v11 = vmul.f32 %v20149_v31, %v15524_v38 }
0x1775   : > { %v15534_v42 = vadd.f32 %v20898_v45, %v15532_v41 }
0x1776   : > { %v15533_v58 = vadd.f32 %v20897_v35, %v15531_v11 }
0x1777   : > { %v15536_v63 = vmul.f32 %v15534_v42, %v22260_v0 }
0x1778   : > { %v15535_v12 = vmul.f32 %v15533_v58, %v22262_v59 }
0x177a   : > { %15541 = vrot.lane.b32.xlu1 %v15535_v12, %s20909_s30 }
0x177e   : > { %15543 = vrot.lane.b32.xlu1 %v15536_v63, %s20909_s30 }
0x17ec   : > { %v15542_v26 = vpop.permute.xlu1 %15541 }
0x17ed   : > { %v15547_v56 = vsel %vm1500_vm13, %v15537_v27, %v15542_v26 }
0x17ee   : > { %v15550_v57 = vsel %vm15549_vm15, %v15547_v56, 0.0 }
0x17ef   : > { %15552 = vst [vmem:[%s487_s17] sm:$0xff] %v15550_v57 }
0x17f0   : > { %v15544_v17 = vpop.permute.xlu1 %15543 }
0x17f1   : > { %v15548_v7 = vsel %vm1500_vm13, %v15538_v9, %v15544_v17 }
0x17f2   : > { %v15551_v22 = vsel %vm15549_vm15, %v15548_v7, 0.0 }
0x17f3   : > { %15553 = vst [vmem:[%s487_s17 + $0x8] sm:$0xff] %v15551_v22 }
0x17f4 PF: > { %s20_s13 = sadd.s32 1, %s20905_s13  }
0x17f5   : > { %p17_p4 = scmp.ge.s32.totalorder %s20_s13, 10  }
0x17f7   :  { %19 = sbr.rel (!%p17_p4) target bundleno = 1 (0x1), region = 125 }

</bundles_post_ra>
